<compile_context>
chip_gen: v7x
topology: tpu7x:2x2x1
jax: 0.10.0
libtpu: 0.0.40
codegen_flags: <defaults>
</compile_context>

<pallas_src>
import functools

import jax
import jax.numpy as jnp
from jax.experimental import pallas as pl
from jax.experimental.pallas import tpu as pltpu

BN_EPS = 1e-5


def _shift_prev(x):
    """x[:, l-1, :] with replicate left edge.  (N, L, C) -> (N, L, C)."""
    L = x.shape[1]
    return jnp.concatenate([x[:, :1, :], x[:, :L - 1, :]], axis=1)


def _shift_next(x):
    """x[:, l+1, :] with replicate right edge.  (N, L, C) -> (N, L, C)."""
    L = x.shape[1]
    return jnp.concatenate([x[:, 1:, :], x[:, L - 1:, :]], axis=1)


def _conv1d_relu_mxu(x, w_ref, b_ref):
    """Conv1d(k=3, s=1, p=1, replicate) + ReLU as 3 per-tap MXU matmuls.

    x: (N, L, c_in) f32; w_ref: (3, c_in, c_out) bf16 VMEM ref; b_ref: (1, c_out) f32.
    No (N, L, 3*c_in) im2col buffer is materialized; f32 accumulation on the MXU.
    """
    n, L, c_in = x.shape
    c_out = w_ref.shape[2]

    xm = x.reshape(n * L, c_in)
    xp = _shift_prev(x).reshape(n * L, c_in)
    xn = _shift_next(x).reshape(n * L, c_in)

    def mm(v, t):
        return jnp.dot(v.astype(jnp.bfloat16), w_ref[t],
                       preferred_element_type=jnp.float32)

    acc = mm(xp, 0) + mm(xm, 1) + mm(xn, 2)                 # (N*L, c_out) f32
    h = jnp.maximum(acc + b_ref[...], 0.0)
    return h.reshape(n, L, c_out)


def _conv1d_relu_vpu_cin1(x, w_ref, b_ref):
    """Block-1 conv1 (c_in == 1): 3 broadcast FMAs on the VPU, all f32.

    x: (N, L, 1); w_ref: (3, 1, c_out) f32; b_ref: (1, c_out) f32.
    """
    xp = _shift_prev(x)
    xn = _shift_next(x)
    h = xp * w_ref[0] + x * w_ref[1] + xn * w_ref[2] + b_ref[...]
    return jnp.maximum(h, 0.0)


def _maxpool_k3s2p1(h):
    """MaxPool1d(kernel=3, stride=2, padding=1) on (N, L, C), L even -> (N, L//2, C).

    out[:, j] = max(h[:, 2j-1], h[:, 2j], h[:, 2j+1])  (h[:, -1] treated as -inf).
    Even/odd rows extracted via a last-dim-preserving reshape (no O(L) slicing).
    """
    n, L, c = h.shape
    lo = L // 2
    hp = h.reshape(n * lo, 2, c)
    even = hp[:, 0, :]                                      # h[:, 0::2, :]
    odd = hp[:, 1, :]                                       # h[:, 1::2, :]
    pair = jnp.maximum(even, odd).reshape(n, lo, c)
    if lo == 1:
        return pair                                         # left neighbor is the -inf pad
    odd3 = odd.reshape(n, lo, c)
    left = jnp.concatenate(
        [jnp.full((n, 1, c), -jnp.inf, h.dtype), odd3[:, :lo - 1, :]], axis=1)
    return jnp.maximum(pair, left)


def _encoder_kernel(chs, *refs):
    x_ref = refs[0]
    out_ref = refs[-1]
    prefs = refs[1:-1]

    x = x_ref[...]                      # (N, L0, 1), channels-last, f32
    res = x                             # residual always has exactly 1 channel
    n_blocks = len(chs) - 1

    for bi, (c_in, c_out) in enumerate(zip(chs[:-1], chs[1:])):
        g_ref, be_ref, w1_ref, b1_ref, w2_ref, b2_ref = prefs[6 * bi:6 * bi + 6]

        # BatchNorm1d, training-mode biased batch statistics, folded into one
        # per-channel scale + shift (f32).
        mu = jnp.mean(x, axis=(0, 1), keepdims=True)                    # (1, 1, c_in)
        msq = jnp.mean(x * x, axis=(0, 1), keepdims=True)
        var = jnp.maximum(msq - mu * mu, 0.0)      # clamp one-pass cancellation
        scale = g_ref[...] * jax.lax.rsqrt(var + BN_EPS)
        shift = be_ref[...] - mu * scale
        xb = x * scale + shift

        # conv1 + ReLU, conv2 + ReLU (replicate padding, per-tap matmuls)
        if c_in == 1:
            h = _conv1d_relu_vpu_cin1(xb, w1_ref, b1_ref)
        else:
            h = _conv1d_relu_mxu(xb, w1_ref, b1_ref)
        h = _conv1d_relu_mxu(h, w2_ref, b2_ref)

        # x += res.repeat(1, c_out, 1): res has 1 channel -> lane broadcast
        h = h + res

        x = _maxpool_k3s2p1(h)
        if bi < n_blocks - 1:
            res = _maxpool_k3s2p1(res)

    out_ref[...] = x                    # (N, L_final, chs[-1]), lane-dense store


def encoder_forward(x_ncl, params, chs=(1, 64, 128, 256)):
    """x_ncl: (N, 1, L) float32, PyTorch NCL layout. Returns (N, chs[-1], L_out)."""
    N, c0, L0 = x_ncl.shape
    n_blocks = len(chs) - 1
    assert c0 == 1 and chs[0] == 1, "Encoder expects a single input channel"
    # All intermediate lengths must stay even so MaxPool1d(3,2,1) halves exactly.
    assert L0 % (2 ** n_blocks) == 0, "L0 must be divisible by 2**n_blocks"
    L_out = L0 // (2 ** n_blocks)

    x_nlc = jnp.transpose(x_ncl, (0, 2, 1)).astype(jnp.float32)         # (N, L0, 1)

    # Pre-arrange conv weights as (3, c_in, c_out) per-tap matrices (host/XLA side):
    # PyTorch (c_out, c_in, 3) -> tap-major (3, c_in, c_out).  MXU convs get bf16
    # weights; the c_in==1 VPU conv keeps f32.
    kernel_ins = [x_nlc]
    flops = 0
    transcendentals = 0
    L = L0
    for p, c_in, c_out in zip(params, chs[:-1], chs[1:]):
        w1 = jnp.transpose(p["w1"], (2, 1, 0))                          # (3, c_in, c_out)
        w2 = jnp.transpose(p["w2"], (2, 1, 0))                          # (3, c_out, c_out)
        w1 = w1.astype(jnp.float32 if c_in == 1 else jnp.bfloat16)
        w2 = w2.astype(jnp.bfloat16)
        kernel_ins += [
            p["gamma"].reshape(1, 1, c_in).astype(jnp.float32),
            p["beta"].reshape(1, 1, c_in).astype(jnp.float32),
            w1,
            p["b1"].reshape(1, c_out).astype(jnp.float32),
            w2,
            p["b2"].reshape(1, c_out).astype(jnp.float32),
        ]
        flops += 2 * N * L * 3 * c_in * c_out                           # conv1
        flops += 2 * N * L * 3 * c_out * c_out                          # conv2
        transcendentals += c_in                                         # rsqrt per channel
        L //= 2

    bytes_accessed = sum(int(a.size) * a.dtype.itemsize for a in kernel_ins)
    bytes_accessed += N * L_out * chs[-1] * 4

    vmem = pl.BlockSpec(memory_space=pltpu.MemorySpace.VMEM)
    out_nlc = pl.pallas_call(
        functools.partial(_encoder_kernel, chs),
        out_shape=jax.ShapeDtypeStruct((N, L_out, chs[-1]), jnp.float32),
        in_specs=[vmem] * len(kernel_ins),
        out_specs=vmem,
        compiler_params=pltpu.CompilerParams(
            vmem_limit_bytes=48 * 1024 * 1024),       # safe on v5e/v6e (128 MiB) and v7x (64 MiB)
        cost_estimate=pl.CostEstimate(flops=int(flops),
                                      transcendentals=int(transcendentals),
                                      bytes_accessed=int(bytes_accessed)),
    )(*kernel_ins)

    # back to the PyTorch NCL API shape
    return jnp.transpose(out_nlc, (0, 2, 1))


def init_encoder_params(key, chs=(1, 64, 128, 256)):
    """Parameters in PyTorch-native layouts (Conv1d: (c_out, c_in, 3), bias (c_out,))."""
    params = []
    for i in range(len(chs) - 1):
        c_in, c_out = chs[i], chs[i + 1]
        key, k0, k1, k2, k3, k4, k5 = jax.random.split(key, 7)
        params.append(dict(
            gamma=(1.0 + 0.1 * jax.random.normal(k0, (c_in,))).astype(jnp.float32),
            beta=(0.1 * jax.random.normal(k1, (c_in,))).astype(jnp.float32),
            w1=(0.1 * jax.random.normal(k2, (c_out, c_in, 3))).astype(jnp.float32),
            b1=(0.1 * jax.random.normal(k3, (c_out,))).astype(jnp.float32),
            w2=(0.1 * jax.random.normal(k4, (c_out, c_out, 3))).astype(jnp.float32),
            b2=(0.1 * jax.random.normal(k5, (c_out,))).astype(jnp.float32),
        ))
    return params


if __name__ == "__main__":
    key = jax.random.PRNGKey(0)
    kx, kp = jax.random.split(key)

    N, L = 2, 16
    chs = (1, 64, 128, 256)            # module default; Encoder requires C_in == 1
    x = jax.random.normal(kx, (N, chs[0], L), dtype=jnp.float32)
    params = init_encoder_params(kp, chs)

    fwd = jax.jit(encoder_forward)
    out = fwd(x, params)
    out = jax.block_until_ready(out)

    # L: 16 -> 8 -> 4 -> 2 after the three pooled blocks.
    assert out.shape == (N, chs[-1], 2), out.shape
    assert bool(jnp.all(jnp.isfinite(out)))
    print("KERNEL_OK")
</pallas_src>

<mosaic_0001>
module attributes {stable_mosaic.version = 11 : i64} {
  func.func @_encoder_kernel(%arg0: memref<2x16x1xf32, #tpu.memory_space<vmem>>, %arg1: memref<1x1x1xf32, #tpu.memory_space<vmem>>, %arg2: memref<1x1x1xf32, #tpu.memory_space<vmem>>, %arg3: memref<3x1x64xf32, #tpu.memory_space<vmem>>, %arg4: memref<1x64xf32, #tpu.memory_space<vmem>>, %arg5: memref<3x64x64xbf16, #tpu.memory_space<vmem>>, %arg6: memref<1x64xf32, #tpu.memory_space<vmem>>, %arg7: memref<1x1x64xf32, #tpu.memory_space<vmem>>, %arg8: memref<1x1x64xf32, #tpu.memory_space<vmem>>, %arg9: memref<3x64x128xbf16, #tpu.memory_space<vmem>>, %arg10: memref<1x128xf32, #tpu.memory_space<vmem>>, %arg11: memref<3x128x128xbf16, #tpu.memory_space<vmem>>, %arg12: memref<1x128xf32, #tpu.memory_space<vmem>>, %arg13: memref<1x1x128xf32, #tpu.memory_space<vmem>>, %arg14: memref<1x1x128xf32, #tpu.memory_space<vmem>>, %arg15: memref<3x128x256xbf16, #tpu.memory_space<vmem>>, %arg16: memref<1x256xf32, #tpu.memory_space<vmem>>, %arg17: memref<3x256x256xbf16, #tpu.memory_space<vmem>>, %arg18: memref<1x256xf32, #tpu.memory_space<vmem>>, %arg19: memref<2x2x256xf32, #tpu.memory_space<vmem>>) attributes {dimension_semantics = [], scalar_prefetch = 0 : i64, scratch_operands = 0 : i64, tpu.core_type = #tpu.core_type<tc>} {
    %c0 = arith.constant 0 : index
    %c0_0 = arith.constant 0 : index
    %c0_1 = arith.constant 0 : index
    %0 = vector.load %arg0[%c0, %c0_0, %c0_1] : memref<2x16x1xf32, #tpu.memory_space<vmem>>, vector<2x16x1xf32>
    %cst = arith.constant dense<0.000000e+00> : vector<1xf32>
    %1 = vector.multi_reduction <add>, %0, %cst [0, 1] : vector<2x16x1xf32> to vector<1xf32>
    %2 = vector.shape_cast %1 : vector<1xf32> to vector<1x1x1xf32>
    %cst_2 = arith.constant 3.200000e+01 : f32
    %3 = vector.broadcast %cst_2 : f32 to vector<1x1x1xf32>
    %4 = arith.divf %2, %3 : vector<1x1x1xf32>
    %5 = arith.mulf %0, %0 : vector<2x16x1xf32>
    %cst_3 = arith.constant dense<0.000000e+00> : vector<1xf32>
    %6 = vector.multi_reduction <add>, %5, %cst_3 [0, 1] : vector<2x16x1xf32> to vector<1xf32>
    %7 = vector.shape_cast %6 : vector<1xf32> to vector<1x1x1xf32>
    %cst_4 = arith.constant 3.200000e+01 : f32
    %8 = vector.broadcast %cst_4 : f32 to vector<1x1x1xf32>
    %9 = arith.divf %7, %8 : vector<1x1x1xf32>
    %10 = arith.mulf %4, %4 : vector<1x1x1xf32>
    %11 = arith.subf %9, %10 : vector<1x1x1xf32>
    %cst_5 = arith.constant 0.000000e+00 : f32
    %12 = vector.broadcast %cst_5 : f32 to vector<1x1x1xf32>
    %13 = arith.maximumf %11, %12 : vector<1x1x1xf32>
    %c0_6 = arith.constant 0 : index
    %c0_7 = arith.constant 0 : index
    %c0_8 = arith.constant 0 : index
    %14 = vector.load %arg1[%c0_6, %c0_7, %c0_8] : memref<1x1x1xf32, #tpu.memory_space<vmem>>, vector<1x1x1xf32>
    %cst_9 = arith.constant 9.99999974E-6 : f32
    %15 = vector.broadcast %cst_9 : f32 to vector<1x1x1xf32>
    %16 = arith.addf %13, %15 : vector<1x1x1xf32>
    %17 = math.rsqrt %16 : vector<1x1x1xf32>
    %18 = arith.mulf %14, %17 : vector<1x1x1xf32>
    %c0_10 = arith.constant 0 : index
    %c0_11 = arith.constant 0 : index
    %c0_12 = arith.constant 0 : index
    %19 = vector.load %arg2[%c0_10, %c0_11, %c0_12] : memref<1x1x1xf32, #tpu.memory_space<vmem>>, vector<1x1x1xf32>
    %20 = arith.mulf %4, %18 : vector<1x1x1xf32>
    %21 = arith.subf %19, %20 : vector<1x1x1xf32>
    %22 = vector.broadcast %18 : vector<1x1x1xf32> to vector<2x16x1xf32>
    %23 = arith.mulf %0, %22 : vector<2x16x1xf32>
    %24 = vector.broadcast %21 : vector<1x1x1xf32> to vector<2x16x1xf32>
    %25 = arith.addf %23, %24 : vector<2x16x1xf32>
    %26 = vector.extract_strided_slice %25 {offsets = [0, 0, 0], sizes = [2, 1, 1], strides = [1, 1, 1]} : vector<2x16x1xf32> to vector<2x1x1xf32>
    %27 = vector.extract_strided_slice %25 {offsets = [0, 0, 0], sizes = [2, 15, 1], strides = [1, 1, 1]} : vector<2x16x1xf32> to vector<2x15x1xf32>
    %28 = tpu.concatenate %26, %27 in 1 : vector<2x1x1xf32>, vector<2x15x1xf32> -> vector<2x16x1xf32>
    %29 = vector.extract_strided_slice %25 {offsets = [0, 1, 0], sizes = [2, 15, 1], strides = [1, 1, 1]} : vector<2x16x1xf32> to vector<2x15x1xf32>
    %30 = vector.extract_strided_slice %25 {offsets = [0, 15, 0], sizes = [2, 1, 1], strides = [1, 1, 1]} : vector<2x16x1xf32> to vector<2x1x1xf32>
    %31 = tpu.concatenate %29, %30 in 1 : vector<2x15x1xf32>, vector<2x1x1xf32> -> vector<2x16x1xf32>
    %c0_13 = arith.constant 0 : index
    %c0_14 = arith.constant 0 : index
    %c0_15 = arith.constant 0 : index
    %32 = vector.load %arg3[%c0_13, %c0_14, %c0_15] : memref<3x1x64xf32, #tpu.memory_space<vmem>>, vector<1x1x64xf32>
    %33 = vector.shape_cast %32 : vector<1x1x64xf32> to vector<1x64xf32>
    %34 = vector.shape_cast %33 : vector<1x64xf32> to vector<1x1x64xf32>
    %35 = vector.broadcast %28 : vector<2x16x1xf32> to vector<2x16x64xf32>
    %36 = vector.broadcast %34 : vector<1x1x64xf32> to vector<2x16x64xf32>
    %37 = arith.mulf %35, %36 : vector<2x16x64xf32>
    %c1 = arith.constant 1 : index
    %c0_16 = arith.constant 0 : index
    %c0_17 = arith.constant 0 : index
    %38 = vector.load %arg3[%c1, %c0_16, %c0_17] : memref<3x1x64xf32, #tpu.memory_space<vmem>>, vector<1x1x64xf32>
    %39 = vector.shape_cast %38 : vector<1x1x64xf32> to vector<1x64xf32>
    %40 = vector.shape_cast %39 : vector<1x64xf32> to vector<1x1x64xf32>
    %41 = vector.broadcast %25 : vector<2x16x1xf32> to vector<2x16x64xf32>
    %42 = vector.broadcast %40 : vector<1x1x64xf32> to vector<2x16x64xf32>
    %43 = arith.mulf %41, %42 : vector<2x16x64xf32>
    %44 = arith.addf %37, %43 : vector<2x16x64xf32>
    %c2 = arith.constant 2 : index
    %c0_18 = arith.constant 0 : index
    %c0_19 = arith.constant 0 : index
    %45 = vector.load %arg3[%c2, %c0_18, %c0_19] : memref<3x1x64xf32, #tpu.memory_space<vmem>>, vector<1x1x64xf32>
    %46 = vector.shape_cast %45 : vector<1x1x64xf32> to vector<1x64xf32>
    %47 = vector.shape_cast %46 : vector<1x64xf32> to vector<1x1x64xf32>
    %48 = vector.broadcast %31 : vector<2x16x1xf32> to vector<2x16x64xf32>
    %49 = vector.broadcast %47 : vector<1x1x64xf32> to vector<2x16x64xf32>
    %50 = arith.mulf %48, %49 : vector<2x16x64xf32>
    %51 = arith.addf %44, %50 : vector<2x16x64xf32>
    %c0_20 = arith.constant 0 : index
    %c0_21 = arith.constant 0 : index
    %52 = vector.load %arg4[%c0_20, %c0_21] : memref<1x64xf32, #tpu.memory_space<vmem>>, vector<1x64xf32>
    %53 = vector.shape_cast %52 : vector<1x64xf32> to vector<1x1x64xf32>
    %54 = vector.broadcast %53 : vector<1x1x64xf32> to vector<2x16x64xf32>
    %55 = arith.addf %51, %54 : vector<2x16x64xf32>
    %cst_22 = arith.constant 0.000000e+00 : f32
    %56 = vector.broadcast %cst_22 : f32 to vector<2x16x64xf32>
    %57 = arith.maximumf %55, %56 : vector<2x16x64xf32>
    %58 = vector.shape_cast %57 : vector<2x16x64xf32> to vector<32x64xf32>
    %59 = vector.extract_strided_slice %57 {offsets = [0, 0, 0], sizes = [2, 1, 64], strides = [1, 1, 1]} : vector<2x16x64xf32> to vector<2x1x64xf32>
    %60 = vector.extract_strided_slice %57 {offsets = [0, 0, 0], sizes = [2, 15, 64], strides = [1, 1, 1]} : vector<2x16x64xf32> to vector<2x15x64xf32>
    %61 = tpu.concatenate %59, %60 in 1 : vector<2x1x64xf32>, vector<2x15x64xf32> -> vector<2x16x64xf32>
    %62 = vector.shape_cast %61 : vector<2x16x64xf32> to vector<32x64xf32>
    %63 = vector.extract_strided_slice %57 {offsets = [0, 1, 0], sizes = [2, 15, 64], strides = [1, 1, 1]} : vector<2x16x64xf32> to vector<2x15x64xf32>
    %64 = vector.extract_strided_slice %57 {offsets = [0, 15, 0], sizes = [2, 1, 64], strides = [1, 1, 1]} : vector<2x16x64xf32> to vector<2x1x64xf32>
    %65 = tpu.concatenate %63, %64 in 1 : vector<2x15x64xf32>, vector<2x1x64xf32> -> vector<2x16x64xf32>
    %66 = vector.shape_cast %65 : vector<2x16x64xf32> to vector<32x64xf32>
    %67 = arith.truncf %62 : vector<32x64xf32> to vector<32x64xbf16>
    %c0_23 = arith.constant 0 : index
    %c0_24 = arith.constant 0 : index
    %c0_25 = arith.constant 0 : index
    %68 = vector.load %arg5[%c0_23, %c0_24, %c0_25] : memref<3x64x64xbf16, #tpu.memory_space<vmem>>, vector<1x64x64xbf16>
    %69 = vector.shape_cast %68 : vector<1x64x64xbf16> to vector<64x64xbf16>
    %cst_26 = arith.constant dense<0.000000e+00> : vector<32x64xf32>
    %70 = tpu.matmul %67, %69, %cst_26 {dimension_numbers = #tpu.dot_dimension_numbers<[1], [0], [0], [1], [0, 0, 1, 1], [], []>} : vector<32x64xbf16>, vector<64x64xbf16>, vector<32x64xf32> -> vector<32x64xf32>
    %71 = arith.truncf %58 : vector<32x64xf32> to vector<32x64xbf16>
    %c1_27 = arith.constant 1 : index
    %c0_28 = arith.constant 0 : index
    %c0_29 = arith.constant 0 : index
    %72 = vector.load %arg5[%c1_27, %c0_28, %c0_29] : memref<3x64x64xbf16, #tpu.memory_space<vmem>>, vector<1x64x64xbf16>
    %73 = vector.shape_cast %72 : vector<1x64x64xbf16> to vector<64x64xbf16>
    %cst_30 = arith.constant dense<0.000000e+00> : vector<32x64xf32>
    %74 = tpu.matmul %71, %73, %cst_30 {dimension_numbers = #tpu.dot_dimension_numbers<[1], [0], [0], [1], [0, 0, 1, 1], [], []>} : vector<32x64xbf16>, vector<64x64xbf16>, vector<32x64xf32> -> vector<32x64xf32>
    %75 = arith.addf %70, %74 : vector<32x64xf32>
    %76 = arith.truncf %66 : vector<32x64xf32> to vector<32x64xbf16>
    %c2_31 = arith.constant 2 : index
    %c0_32 = arith.constant 0 : index
    %c0_33 = arith.constant 0 : index
    %77 = vector.load %arg5[%c2_31, %c0_32, %c0_33] : memref<3x64x64xbf16, #tpu.memory_space<vmem>>, vector<1x64x64xbf16>
    %78 = vector.shape_cast %77 : vector<1x64x64xbf16> to vector<64x64xbf16>
    %cst_34 = arith.constant dense<0.000000e+00> : vector<32x64xf32>
    %79 = tpu.matmul %76, %78, %cst_34 {dimension_numbers = #tpu.dot_dimension_numbers<[1], [0], [0], [1], [0, 0, 1, 1], [], []>} : vector<32x64xbf16>, vector<64x64xbf16>, vector<32x64xf32> -> vector<32x64xf32>
    %80 = arith.addf %75, %79 : vector<32x64xf32>
    %c0_35 = arith.constant 0 : index
    %c0_36 = arith.constant 0 : index
    %81 = vector.load %arg6[%c0_35, %c0_36] : memref<1x64xf32, #tpu.memory_space<vmem>>, vector<1x64xf32>
    %82 = vector.broadcast %81 : vector<1x64xf32> to vector<32x64xf32>
    %83 = arith.addf %80, %82 : vector<32x64xf32>
    %cst_37 = arith.constant 0.000000e+00 : f32
    %84 = vector.broadcast %cst_37 : f32 to vector<32x64xf32>
    %85 = arith.maximumf %83, %84 : vector<32x64xf32>
    %86 = vector.shape_cast %85 : vector<32x64xf32> to vector<2x16x64xf32>
    %87 = vector.broadcast %0 : vector<2x16x1xf32> to vector<2x16x64xf32>
    %88 = arith.addf %86, %87 : vector<2x16x64xf32>
    %89 = vector.shape_cast %88 : vector<2x16x64xf32> to vector<16x2x64xf32>
    %90 = vector.extract_strided_slice %89 {offsets = [0, 0, 0], sizes = [16, 1, 64], strides = [1, 1, 1]} : vector<16x2x64xf32> to vector<16x1x64xf32>
    %91 = vector.shape_cast %90 : vector<16x1x64xf32> to vector<16x64xf32>
    %92 = vector.extract_strided_slice %89 {offsets = [0, 1, 0], sizes = [16, 1, 64], strides = [1, 1, 1]} : vector<16x2x64xf32> to vector<16x1x64xf32>
    %93 = vector.shape_cast %92 : vector<16x1x64xf32> to vector<16x64xf32>
    %94 = arith.maximumf %91, %93 : vector<16x64xf32>
    %95 = vector.shape_cast %94 : vector<16x64xf32> to vector<2x8x64xf32>
    %96 = vector.shape_cast %93 : vector<16x64xf32> to vector<2x8x64xf32>
    %cst_38 = arith.constant 0xFF800000 : f32
    %97 = vector.broadcast %cst_38 : f32 to vector<2x1x64xf32>
    %98 = vector.extract_strided_slice %96 {offsets = [0, 0, 0], sizes = [2, 7, 64], strides = [1, 1, 1]} : vector<2x8x64xf32> to vector<2x7x64xf32>
    %99 = tpu.concatenate %97, %98 in 1 : vector<2x1x64xf32>, vector<2x7x64xf32> -> vector<2x8x64xf32>
    %100 = arith.maximumf %95, %99 : vector<2x8x64xf32>
    %101 = vector.shape_cast %0 : vector<2x16x1xf32> to vector<16x2x1xf32>
    %102 = vector.extract_strided_slice %101 {offsets = [0, 0, 0], sizes = [16, 1, 1], strides = [1, 1, 1]} : vector<16x2x1xf32> to vector<16x1x1xf32>
    %103 = vector.shape_cast %102 : vector<16x1x1xf32> to vector<16x1xf32>
    %104 = vector.extract_strided_slice %101 {offsets = [0, 1, 0], sizes = [16, 1, 1], strides = [1, 1, 1]} : vector<16x2x1xf32> to vector<16x1x1xf32>
    %105 = vector.shape_cast %104 : vector<16x1x1xf32> to vector<16x1xf32>
    %106 = arith.maximumf %103, %105 : vector<16x1xf32>
    %107 = vector.shape_cast %106 : vector<16x1xf32> to vector<2x8x1xf32>
    %108 = vector.shape_cast %105 : vector<16x1xf32> to vector<2x8x1xf32>
    %cst_39 = arith.constant 0xFF800000 : f32
    %109 = vector.broadcast %cst_39 : f32 to vector<2x1x1xf32>
    %110 = vector.extract_strided_slice %108 {offsets = [0, 0, 0], sizes = [2, 7, 1], strides = [1, 1, 1]} : vector<2x8x1xf32> to vector<2x7x1xf32>
    %111 = tpu.concatenate %109, %110 in 1 : vector<2x1x1xf32>, vector<2x7x1xf32> -> vector<2x8x1xf32>
    %112 = arith.maximumf %107, %111 : vector<2x8x1xf32>
    %cst_40 = arith.constant dense<0.000000e+00> : vector<64xf32>
    %113 = vector.multi_reduction <add>, %100, %cst_40 [0, 1] : vector<2x8x64xf32> to vector<64xf32>
    %114 = vector.shape_cast %113 : vector<64xf32> to vector<1x1x64xf32>
    %cst_41 = arith.constant 1.600000e+01 : f32
    %115 = vector.broadcast %cst_41 : f32 to vector<1x1x64xf32>
    %116 = arith.divf %114, %115 : vector<1x1x64xf32>
    %117 = arith.mulf %100, %100 : vector<2x8x64xf32>
    %cst_42 = arith.constant dense<0.000000e+00> : vector<64xf32>
    %118 = vector.multi_reduction <add>, %117, %cst_42 [0, 1] : vector<2x8x64xf32> to vector<64xf32>
    %119 = vector.shape_cast %118 : vector<64xf32> to vector<1x1x64xf32>
    %cst_43 = arith.constant 1.600000e+01 : f32
    %120 = vector.broadcast %cst_43 : f32 to vector<1x1x64xf32>
    %121 = arith.divf %119, %120 : vector<1x1x64xf32>
    %122 = arith.mulf %116, %116 : vector<1x1x64xf32>
    %123 = arith.subf %121, %122 : vector<1x1x64xf32>
    %cst_44 = arith.constant 0.000000e+00 : f32
    %124 = vector.broadcast %cst_44 : f32 to vector<1x1x64xf32>
    %125 = arith.maximumf %123, %124 : vector<1x1x64xf32>
    %c0_45 = arith.constant 0 : index
    %c0_46 = arith.constant 0 : index
    %c0_47 = arith.constant 0 : index
    %126 = vector.load %arg7[%c0_45, %c0_46, %c0_47] : memref<1x1x64xf32, #tpu.memory_space<vmem>>, vector<1x1x64xf32>
    %cst_48 = arith.constant 9.99999974E-6 : f32
    %127 = vector.broadcast %cst_48 : f32 to vector<1x1x64xf32>
    %128 = arith.addf %125, %127 : vector<1x1x64xf32>
    %129 = math.rsqrt %128 : vector<1x1x64xf32>
    %130 = arith.mulf %126, %129 : vector<1x1x64xf32>
    %c0_49 = arith.constant 0 : index
    %c0_50 = arith.constant 0 : index
    %c0_51 = arith.constant 0 : index
    %131 = vector.load %arg8[%c0_49, %c0_50, %c0_51] : memref<1x1x64xf32, #tpu.memory_space<vmem>>, vector<1x1x64xf32>
    %132 = arith.mulf %116, %130 : vector<1x1x64xf32>
    %133 = arith.subf %131, %132 : vector<1x1x64xf32>
    %134 = vector.broadcast %130 : vector<1x1x64xf32> to vector<2x8x64xf32>
    %135 = arith.mulf %100, %134 : vector<2x8x64xf32>
    %136 = vector.broadcast %133 : vector<1x1x64xf32> to vector<2x8x64xf32>
    %137 = arith.addf %135, %136 : vector<2x8x64xf32>
    %138 = vector.shape_cast %137 : vector<2x8x64xf32> to vector<16x64xf32>
    %139 = vector.extract_strided_slice %137 {offsets = [0, 0, 0], sizes = [2, 1, 64], strides = [1, 1, 1]} : vector<2x8x64xf32> to vector<2x1x64xf32>
    %140 = vector.extract_strided_slice %137 {offsets = [0, 0, 0], sizes = [2, 7, 64], strides = [1, 1, 1]} : vector<2x8x64xf32> to vector<2x7x64xf32>
    %141 = tpu.concatenate %139, %140 in 1 : vector<2x1x64xf32>, vector<2x7x64xf32> -> vector<2x8x64xf32>
    %142 = vector.shape_cast %141 : vector<2x8x64xf32> to vector<16x64xf32>
    %143 = vector.extract_strided_slice %137 {offsets = [0, 1, 0], sizes = [2, 7, 64], strides = [1, 1, 1]} : vector<2x8x64xf32> to vector<2x7x64xf32>
    %144 = vector.extract_strided_slice %137 {offsets = [0, 7, 0], sizes = [2, 1, 64], strides = [1, 1, 1]} : vector<2x8x64xf32> to vector<2x1x64xf32>
    %145 = tpu.concatenate %143, %144 in 1 : vector<2x7x64xf32>, vector<2x1x64xf32> -> vector<2x8x64xf32>
    %146 = vector.shape_cast %145 : vector<2x8x64xf32> to vector<16x64xf32>
    %147 = arith.truncf %142 : vector<16x64xf32> to vector<16x64xbf16>
    %c0_52 = arith.constant 0 : index
    %c0_53 = arith.constant 0 : index
    %c0_54 = arith.constant 0 : index
    %148 = vector.load %arg9[%c0_52, %c0_53, %c0_54] : memref<3x64x128xbf16, #tpu.memory_space<vmem>>, vector<1x64x128xbf16>
    %149 = vector.shape_cast %148 : vector<1x64x128xbf16> to vector<64x128xbf16>
    %cst_55 = arith.constant dense<0.000000e+00> : vector<16x128xf32>
    %150 = tpu.matmul %147, %149, %cst_55 {dimension_numbers = #tpu.dot_dimension_numbers<[1], [0], [0], [1], [0, 0, 1, 1], [], []>} : vector<16x64xbf16>, vector<64x128xbf16>, vector<16x128xf32> -> vector<16x128xf32>
    %151 = arith.truncf %138 : vector<16x64xf32> to vector<16x64xbf16>
    %c1_56 = arith.constant 1 : index
    %c0_57 = arith.constant 0 : index
    %c0_58 = arith.constant 0 : index
    %152 = vector.load %arg9[%c1_56, %c0_57, %c0_58] : memref<3x64x128xbf16, #tpu.memory_space<vmem>>, vector<1x64x128xbf16>
    %153 = vector.shape_cast %152 : vector<1x64x128xbf16> to vector<64x128xbf16>
    %cst_59 = arith.constant dense<0.000000e+00> : vector<16x128xf32>
    %154 = tpu.matmul %151, %153, %cst_59 {dimension_numbers = #tpu.dot_dimension_numbers<[1], [0], [0], [1], [0, 0, 1, 1], [], []>} : vector<16x64xbf16>, vector<64x128xbf16>, vector<16x128xf32> -> vector<16x128xf32>
    %155 = arith.addf %150, %154 : vector<16x128xf32>
    %156 = arith.truncf %146 : vector<16x64xf32> to vector<16x64xbf16>
    %c2_60 = arith.constant 2 : index
    %c0_61 = arith.constant 0 : index
    %c0_62 = arith.constant 0 : index
    %157 = vector.load %arg9[%c2_60, %c0_61, %c0_62] : memref<3x64x128xbf16, #tpu.memory_space<vmem>>, vector<1x64x128xbf16>
    %158 = vector.shape_cast %157 : vector<1x64x128xbf16> to vector<64x128xbf16>
    %cst_63 = arith.constant dense<0.000000e+00> : vector<16x128xf32>
    %159 = tpu.matmul %156, %158, %cst_63 {dimension_numbers = #tpu.dot_dimension_numbers<[1], [0], [0], [1], [0, 0, 1, 1], [], []>} : vector<16x64xbf16>, vector<64x128xbf16>, vector<16x128xf32> -> vector<16x128xf32>
    %160 = arith.addf %155, %159 : vector<16x128xf32>
    %c0_64 = arith.constant 0 : index
    %c0_65 = arith.constant 0 : index
    %161 = vector.load %arg10[%c0_64, %c0_65] : memref<1x128xf32, #tpu.memory_space<vmem>>, vector<1x128xf32>
    %162 = vector.broadcast %161 : vector<1x128xf32> to vector<16x128xf32>
    %163 = arith.addf %160, %162 : vector<16x128xf32>
    %cst_66 = arith.constant 0.000000e+00 : f32
    %164 = vector.broadcast %cst_66 : f32 to vector<16x128xf32>
    %165 = arith.maximumf %163, %164 : vector<16x128xf32>
    %166 = vector.shape_cast %165 : vector<16x128xf32> to vector<2x8x128xf32>
    %167 = vector.shape_cast %166 : vector<2x8x128xf32> to vector<16x128xf32>
    %168 = vector.extract_strided_slice %166 {offsets = [0, 0, 0], sizes = [2, 1, 128], strides = [1, 1, 1]} : vector<2x8x128xf32> to vector<2x1x128xf32>
    %169 = vector.extract_strided_slice %166 {offsets = [0, 0, 0], sizes = [2, 7, 128], strides = [1, 1, 1]} : vector<2x8x128xf32> to vector<2x7x128xf32>
    %170 = tpu.concatenate %168, %169 in 1 : vector<2x1x128xf32>, vector<2x7x128xf32> -> vector<2x8x128xf32>
    %171 = vector.shape_cast %170 : vector<2x8x128xf32> to vector<16x128xf32>
    %172 = vector.extract_strided_slice %166 {offsets = [0, 1, 0], sizes = [2, 7, 128], strides = [1, 1, 1]} : vector<2x8x128xf32> to vector<2x7x128xf32>
    %173 = vector.extract_strided_slice %166 {offsets = [0, 7, 0], sizes = [2, 1, 128], strides = [1, 1, 1]} : vector<2x8x128xf32> to vector<2x1x128xf32>
    %174 = tpu.concatenate %172, %173 in 1 : vector<2x7x128xf32>, vector<2x1x128xf32> -> vector<2x8x128xf32>
    %175 = vector.shape_cast %174 : vector<2x8x128xf32> to vector<16x128xf32>
    %176 = arith.truncf %171 : vector<16x128xf32> to vector<16x128xbf16>
    %c0_67 = arith.constant 0 : index
    %c0_68 = arith.constant 0 : index
    %c0_69 = arith.constant 0 : index
    %177 = vector.load %arg11[%c0_67, %c0_68, %c0_69] : memref<3x128x128xbf16, #tpu.memory_space<vmem>>, vector<1x128x128xbf16>
    %178 = vector.shape_cast %177 : vector<1x128x128xbf16> to vector<128x128xbf16>
    %cst_70 = arith.constant dense<0.000000e+00> : vector<16x128xf32>
    %179 = tpu.matmul %176, %178, %cst_70 {dimension_numbers = #tpu.dot_dimension_numbers<[1], [0], [0], [1], [0, 0, 1, 1], [], []>} : vector<16x128xbf16>, vector<128x128xbf16>, vector<16x128xf32> -> vector<16x128xf32>
    %180 = arith.truncf %167 : vector<16x128xf32> to vector<16x128xbf16>
    %c1_71 = arith.constant 1 : index
    %c0_72 = arith.constant 0 : index
    %c0_73 = arith.constant 0 : index
    %181 = vector.load %arg11[%c1_71, %c0_72, %c0_73] : memref<3x128x128xbf16, #tpu.memory_space<vmem>>, vector<1x128x128xbf16>
    %182 = vector.shape_cast %181 : vector<1x128x128xbf16> to vector<128x128xbf16>
    %cst_74 = arith.constant dense<0.000000e+00> : vector<16x128xf32>
    %183 = tpu.matmul %180, %182, %cst_74 {dimension_numbers = #tpu.dot_dimension_numbers<[1], [0], [0], [1], [0, 0, 1, 1], [], []>} : vector<16x128xbf16>, vector<128x128xbf16>, vector<16x128xf32> -> vector<16x128xf32>
    %184 = arith.addf %179, %183 : vector<16x128xf32>
    %185 = arith.truncf %175 : vector<16x128xf32> to vector<16x128xbf16>
    %c2_75 = arith.constant 2 : index
    %c0_76 = arith.constant 0 : index
    %c0_77 = arith.constant 0 : index
    %186 = vector.load %arg11[%c2_75, %c0_76, %c0_77] : memref<3x128x128xbf16, #tpu.memory_space<vmem>>, vector<1x128x128xbf16>
    %187 = vector.shape_cast %186 : vector<1x128x128xbf16> to vector<128x128xbf16>
    %cst_78 = arith.constant dense<0.000000e+00> : vector<16x128xf32>
    %188 = tpu.matmul %185, %187, %cst_78 {dimension_numbers = #tpu.dot_dimension_numbers<[1], [0], [0], [1], [0, 0, 1, 1], [], []>} : vector<16x128xbf16>, vector<128x128xbf16>, vector<16x128xf32> -> vector<16x128xf32>
    %189 = arith.addf %184, %188 : vector<16x128xf32>
    %c0_79 = arith.constant 0 : index
    %c0_80 = arith.constant 0 : index
    %190 = vector.load %arg12[%c0_79, %c0_80] : memref<1x128xf32, #tpu.memory_space<vmem>>, vector<1x128xf32>
    %191 = vector.broadcast %190 : vector<1x128xf32> to vector<16x128xf32>
    %192 = arith.addf %189, %191 : vector<16x128xf32>
    %cst_81 = arith.constant 0.000000e+00 : f32
    %193 = vector.broadcast %cst_81 : f32 to vector<16x128xf32>
    %194 = arith.maximumf %192, %193 : vector<16x128xf32>
    %195 = vector.shape_cast %194 : vector<16x128xf32> to vector<2x8x128xf32>
    %196 = vector.broadcast %112 : vector<2x8x1xf32> to vector<2x8x128xf32>
    %197 = arith.addf %195, %196 : vector<2x8x128xf32>
    %198 = vector.shape_cast %197 : vector<2x8x128xf32> to vector<8x2x128xf32>
    %199 = vector.extract_strided_slice %198 {offsets = [0, 0, 0], sizes = [8, 1, 128], strides = [1, 1, 1]} : vector<8x2x128xf32> to vector<8x1x128xf32>
    %200 = vector.shape_cast %199 : vector<8x1x128xf32> to vector<8x128xf32>
    %201 = vector.extract_strided_slice %198 {offsets = [0, 1, 0], sizes = [8, 1, 128], strides = [1, 1, 1]} : vector<8x2x128xf32> to vector<8x1x128xf32>
    %202 = vector.shape_cast %201 : vector<8x1x128xf32> to vector<8x128xf32>
    %203 = arith.maximumf %200, %202 : vector<8x128xf32>
    %204 = vector.shape_cast %203 : vector<8x128xf32> to vector<2x4x128xf32>
    %205 = vector.shape_cast %202 : vector<8x128xf32> to vector<2x4x128xf32>
    %cst_82 = arith.constant 0xFF800000 : f32
    %206 = vector.broadcast %cst_82 : f32 to vector<2x1x128xf32>
    %207 = vector.extract_strided_slice %205 {offsets = [0, 0, 0], sizes = [2, 3, 128], strides = [1, 1, 1]} : vector<2x4x128xf32> to vector<2x3x128xf32>
    %208 = tpu.concatenate %206, %207 in 1 : vector<2x1x128xf32>, vector<2x3x128xf32> -> vector<2x4x128xf32>
    %209 = arith.maximumf %204, %208 : vector<2x4x128xf32>
    %210 = vector.shape_cast %112 : vector<2x8x1xf32> to vector<8x2x1xf32>
    %211 = vector.extract_strided_slice %210 {offsets = [0, 0, 0], sizes = [8, 1, 1], strides = [1, 1, 1]} : vector<8x2x1xf32> to vector<8x1x1xf32>
    %212 = vector.shape_cast %211 : vector<8x1x1xf32> to vector<8x1xf32>
    %213 = vector.extract_strided_slice %210 {offsets = [0, 1, 0], sizes = [8, 1, 1], strides = [1, 1, 1]} : vector<8x2x1xf32> to vector<8x1x1xf32>
    %214 = vector.shape_cast %213 : vector<8x1x1xf32> to vector<8x1xf32>
    %215 = arith.maximumf %212, %214 : vector<8x1xf32>
    %216 = vector.shape_cast %215 : vector<8x1xf32> to vector<2x4x1xf32>
    %217 = vector.shape_cast %214 : vector<8x1xf32> to vector<2x4x1xf32>
    %cst_83 = arith.constant 0xFF800000 : f32
    %218 = vector.broadcast %cst_83 : f32 to vector<2x1x1xf32>
    %219 = vector.extract_strided_slice %217 {offsets = [0, 0, 0], sizes = [2, 3, 1], strides = [1, 1, 1]} : vector<2x4x1xf32> to vector<2x3x1xf32>
    %220 = tpu.concatenate %218, %219 in 1 : vector<2x1x1xf32>, vector<2x3x1xf32> -> vector<2x4x1xf32>
    %221 = arith.maximumf %216, %220 : vector<2x4x1xf32>
    %cst_84 = arith.constant dense<0.000000e+00> : vector<128xf32>
    %222 = vector.multi_reduction <add>, %209, %cst_84 [0, 1] : vector<2x4x128xf32> to vector<128xf32>
    %223 = vector.shape_cast %222 : vector<128xf32> to vector<1x1x128xf32>
    %cst_85 = arith.constant 8.000000e+00 : f32
    %224 = vector.broadcast %cst_85 : f32 to vector<1x1x128xf32>
    %225 = arith.divf %223, %224 : vector<1x1x128xf32>
    %226 = arith.mulf %209, %209 : vector<2x4x128xf32>
    %cst_86 = arith.constant dense<0.000000e+00> : vector<128xf32>
    %227 = vector.multi_reduction <add>, %226, %cst_86 [0, 1] : vector<2x4x128xf32> to vector<128xf32>
    %228 = vector.shape_cast %227 : vector<128xf32> to vector<1x1x128xf32>
    %cst_87 = arith.constant 8.000000e+00 : f32
    %229 = vector.broadcast %cst_87 : f32 to vector<1x1x128xf32>
    %230 = arith.divf %228, %229 : vector<1x1x128xf32>
    %231 = arith.mulf %225, %225 : vector<1x1x128xf32>
    %232 = arith.subf %230, %231 : vector<1x1x128xf32>
    %cst_88 = arith.constant 0.000000e+00 : f32
    %233 = vector.broadcast %cst_88 : f32 to vector<1x1x128xf32>
    %234 = arith.maximumf %232, %233 : vector<1x1x128xf32>
    %c0_89 = arith.constant 0 : index
    %c0_90 = arith.constant 0 : index
    %c0_91 = arith.constant 0 : index
    %235 = vector.load %arg13[%c0_89, %c0_90, %c0_91] : memref<1x1x128xf32, #tpu.memory_space<vmem>>, vector<1x1x128xf32>
    %cst_92 = arith.constant 9.99999974E-6 : f32
    %236 = vector.broadcast %cst_92 : f32 to vector<1x1x128xf32>
    %237 = arith.addf %234, %236 : vector<1x1x128xf32>
    %238 = math.rsqrt %237 : vector<1x1x128xf32>
    %239 = arith.mulf %235, %238 : vector<1x1x128xf32>
    %c0_93 = arith.constant 0 : index
    %c0_94 = arith.constant 0 : index
    %c0_95 = arith.constant 0 : index
    %240 = vector.load %arg14[%c0_93, %c0_94, %c0_95] : memref<1x1x128xf32, #tpu.memory_space<vmem>>, vector<1x1x128xf32>
    %241 = arith.mulf %225, %239 : vector<1x1x128xf32>
    %242 = arith.subf %240, %241 : vector<1x1x128xf32>
    %243 = vector.broadcast %239 : vector<1x1x128xf32> to vector<2x4x128xf32>
    %244 = arith.mulf %209, %243 : vector<2x4x128xf32>
    %245 = vector.broadcast %242 : vector<1x1x128xf32> to vector<2x4x128xf32>
    %246 = arith.addf %244, %245 : vector<2x4x128xf32>
    %247 = vector.shape_cast %246 : vector<2x4x128xf32> to vector<8x128xf32>
    %248 = vector.extract_strided_slice %246 {offsets = [0, 0, 0], sizes = [2, 1, 128], strides = [1, 1, 1]} : vector<2x4x128xf32> to vector<2x1x128xf32>
    %249 = vector.extract_strided_slice %246 {offsets = [0, 0, 0], sizes = [2, 3, 128], strides = [1, 1, 1]} : vector<2x4x128xf32> to vector<2x3x128xf32>
    %250 = tpu.concatenate %248, %249 in 1 : vector<2x1x128xf32>, vector<2x3x128xf32> -> vector<2x4x128xf32>
    %251 = vector.shape_cast %250 : vector<2x4x128xf32> to vector<8x128xf32>
    %252 = vector.extract_strided_slice %246 {offsets = [0, 1, 0], sizes = [2, 3, 128], strides = [1, 1, 1]} : vector<2x4x128xf32> to vector<2x3x128xf32>
    %253 = vector.extract_strided_slice %246 {offsets = [0, 3, 0], sizes = [2, 1, 128], strides = [1, 1, 1]} : vector<2x4x128xf32> to vector<2x1x128xf32>
    %254 = tpu.concatenate %252, %253 in 1 : vector<2x3x128xf32>, vector<2x1x128xf32> -> vector<2x4x128xf32>
    %255 = vector.shape_cast %254 : vector<2x4x128xf32> to vector<8x128xf32>
    %256 = arith.truncf %251 : vector<8x128xf32> to vector<8x128xbf16>
    %c0_96 = arith.constant 0 : index
    %c0_97 = arith.constant 0 : index
    %c0_98 = arith.constant 0 : index
    %257 = vector.load %arg15[%c0_96, %c0_97, %c0_98] : memref<3x128x256xbf16, #tpu.memory_space<vmem>>, vector<1x128x256xbf16>
    %258 = vector.shape_cast %257 : vector<1x128x256xbf16> to vector<128x256xbf16>
    %cst_99 = arith.constant dense<0.000000e+00> : vector<8x256xf32>
    %259 = tpu.matmul %256, %258, %cst_99 {dimension_numbers = #tpu.dot_dimension_numbers<[1], [0], [0], [1], [0, 0, 1, 1], [], []>} : vector<8x128xbf16>, vector<128x256xbf16>, vector<8x256xf32> -> vector<8x256xf32>
    %260 = arith.truncf %247 : vector<8x128xf32> to vector<8x128xbf16>
    %c1_100 = arith.constant 1 : index
    %c0_101 = arith.constant 0 : index
    %c0_102 = arith.constant 0 : index
    %261 = vector.load %arg15[%c1_100, %c0_101, %c0_102] : memref<3x128x256xbf16, #tpu.memory_space<vmem>>, vector<1x128x256xbf16>
    %262 = vector.shape_cast %261 : vector<1x128x256xbf16> to vector<128x256xbf16>
    %cst_103 = arith.constant dense<0.000000e+00> : vector<8x256xf32>
    %263 = tpu.matmul %260, %262, %cst_103 {dimension_numbers = #tpu.dot_dimension_numbers<[1], [0], [0], [1], [0, 0, 1, 1], [], []>} : vector<8x128xbf16>, vector<128x256xbf16>, vector<8x256xf32> -> vector<8x256xf32>
    %264 = arith.addf %259, %263 : vector<8x256xf32>
    %265 = arith.truncf %255 : vector<8x128xf32> to vector<8x128xbf16>
    %c2_104 = arith.constant 2 : index
    %c0_105 = arith.constant 0 : index
    %c0_106 = arith.constant 0 : index
    %266 = vector.load %arg15[%c2_104, %c0_105, %c0_106] : memref<3x128x256xbf16, #tpu.memory_space<vmem>>, vector<1x128x256xbf16>
    %267 = vector.shape_cast %266 : vector<1x128x256xbf16> to vector<128x256xbf16>
    %cst_107 = arith.constant dense<0.000000e+00> : vector<8x256xf32>
    %268 = tpu.matmul %265, %267, %cst_107 {dimension_numbers = #tpu.dot_dimension_numbers<[1], [0], [0], [1], [0, 0, 1, 1], [], []>} : vector<8x128xbf16>, vector<128x256xbf16>, vector<8x256xf32> -> vector<8x256xf32>
    %269 = arith.addf %264, %268 : vector<8x256xf32>
    %c0_108 = arith.constant 0 : index
    %c0_109 = arith.constant 0 : index
    %270 = vector.load %arg16[%c0_108, %c0_109] : memref<1x256xf32, #tpu.memory_space<vmem>>, vector<1x256xf32>
    %271 = vector.broadcast %270 : vector<1x256xf32> to vector<8x256xf32>
    %272 = arith.addf %269, %271 : vector<8x256xf32>
    %cst_110 = arith.constant 0.000000e+00 : f32
    %273 = vector.broadcast %cst_110 : f32 to vector<8x256xf32>
    %274 = arith.maximumf %272, %273 : vector<8x256xf32>
    %275 = vector.shape_cast %274 : vector<8x256xf32> to vector<2x4x256xf32>
    %276 = vector.shape_cast %275 : vector<2x4x256xf32> to vector<8x256xf32>
    %277 = vector.extract_strided_slice %275 {offsets = [0, 0, 0], sizes = [2, 1, 256], strides = [1, 1, 1]} : vector<2x4x256xf32> to vector<2x1x256xf32>
    %278 = vector.extract_strided_slice %275 {offsets = [0, 0, 0], sizes = [2, 3, 256], strides = [1, 1, 1]} : vector<2x4x256xf32> to vector<2x3x256xf32>
    %279 = tpu.concatenate %277, %278 in 1 : vector<2x1x256xf32>, vector<2x3x256xf32> -> vector<2x4x256xf32>
    %280 = vector.shape_cast %279 : vector<2x4x256xf32> to vector<8x256xf32>
    %281 = vector.extract_strided_slice %275 {offsets = [0, 1, 0], sizes = [2, 3, 256], strides = [1, 1, 1]} : vector<2x4x256xf32> to vector<2x3x256xf32>
    %282 = vector.extract_strided_slice %275 {offsets = [0, 3, 0], sizes = [2, 1, 256], strides = [1, 1, 1]} : vector<2x4x256xf32> to vector<2x1x256xf32>
    %283 = tpu.concatenate %281, %282 in 1 : vector<2x3x256xf32>, vector<2x1x256xf32> -> vector<2x4x256xf32>
    %284 = vector.shape_cast %283 : vector<2x4x256xf32> to vector<8x256xf32>
    %285 = arith.truncf %280 : vector<8x256xf32> to vector<8x256xbf16>
    %c0_111 = arith.constant 0 : index
    %c0_112 = arith.constant 0 : index
    %c0_113 = arith.constant 0 : index
    %286 = vector.load %arg17[%c0_111, %c0_112, %c0_113] : memref<3x256x256xbf16, #tpu.memory_space<vmem>>, vector<1x256x256xbf16>
    %287 = vector.shape_cast %286 : vector<1x256x256xbf16> to vector<256x256xbf16>
    %cst_114 = arith.constant dense<0.000000e+00> : vector<8x256xf32>
    %288 = tpu.matmul %285, %287, %cst_114 {dimension_numbers = #tpu.dot_dimension_numbers<[1], [0], [0], [1], [0, 0, 1, 1], [], []>} : vector<8x256xbf16>, vector<256x256xbf16>, vector<8x256xf32> -> vector<8x256xf32>
    %289 = arith.truncf %276 : vector<8x256xf32> to vector<8x256xbf16>
    %c1_115 = arith.constant 1 : index
    %c0_116 = arith.constant 0 : index
    %c0_117 = arith.constant 0 : index
    %290 = vector.load %arg17[%c1_115, %c0_116, %c0_117] : memref<3x256x256xbf16, #tpu.memory_space<vmem>>, vector<1x256x256xbf16>
    %291 = vector.shape_cast %290 : vector<1x256x256xbf16> to vector<256x256xbf16>
    %cst_118 = arith.constant dense<0.000000e+00> : vector<8x256xf32>
    %292 = tpu.matmul %289, %291, %cst_118 {dimension_numbers = #tpu.dot_dimension_numbers<[1], [0], [0], [1], [0, 0, 1, 1], [], []>} : vector<8x256xbf16>, vector<256x256xbf16>, vector<8x256xf32> -> vector<8x256xf32>
    %293 = arith.addf %288, %292 : vector<8x256xf32>
    %294 = arith.truncf %284 : vector<8x256xf32> to vector<8x256xbf16>
    %c2_119 = arith.constant 2 : index
    %c0_120 = arith.constant 0 : index
    %c0_121 = arith.constant 0 : index
    %295 = vector.load %arg17[%c2_119, %c0_120, %c0_121] : memref<3x256x256xbf16, #tpu.memory_space<vmem>>, vector<1x256x256xbf16>
    %296 = vector.shape_cast %295 : vector<1x256x256xbf16> to vector<256x256xbf16>
    %cst_122 = arith.constant dense<0.000000e+00> : vector<8x256xf32>
    %297 = tpu.matmul %294, %296, %cst_122 {dimension_numbers = #tpu.dot_dimension_numbers<[1], [0], [0], [1], [0, 0, 1, 1], [], []>} : vector<8x256xbf16>, vector<256x256xbf16>, vector<8x256xf32> -> vector<8x256xf32>
    %298 = arith.addf %293, %297 : vector<8x256xf32>
    %c0_123 = arith.constant 0 : index
    %c0_124 = arith.constant 0 : index
    %299 = vector.load %arg18[%c0_123, %c0_124] : memref<1x256xf32, #tpu.memory_space<vmem>>, vector<1x256xf32>
    %300 = vector.broadcast %299 : vector<1x256xf32> to vector<8x256xf32>
    %301 = arith.addf %298, %300 : vector<8x256xf32>
    %cst_125 = arith.constant 0.000000e+00 : f32
    %302 = vector.broadcast %cst_125 : f32 to vector<8x256xf32>
    %303 = arith.maximumf %301, %302 : vector<8x256xf32>
    %304 = vector.shape_cast %303 : vector<8x256xf32> to vector<2x4x256xf32>
    %305 = vector.broadcast %221 : vector<2x4x1xf32> to vector<2x4x256xf32>
    %306 = arith.addf %304, %305 : vector<2x4x256xf32>
    %307 = vector.shape_cast %306 : vector<2x4x256xf32> to vector<4x2x256xf32>
    %308 = vector.extract_strided_slice %307 {offsets = [0, 0, 0], sizes = [4, 1, 256], strides = [1, 1, 1]} : vector<4x2x256xf32> to vector<4x1x256xf32>
    %309 = vector.shape_cast %308 : vector<4x1x256xf32> to vector<4x256xf32>
    %310 = vector.extract_strided_slice %307 {offsets = [0, 1, 0], sizes = [4, 1, 256], strides = [1, 1, 1]} : vector<4x2x256xf32> to vector<4x1x256xf32>
    %311 = vector.shape_cast %310 : vector<4x1x256xf32> to vector<4x256xf32>
    %312 = arith.maximumf %309, %311 : vector<4x256xf32>
    %313 = vector.shape_cast %312 : vector<4x256xf32> to vector<2x2x256xf32>
    %314 = vector.shape_cast %311 : vector<4x256xf32> to vector<2x2x256xf32>
    %cst_126 = arith.constant 0xFF800000 : f32
    %315 = vector.broadcast %cst_126 : f32 to vector<2x1x256xf32>
    %316 = vector.extract_strided_slice %314 {offsets = [0, 0, 0], sizes = [2, 1, 256], strides = [1, 1, 1]} : vector<2x2x256xf32> to vector<2x1x256xf32>
    %317 = tpu.concatenate %315, %316 in 1 : vector<2x1x256xf32>, vector<2x1x256xf32> -> vector<2x2x256xf32>
    %318 = arith.maximumf %313, %317 : vector<2x2x256xf32>
    %c0_127 = arith.constant 0 : index
    %c0_128 = arith.constant 0 : index
    %c0_129 = arith.constant 0 : index
    %319 = vector.load %arg19[%c0_127, %c0_128, %c0_129] : memref<2x2x256xf32, #tpu.memory_space<vmem>>, vector<2x2x256xf32>
    tpu.vector_store %arg19[%c0_127, %c0_128, %c0_129], %318 {strides = array<i32>} : memref<2x2x256xf32, #tpu.memory_space<vmem>>, vector<2x2x256xf32>,
    return
  }
}

</mosaic_0001>

<bundles_post_ra>
// kernel: encoder_forward.1
= control target key start
LH: loop header
LB: loop body
LE: loop exit
PB: predicated region body
PF: predicated region fallthrough
CT: control target
= control target key end

     0   :  { %s7357_s0 = inlined_call_operand.vmem [shape: f32[2,16,1], index: 0, kind: input, shape index: {}]   ;;  %s7358_s1 = inlined_call_operand.<no memory space> [shape: f32[1,1,1], index: 1, kind: input, shape index: {}]   ;;  %s7359_s3 = inlined_call_operand.vmem [shape: f32[3,1,64], index: 3, kind: input, shape index: {}]   ;;  %s7360_s4 = inlined_call_operand.vmem [shape: f32[1,64], index: 4, kind: input, shape index: {}]   ;;  %s7361_s5 = inlined_call_operand.vmem [shape: bf16[3,64,64], index: 5, kind: input, shape index: {}]   ;;  %s7362_s6 = inlined_call_operand.vmem [shape: f32[1,64], index: 6, kind: input, shape index: {}]   ;;  %s7363_s7 = inlined_call_operand.vmem [shape: f32[1,1,64], index: 7, kind: input, shape index: {}]   ;;  %s7364_s8 = inlined_call_operand.vmem [shape: f32[1,1,64], index: 8, kind: input, shape index: {}]   ;;  %s7365_s9 = inlined_call_operand.vmem [shape: bf16[3,64,128], index: 9, kind: input, shape index: {}]   ;;  %s7366_s10 = inlined_call_operand.vmem [shape: f32[1,128], index: 10, kind: input, shape index: {}]   ;;  %s7367_s11 = inlined_call_operand.vmem [shape: bf16[3,128,128], index: 11, kind: input, shape index: {}]   ;;  %s7368_s12 = inlined_call_operand.vmem [shape: f32[1,128], index: 12, kind: input, shape index: {}]   ;;  %s7369_s13 = inlined_call_operand.vmem [shape: f32[1,1,128], index: 13, kind: input, shape index: {}]   ;;  %s7370_s14 = inlined_call_operand.vmem [shape: f32[1,1,128], index: 14, kind: input, shape index: {}]   ;;  %s7371_s15 = inlined_call_operand.vmem [shape: bf16[3,128,256], index: 15, kind: input, shape index: {}]   ;;  %s7372_s16 = inlined_call_operand.vmem [shape: f32[1,256], index: 16, kind: input, shape index: {}]   ;;  %s7373_s17 = inlined_call_operand.vmem [shape: bf16[3,256,256], index: 17, kind: input, shape index: {}]   ;;  %s7374_s18 = inlined_call_operand.vmem [shape: f32[1,256], index: 18, kind: input, shape index: {}]   ;;  %s7375_s19 = inlined_call_operand.hbm [shape: f32[2,2,256], index: 19, kind: output, shape index: {}]   ;;  %s7376_s2 = inlined_call_operand.<no memory space> [shape: f32[1,1,1], index: 2, kind: input, shape index: {}]  }
   0x1   :  { %7379 = sst [smem:[#allocation7_spill]] %s7357_s0  ;;  %v26_v1 = vstv %s7376_s2 }
   0x2   :  { %7380 = sst [smem:[#allocation8_spill]] %s7358_s1  ;;  %27 = vst [vmem:[#allocation3] sm:$0x1] %v26_v1 }
   0x3   :  { %7381 = sst [smem:[#allocation9_spill]] %s7359_s3  ;;  %s7383_s20 = sld [smem:[#allocation8_spill]] }
   0x4   :  { %7382 = sst [smem:[#allocation10_spill]] %s7360_s4 }
   0x9   :  { %v24_v0 = vstv %s7383_s20 }
   0xa   :  { %25 = vst [vmem:[#allocation2] sm:$0x1] %v24_v0 }
   0xb   :  { %s7384_s23 = sld [smem:[#allocation7_spill]]  ;;  %vm72_vm0 = vcmask 7168   ;;  %v5638_v5 = vmov 0   ;;  %v5639_v41 = vmov 1983009808   ;;  %v117_v44 = vlaneseq }
   0xc   :  { %5339 = vset.pattern.permute.xlu0 %v5638_v5  ;;  %5338 = vset.pattern.permute.xlu1 %v5638_v5  ;;  %v619_v42 = vunpack.c.l.s4 %v5639_v41  ;;  %v113_v54 = vld [vmem:[#allocation3] sm:$0x1]  ;;  %vm821_vm1 = vcmask 1042434   ;;  %vm823_vm2 = vcmask 1043459   ;;  %vm140_vm3 = vcmask 1040384  }
   0xd   :  { %v5795_v47 = vshrl.u32 %v117_v44, 7  ;;  %vm825_vm4 = vcmask 1044484   ;;  %vm827_vm5 = vcmask 1045509   ;;  %vm829_vm6 = vcmask 1046534  }
   0xe   :  { %v620_v46 = vunpack.c.0.s8 %v619_v42  ;;  %vm151_vm7 = vcmask 1046528   ;;  %vm831_vm8 = vcmask 1047559  }
   0xf   :  { %v5805_v51 = vsub.s32 0, %v5795_v47  ;;  %v5810_v55 = vsub.s32 1, %v5795_v47 }
  0x10   :  { %v5798_v48 = vsub.s32 %v620_v46, %v5795_v47 }
  0x11   :  { %v5756_v2 = vld [vmem:[%s7384_s23] sm:$0xff]  ;;  %v5761_v3 = vld [vmem:[%s7384_s23 + $0x8] sm:$0xff]  ;;  %v5766_v4 = vld [vmem:[%s7384_s23 + $0x10] sm:$0xff] }
  0x12   :  { %v5773_v6 = vld [vmem:[%s7384_s23 + $0x18] sm:$0xff]  ;;  %v73_v7 = vsel %vm72_vm0, %v5756_v2, 0.0  ;;  %v74_v8 = vsel %vm72_vm0, %v5761_v3, 0.0  ;;  %v76_v9 = vsel %vm72_vm0, %v5766_v4, 0.0  ;;  %v88_v10 = vmul.f32 %v5756_v2, %v5756_v2  ;;  %v109_v50 = vld [vmem:[#allocation2] sm:$0x1] }
  0x13   :  { %v75_v11 = vadd.f32 %v74_v8, %v73_v7  ;;  %v89_v12 = vmul.f32 %v5761_v3, %v5761_v3  ;;  %v90_v13 = vmul.f32 %v5766_v4, %v5766_v4  ;;  %v78_v14 = vsel %vm72_vm0, %v5773_v6, 0.0 }
  0x14   :  { %v91_v15 = vmul.f32 %v5773_v6, %v5773_v6  ;;  %v92_v16 = vsel %vm72_vm0, %v88_v10, 0.0  ;;  %v5802_v49 = vrot.slane %v5756_v2, %v5798_v48  ;;  %v919_v52 = vcombine.high %v5756_v2, %v5756_v2 }
  0x15   :  { %v77_v17 = vadd.f32 %v76_v9, %v75_v11  ;;  %v93_v18 = vsel %vm72_vm0, %v89_v12, 0.0  ;;  %v95_v19 = vsel %vm72_vm0, %v90_v13, 0.0  ;;  %v5818_v57 = vrot.slane %v5766_v4, %v5798_v48 }
  0x16   :  { %v94_v20 = vadd.f32 %v93_v18, %v92_v16  ;;  %v97_v22 = vsel %vm72_vm0, %v91_v15, 0.0  ;;  %v5814_v56 = vcombine.high %v5802_v49, %v5802_v49  ;;  %v953_v61 = vcombine.high %v5766_v4, %v5766_v4 }
  0x17   :  { %v79_v21 = vadd.f32 %v78_v14, %v77_v17  ;;  %v5824_v62 = vrot.slane %v919_v52, %v5798_v48  ;;  %v1070_v63 = vrot.slane %v5802_v49, %v5810_v55  ;;  %v5832_v1 = vcombine.high %v5818_v57, %v5818_v57 }
  0x18   :  { %v96_v23 = vadd.f32 %v95_v19, %v94_v20  ;;  %v1074_v0 = vrot.slane %v5814_v56, %v5810_v55  ;;  %v5839_v12 = vrot.slane %v953_v61, %v5798_v48  ;;  %v1098_v17 = vrot.slane %v5818_v57, %v5810_v55 }
  0x19   :  { %v80_v24 = vrot.slane %v79_v21, 4  ;;  %v5843_v13 = vcombine.high %v5824_v62, %v5824_v62  ;;  %v1078_v15 = vrot.slane %v5824_v62, %v5810_v55 }
  0x1a   :  { %v98_v25 = vadd.f32 %v97_v22, %v96_v23  ;;  %v1123_v16 = vsel %vm821_vm1, %v1074_v0, %v1070_v63  ;;  %v5857_v22 = vrot.slane %v5761_v3, %v5798_v48 }
  0x1b   :  { %v81_v26 = vadd.f32 %v80_v24, %v79_v21  ;;  %v1102_v21 = vrot.slane %v5832_v1, %v5810_v55  ;;  %v1082_v24 = vrot.slane %v5843_v13, %v5810_v55 }
  0x1c   :  { %v99_v27 = vrot.slane %v98_v25, 4 }
  0x1d   :  { %v82_v28 = vrot.slane %v81_v26, 2 }
  0x1e   :  { %v100_v29 = vadd.f32 %v99_v27, %v98_v25  ;;  %v5864_v25 = vcombine.high %v5839_v12, %v5839_v12 }
  0x1f   :  { %v83_v30 = vadd.f32 %v82_v28, %v81_v26  ;;  %v1124_v28 = vsel %vm823_vm2, %v1078_v15, %v1123_v16 }
  0x20   :  { %v101_v31 = vrot.slane %v100_v29, 2 }
  0x21   :  { %v84_v32 = vrot.slane %v83_v30, 1 }
  0x22   :  { %v102_v33 = vadd.f32 %v101_v31, %v100_v29  ;;  %v1106_v29 = vrot.slane %v5839_v12, %v5810_v55  ;;  %v936_v31 = vcombine.high %v5761_v3, %v5761_v3 }
  0x23   :  { %v85_v34 = vadd.f32 %v84_v32, %v83_v30  ;;  %v1129_v32 = vsel %vm821_vm1, %v1102_v21, %v1098_v17 }
  0x24   :  { %v103_v35 = vrot.slane %v102_v33, 1  ;;  %v1130_v41 = vsel %vm823_vm2, %v1106_v29, %v1129_v32  ;;  %v5890_v42 = vrot.slane %v936_v31, %v5798_v48  ;;  %v4775_v31 = vrot.slane %v5832_v1, 9  ;;  %v5347_v32 = vld [vmem:[%s7361_s5 + $0x38] sm:$0xff]  }
  0x25   :  { %v87_v36 = vmul.f32 0.03125, %v85_v34  ;;  %v5879_v34 = vrot.slane %v5773_v6, %v5798_v48 }
  0x26   :  { %v104_v37 = vadd.f32 %v103_v35, %v102_v33  ;;  %v5875_v33 = vcombine.high %v5857_v22, %v5857_v22  ;;  %v1086_v35 = vrot.slane %v5857_v22, %v5810_v55 }
  0x27   :  { %v106_v38 = vmul.f32 %v87_v36, %v87_v36 }
  0x28   :  { %v105_v39 = vmul.f32 0.03125, %v104_v37  ;;  %v1110_v37 = vrot.slane %v5864_v25, %v5810_v55  ;;  %v1090_v44 = vrot.slane %v5875_v33, %v5810_v55 }
  0x2a   :  { %v107_v40 = vsub.f32 %v105_v39, %v106_v38  ;;  %v1131_v52 = vsel %vm825_vm4, %v1110_v37, %v1130_v41  ;;  %v4769_v41 = vrot.slane %v5843_v13, 9 }
  0x2c   :  { %v108_v43 = vmax.f32 %v107_v40, 0.0 }
  0x2e   :  { %v110_v45 = vadd.f32 1e-05, %v108_v43  ;;  %v970_v43 = vcombine.high %v5773_v6, %v5773_v6 }
  0x30   :  { %5608 = vrsqrt.f32 %v110_v45  ;;  %v5898_v45 = vcombine.high %v5879_v34, %v5879_v34  ;;  %v5910_v61 = vrot.slane %v970_v43, %v5798_v48 }
  0x32   :  { %v1118_v0 = vrot.slane %v5898_v45, %v5810_v55  ;;  %v1122_v16 = vrot.slane %v5910_v61, %v5810_v55 }
  0x3a   :  { %v5609_v53 = vpop.eup %5608 }
  0x3b   :  { %v112_v58 = vmul.f32 %v5609_v53, %v109_v50  ;;  %v1114_v50 = vrot.slane %v5879_v34, %v5810_v55 }
  0x3d   :  { %v114_v59 = vmul.f32 %v112_v58, %v87_v36  ;;  %v120_v60 = vrot.slane %v112_v58, %v5805_v51  ;;  %v1125_v36 = vsel %vm825_vm4, %v1082_v24, %v1124_v28  ;;  %v4767_v24 = vrot.slane %v5814_v56, 9 }
  0x3e   :  { %v1126_v46 = vsel %vm827_vm5, %v1086_v35, %v1125_v36 }
  0x3f   :  { %v115_v7 = vsub.f32 %v113_v54, %v114_v59  ;;  %v124_v8 = vmul.f32 %v120_v60, %v5766_v4  ;;  %v122_v9 = vmul.f32 %v120_v60, %v5756_v2  ;;  %v123_v10 = vmul.f32 %v120_v60, %v5761_v3 }
  0x40   :  { %v125_v14 = vmul.f32 %v120_v60, %v5773_v6  ;;  %v1094_v60 = vrot.slane %v5890_v42, %v5810_v55  ;;  %v1127_v63 = vsel %vm829_vm6, %v1090_v44, %v1126_v46 }
  0x41   :  { %v130_v11 = vrot.slane %v115_v7, %v5805_v51  ;;  %v5344_v7 = vld [vmem:[%s7361_s5 + $0x20] sm:$0xff]  }
  0x42   :  { %5189 = vmatprep.subr.bf16.mxu0 %v5344_v7  ;;  %v1128_v15 = vsel %vm831_vm8, %v1094_v60, %v1127_v63 }
  0x43   :  { %v5851_v18 = vadd.f32 %v130_v11, %v124_v8  ;;  %v132_v19 = vadd.f32 %v130_v11, %v122_v9  ;;  %v133_v20 = vadd.f32 %v130_v11, %v123_v10  ;;  %v135_v26 = vadd.f32 %v130_v11, %v125_v14  ;;  %5190 = vmatpush3.bf16.msra.mxu0 %v5344_v7 }
  0x44   :  { %v1132_v8 = vsel %vm827_vm5, %v1114_v50, %v1131_v52 }
  0x45   :  { %202 = vperm.xlu0 %5339, %v5851_v18   ;;  %194 = vperm.xlu1 %5338, %v132_v19   ;;  %v141_v23 = vrot.slane %v132_v19, 7  ;;  %v142_v27 = vrot.slane %v133_v20, 7  ;;  %v144_v39 = vrot.slane %v5851_v18, 7  ;;  %v145_v40 = vrot.slane %v135_v26, 7 }
  0x46   :  { %v153_v58 = vrot.slane %v133_v20, 1  ;;  %v152_v59 = vrot.slane %v132_v19, 1  ;;  %v156_v11 = vrot.slane %v135_v26, 1  ;;  %v155_v14 = vrot.slane %v5851_v18, 1 }
  0x47   :  { %v149_v30 = vsel %vm140_vm3, %v132_v19, %v141_v23  ;;  %v143_v38 = vsel %vm140_vm3, %v141_v23, %v142_v27  ;;  %v146_v53 = vsel %vm140_vm3, %v144_v39, %v145_v40  ;;  %v150_v54 = vsel %vm140_vm3, %v5851_v18, %v144_v39  ;;  %v5345_v19 = vld [vmem:[%s7361_s5 + $0x28] sm:$0xff]   ;;  %v5346_v27 = vld [vmem:[%s7361_s5 + $0x30] sm:$0xff]  }
  0x48   :  { %v160_v9 = vsel %vm151_vm7, %v153_v58, %v133_v20  ;;  %v154_v10 = vsel %vm151_vm7, %v152_v59, %v153_v58  ;;  %v1133_v17 = vsel %vm829_vm6, %v1118_v0, %v1132_v8  ;;  %v157_v21 = vsel %vm151_vm7, %v155_v14, %v156_v11  ;;  %5191 = vmatprep.subr.bf16.mxu0 %v5345_v19 }
  0x49   :  { %198 = vperm.xlu1 %5338, %v133_v20   ;;  %165 = vperm.xlu0 %5339, %v149_v30   ;;  %v161_v20 = vsel %vm151_vm7, %v156_v11, %v135_v26  ;;  %v1137_v18 = vsel %vm140_vm3, -inf, %v1128_v15  ;;  %v1134_v23 = vsel %vm831_vm8, %v1122_v16, %v1133_v17  ;;  %v1052_v30 = vmax.f32 %v5814_v56, %v4767_v24 }
  0x4a   :  { %5192 = vmatpush3.bf16.msra.mxu0 %v5345_v19  ;;  %v1148_v28 = vrot.slane %v1137_v18, %v5798_v48  ;;  %v1138_v29 = vsel %vm140_vm3, -inf, %v1134_v23  ;;  %v4776_v56 = vrot.slane %v5839_v12, 9  ;;  %v1060_v39 = vmax.f32 %v5832_v1, %v4775_v31 }
  0x4b   :  { %5193 = vmatprep.subr.bf16.mxu0 %v5346_v27  ;;  %v1165_v37 = vrot.slane %v1138_v29, %v5798_v48  ;;  %v4768_v40 = vrot.slane %v5824_v62, 9  ;;  %v1141_v50 = vcombine.high %v1137_v18, %v1137_v18  ;;  %v4771_v59 = vrot.slane %v5875_v33, 9 }
  0x4c   :  { %v1175_v35 = vrot.slane %v1148_v28, 1  ;;  %v1156_v44 = vcombine.high %v1148_v28, %v1148_v28  ;;  %v1061_v46 = vmax.f32 %v5839_v12, %v4776_v56  ;;  %v4778_v12 = vrot.slane %v5879_v34, 9 }
  0x4d   :  { %206 = vperm.xlu1 %5338, %v135_v26   ;;  %169 = vperm.xlu0 %5339, %v143_v38   ;;  %v4766_v26 = vrot.slane %v5802_v49, 9  ;;  %v4774_v38 = vrot.slane %v5818_v57, 9  ;;  %v1179_v43 = vrot.slane %v1165_v37, 1  ;;  %v1053_v52 = vmax.f32 %v5824_v62, %v4768_v40 }
  0x4e   :  { %5194 = vmatpush3.bf16.msra.mxu0 %v5346_v27  ;;  %v1173_v58 = vcombine.high %v1165_v37, %v1165_v37  ;;  %v1158_v60 = vcombine.high %v1138_v29, %v1138_v29  ;;  %v4770_v62 = vrot.slane %v5857_v22, 9  ;;  %v1155_v63 = vrot.slane %v1141_v50, %v5798_v48 }
  0x4f   :  { %v1051_v36 = vmax.f32 %v5802_v49, %v4766_v26  ;;  %5195 = vmatprep.subr.bf16.mxu0 %v5347_v32  ;;  %v1059_v1 = vmax.f32 %v5818_v57, %v4774_v38  ;;  %v4779_v8 = vrot.slane %v5898_v45, 9  ;;  %v1056_v11 = vmax.f32 %v5875_v33, %v4771_v59 }
  0x50   :  { %v1177_v14 = vrot.slane %v1155_v63, 1  ;;  %v1063_v16 = vmax.f32 %v5879_v34, %v4778_v12  ;;  %v1172_v17 = vrot.slane %v1158_v60, %v5798_v48  ;;  %v1055_v19 = vmax.f32 %v5857_v22, %v4770_v62 }
  0x51   :  { %178 = vperm.xlu1 %5338, %v146_v53   ;;  %174 = vperm.xlu0 %5339, %v150_v54   ;;  %v5963_v49 = vmax.f32 %v1051_v36, %v1148_v28  ;;  %v4777_v53 = vrot.slane %v5864_v25, 9  ;;  %v5973_v54 = vmax.f32 %v1060_v39, %v1179_v43  ;;  %v5975_v57 = vmax.f32 %v1059_v1, %v1165_v37 }
  0x52   :  { %5196 = vmatpush3.bf16.msra.mxu0 %v5347_v32  ;;  %v1064_v33 = vmax.f32 %v5898_v45, %v4779_v8  ;;  %v6002_v18 = vmax.f32 %v1056_v11, %v1177_v14 }
  0x53   :  { %v1062_v0 = vmax.f32 %v5864_v25, %v4777_v53 }
  0x55   :  { %231 = vperm.xlu1 %5338, %v160_v9   ;;  %226 = vperm.xlu0 %5339, %v154_v10   ;;  %v5989_v9 = vmax.f32 %v1061_v46, %v1173_v58  ;;  %v1180_v10 = vrot.slane %v1173_v58, 1 }
  0x59   :  { %240 = vperm.xlu1 %5338, %v161_v20   ;;  %235 = vperm.xlu0 %5339, %v157_v21   ;;  %v1210_v20 = vmax.f32 %v1062_v0, %v1180_v10  ;;  %v1181_v21 = vrot.slane %v1172_v17, 1 }
  0x5d   :  { %601 = vperm.xlu1 %5338, %v5766_v4   ;;  %591 = vperm.xlu0 %5339, %v5756_v2   ;;  %v5957_v2 = vld [vmem:[%s7361_s5] sm:$0xff]   ;;  %v5961_v4 = vmax.f32 %v1052_v30, %v1175_v35 }
  0x5e   :  { %5201 = vmatprep.subr.bf16.mxu0 %v5957_v2 }
  0x5f   :  { %v2785_v15 = vrot.slane %v5961_v4, %v5805_v51 }
  0x61   :  { %606 = vperm.xlu1 %5338, %v5773_v6   ;;  %596 = vperm.xlu0 %5339, %v5761_v3   ;;  %v1054_v6 = vmax.f32 %v5843_v13, %v4769_v41  ;;  %v1176_v3 = vrot.slane %v1156_v44, 1  ;;  %v5981_v13 = vmax.f32 %v1053_v52, %v1156_v44 }
  0x63   :  { %v5984_v7 = vmax.f32 %v1054_v6, %v1176_v3 }
  0x65   :  { %2352 = vperm.xlu1 %5338, %v5961_v4   ;;  %2340 = vperm.xlu0 %5339, %v5963_v49   ;;  %v2789_v25 = vrot.slane %v5984_v7, %v5805_v51 }
  0x69   :  { %2448 = vperm.xlu1 %5338, %v5973_v54   ;;  %2436 = vperm.xlu0 %5339, %v5975_v57  }
  0x6d   :  { %2460 = vperm.xlu1 %5338, %v5989_v9   ;;  %2364 = vperm.xlu0 %5339, %v5981_v13  }
  0x6e   :  { %28 = vsyncpa [#allocation5], 0  ;;  %v2806_v23 = vsel %vm821_vm1, %v2789_v25, %v2785_v15  ;;  %v6005_v24 = vmax.f32 %v1063_v16, %v1172_v17  ;;  %v6007_v34 = vmax.f32 %v1055_v19, %v1155_v63  ;;  %v2793_v22 = vrot.slane %v6002_v18, %v5805_v51  ;;  %s7385_s4 = sld [smem:[#allocation9_spill]]  ;;  %s7386_s30 = sld [smem:[#allocation10_spill]] }
  0x6f   :  { %v2797_v27 = vrot.slane %v5973_v54, %v5805_v51  ;;  %v2801_v28 = vrot.slane %v1210_v20, %v5805_v51  ;;  %v4780_v45 = vrot.slane %v5910_v61, 9  ;;  %v4772_v26 = vrot.slane %v5890_v42, 9 }
  0x70   :  { %v1212_v29 = vmax.f32 %v1064_v33, %v1181_v21  ;;  %v986_v30 = vcombine.high %v5910_v61, %v5910_v61  ;;  %v952_v31 = vcombine.high %v5890_v42, %v5890_v42  ;;  %v1174_v35 = vcombine.high %v1172_v17, %v1172_v17 }
  0x71   :  { %2472 = vperm.xlu1 %5338, %v1210_v20   ;;  %2376 = vperm.xlu0 %5339, %v5984_v7   ;;  %v2807_v36 = vsel %vm823_vm2, %v2793_v22, %v2806_v23  ;;  %v2808_v37 = vsel %vm821_vm1, %v2801_v28, %v2797_v27  ;;  %v1065_v38 = vmax.f32 %v5910_v61, %v4780_v45  ;;  %vm345_vm9 = vcmask 523264  }
  0x72   :  { %v2805_v32 = vrot.slane %v1212_v29, %v5805_v51  ;;  %v1057_v56 = vmax.f32 %v5890_v42, %v4772_v26  ;;  %v1157_v39 = vcombine.high %v1155_v63, %v1155_v63  ;;  %v4781_v40 = vrot.slane %v986_v30, 9 }
  0x73   :  { %v4773_v41 = vrot.slane %v952_v31, 9  ;;  %v2812_v43 = vsel %vm140_vm3, -inf, %v2807_v36  ;;  %v1213_v44 = vmax.f32 %v1065_v38, %v1174_v35  ;;  %v1182_v50 = vrot.slane %v1174_v35, 1 }
  0x74   :  { %v2809_v1 = vsel %vm823_vm2, %v2805_v32, %v2808_v37  ;;  %v1205_v46 = vmax.f32 %v1057_v56, %v1157_v39  ;;  %v1066_v61 = vmax.f32 %v986_v30, %v4781_v40  ;;  %v1178_v42 = vrot.slane %v1157_v39, 1  ;;  %v4709_v22 = vld [vmem:[%s7385_s4] ss:$0 sm:$0xff]  ;;  %v4711_v27 = vld [vmem:[%s7385_s4 + $0x1] ss:$0 sm:$0xff] }
  0x75   :  { %2484 = vperm.xlu1 %5338, %v6005_v24   ;;  %2388 = vperm.xlu0 %5339, %v6007_v34   ;;  %v1058_v52 = vmax.f32 %v952_v31, %v4773_v41  ;;  %v2822_v53 = vrot.slane %v2812_v43, %v5798_v48  ;;  %v2813_v6 = vsel %vm140_vm3, -inf, %v2809_v1  ;;  %v2775_v3 = vmax.f32 %v5981_v13, %v5984_v7  ;;  %v4713_v30 = vld [vmem:[%s7385_s4 + $0x2] ss:$0 sm:$0xff] }
  0x76   :  { %v2774_v58 = vmax.f32 %v5963_v49, %v5961_v4  ;;  %v1214_v59 = vmax.f32 %v1066_v61, %v1182_v50  ;;  %v2830_v62 = vrot.slane %v2813_v6, %v5798_v48  ;;  %v2778_v63 = vmax.f32 %v5975_v57, %v5973_v54 }
  0x77   :  { %v1206_v12 = vmax.f32 %v1058_v52, %v1178_v42  ;;  %v2832_v60 = vrot.slane %v2822_v53, 1  ;;  %v2779_v10 = vmax.f32 %v5989_v9, %v1210_v20  ;;  %v2780_v4 = vmax.f32 %v6005_v24, %v1212_v29 }
  0x78   :  { %v2844_v8 = vmax.f32 %v2774_v58, %v2822_v53  ;;  %v2834_v13 = vrot.slane %v2830_v62, 1  ;;  %v2848_v7 = vmax.f32 %v2778_v63, %v2830_v62  ;;  %v2776_v49 = vmax.f32 %v6007_v34, %v6002_v18 }
  0x79   :  { %2496 = vperm.xlu1 %5338, %v1212_v29   ;;  %2400 = vperm.xlu0 %5339, %v6002_v18   ;;  %v2845_v0 = vmax.f32 %v2775_v3, %v2832_v60  ;;  %v2831_v14 = vcombine.high %v2830_v62, %v2830_v62  ;;  %v2823_v15 = vcombine.high %v2822_v53, %v2822_v53  ;;  %vm5641_vm10 = vmmov 0  }
  0x7a   :  { %v2849_v11 = vmax.f32 %v2779_v10, %v2834_v13  ;;  %v2781_v25 = vmax.f32 %v1213_v44, %v1214_v59  ;;  %v2777_v54 = vmax.f32 %v1205_v46, %v1206_v12  ;;  %vm1295_vm11 = vcmask 1041409  }
  0x7b   :  { %v2850_v57 = vmax.f32 %v2780_v4, %v2831_v14  ;;  %v2846_v16 = vmax.f32 %v2776_v49, %v2823_v15  ;;  %v2835_v17 = vrot.slane %v2831_v14, 1  ;;  %v2833_v9 = vrot.slane %v2823_v15, 1 }
  0x7c   :  { %vm2900_vm12 = vcmask 1043456   ;;  %vm3098_vm13 = vcmask 1042432  }
  0x7d   :  { %2508 = vperm.xlu1 %5338, %v1213_v44   ;;  %2412 = vperm.xlu0 %5339, %v1205_v46   ;;  %v2851_v19 = vmax.f32 %v2781_v25, %v2835_v17  ;;  %v2847_v20 = vmax.f32 %v2777_v54, %v2833_v9  ;;  %v4714_v44 = vld [vmem:[%s7386_s30] ss:$0 sm:$0xff]  ;;  %v5349_v25 = vld [vmem:[%s7361_s5 + $0x8] sm:$0xff]  }
  0x81   :  { %2520 = vperm.xlu1 %5338, %v1214_v59   ;;  %2424 = vperm.xlu0 %5339, %v1206_v12  }
  0x85   :  { %4417 = vperm.xlu1 %5338, %v2845_v0   ;;  %4405 = vperm.xlu0 %5339, %v2844_v8  }
  0x89   :  { %4465 = vperm.xlu1 %5338, %v2849_v11   ;;  %4453 = vperm.xlu0 %5339, %v2848_v7  }
  0x8d   :  { %4477 = vperm.xlu1 %5338, %v2850_v57   ;;  %4429 = vperm.xlu0 %5339, %v2846_v16   ;;  %v5350_v57 = vld [vmem:[%s7361_s5 + $0x10] sm:$0xff]   ;;  %v5351_v16 = vld [vmem:[%s7361_s5 + $0x18] sm:$0xff]  }
  0x91   :  { %4489 = vperm.xlu1 %5338, %v2851_v19   ;;  %4441 = vperm.xlu0 %5339, %v2847_v20  }
  0xc4   :  { %v203_v33 = vpop.permute.xlu0 %202  ;;  %v195_v21 = vpop.permute.xlu1 %194 }
  0xc5   :  { %v215_v31 = vmul.f32 %v4711_v27, %v195_v21  ;;  %v217_v43 = vmul.f32 %v4711_v27, %v203_v33 }
  0xc8   :  { %v199_v18 = vpop.permute.xlu1 %198  ;;  %v166_v23 = vpop.permute.xlu0 %165 }
  0xc9   :  { %v187_v26 = vmul.f32 %v4709_v22, %v166_v23  ;;  %v216_v32 = vmul.f32 %v4711_v27, %v199_v18 }
  0xcb   :  { %v219_v56 = vadd.f32 %v215_v31, %v187_v26 }
  0xcc   :  { %v207_v24 = vpop.permute.xlu1 %206  ;;  %v170_v34 = vpop.permute.xlu0 %169 }
  0xcd   :  { %v188_v29 = vmul.f32 %v4709_v22, %v170_v34  ;;  %v218_v1 = vmul.f32 %v4711_v27, %v207_v24  ;;  %v5353_v34 = vld [vmem:[%s7361_s5 + $0x48] sm:$0xff]   ;;  %v5354_v27 = vld [vmem:[%s7361_s5 + $0x50] sm:$0xff]  }
  0xcf   :  { %v220_v39 = vadd.f32 %v216_v32, %v188_v29  ;;  %v5356_v32 = vld [vmem:[%s7365_s9 + $0x20] sm:$0xff]  }
  0xd0   :  { %v179_v28 = vpop.permute.xlu1 %178  ;;  %v175_v45 = vpop.permute.xlu0 %174 }
  0xd1   :  { %v190_v35 = vmul.f32 %v4709_v22, %v179_v28  ;;  %v189_v36 = vmul.f32 %v4709_v22, %v175_v45  ;;  %v5355_v28 = vld [vmem:[%s7361_s5 + $0x58] sm:$0xff]  }
  0xd3   :  { %v222_v61 = vadd.f32 %v218_v1, %v190_v35  ;;  %v221_v52 = vadd.f32 %v217_v43, %v189_v36  ;;  %v5640_v35 = vmov 0.0   ;;  %v5357_v36 = vld [vmem:[%s7365_s9 + $0x28] sm:$0xff]  }
  0xd4   :  { %v232_v37 = vpop.permute.xlu1 %231  ;;  %v227_v38 = vpop.permute.xlu0 %226  ;;  %5225 = vmatprep.subr.bf16.mxu1 %v5640_v35  ;;  %5233 = vmatprep.mubr.msk.bf16.mxu1 %vm5641_vm10, %v5640_v35 }
  0xd5   :  { %v250_v40 = vmul.f32 %v4713_v30, %v232_v37  ;;  %v249_v41 = vmul.f32 %v4713_v30, %v227_v38  ;;  %5226 = vmatpush3.bf16.msra.mxu1 %v5356_v32  ;;  %v5358_v37 = vld [vmem:[%s7365_s9 + $0x30] sm:$0xff]   ;;  %v5359_v38 = vld [vmem:[%s7365_s9 + $0x38] sm:$0xff]  }
  0xd6   :  { %5227 = vmatprep.subr.bf16.mxu1 %v5640_v35 }
  0xd7   :  { %v254_v46 = vadd.f32 %v250_v40, %v220_v39  ;;  %v253_v50 = vadd.f32 %v249_v41, %v219_v56  ;;  %v4749_v56 = vld [vmem:[%s7362_s6] ss:$0 sm:$0xff] }
  0xd8   :  { %v241_v42 = vpop.permute.xlu1 %240  ;;  %v236_v53 = vpop.permute.xlu0 %235 }
  0xd9   :  { %v265_v6 = vadd.f32 %v4714_v44, %v254_v46  ;;  %v264_v3 = vadd.f32 %v4714_v44, %v253_v50  ;;  %v252_v58 = vmul.f32 %v4713_v30, %v241_v42  ;;  %v251_v59 = vmul.f32 %v4713_v30, %v236_v53  ;;  %5228 = vmatpush3.bf16.msra.mxu1 %v5357_v36 }
  0xda   :  { %5229 = vmatprep.subr.bf16.mxu1 %v5640_v35 }
  0xdb   :  { %v269_v12 = vmax.f32 %v265_v6, 0.0  ;;  %v268_v60 = vmax.f32 %v264_v3, 0.0  ;;  %v256_v62 = vadd.f32 %v252_v58, %v222_v61  ;;  %v255_v63 = vadd.f32 %v251_v59, %v221_v52 }
  0xdc   :  { %v602_v50 = vpop.permute.xlu1 %601  ;;  %v592_v52 = vpop.permute.xlu0 %591 }
  0xdd   :  { %v267_v0 = vadd.f32 %v4714_v44, %v256_v62  ;;  %v266_v8 = vadd.f32 %v4714_v44, %v255_v63  ;;  %v310_v10 = vpack.c.bf16 %v269_v12, %v268_v60  ;;  %v276_v13 = vrot.slane %v268_v60, 7  ;;  %5230 = vmatpush3.bf16.msra.mxu1 %v5358_v37 }
  0xde   :  { %v277_v7 = vrot.slane %v269_v12, 7  ;;  %v288_v19 = vrot.slane %v268_v60, 1  ;;  %v289_v20 = vrot.slane %v269_v12, 1  ;;  %5231 = vmatprep.subr.bf16.mxu1 %v5640_v35 }
  0xdf   :  { %v271_v4 = vmax.f32 %v267_v0, 0.0  ;;  %v270_v49 = vmax.f32 %v266_v8, 0.0  ;;  %5197 = vmatprep.mubr.msk.bf16.mxu0 %vm345_vm9, %v310_v10  ;;  %v286_v14 = vsel %vm140_vm3, %v268_v60, %v276_v13 }
  0xe0   :  { %v278_v11 = vsel %vm140_vm3, %v276_v13, %v277_v7  ;;  %v290_v18 = vsel %vm151_vm7, %v288_v19, %v289_v20  ;;  %v298_v23 = vsel %vm151_vm7, %v289_v20, %v269_v12  ;;  %v607_v13 = vpop.permute.xlu1 %606 }
  0xe1   :  { %v311_v15 = vpack.c.bf16 %v271_v4, %v270_v49  ;;  %v300_v54 = vpack.c.bf16 %v278_v11, %v286_v14  ;;  %v280_v17 = vrot.slane %v271_v4, 7  ;;  %v279_v9 = vrot.slane %v270_v49, 7  ;;  %5232 = vmatpush3.bf16.msra.mxu1 %v5359_v38 }
  0xe2   :  { %v480_v22 = vpack.c.bf16 %v298_v23, %v290_v18  ;;  %v292_v45 = vrot.slane %v271_v4, 1  ;;  %v291_v26 = vrot.slane %v270_v49, 1  ;;  %5237 = vmatprep.subr.bf16.mxu1 %v5640_v35 }
  0xe3   :  { %5198 = vmatmul.mubr.msk.bf16.vlgmr.msra.gmra.mrb[0].mxu0 %vm345_vm9, %v311_v15  ;;  %v281_v33 = vsel %vm140_vm3, %v279_v9, %v280_v17  ;;  %v287_v21 = vsel %vm140_vm3, %v270_v49, %v279_v9 }
  0xe4   :  { %5202 = vmatpush3.bf16.msra.mxu0 %v5957_v2  ;;  %5209 = vmatprep.mubr.msk.bf16.mxu0 %vm345_vm9, %v300_v54  ;;  %v5352_v2 = vld [vmem:[%s7361_s5 + $0x40] sm:$0xff]   ;;  %v301_v24 = vpack.c.bf16 %v281_v33, %v287_v21  ;;  %v293_v29 = vsel %vm151_vm7, %v291_v26, %v292_v45  ;;  %v299_v30 = vsel %vm151_vm7, %v292_v45, %v271_v4 }
  0xe5   :  { %5203 = vmatprep.subr.bf16.mxu0 %v5349_v25  ;;  %v481_v31 = vpack.c.bf16 %v299_v30, %v293_v29 }
  0xe8   :  { %5204 = vmatpush3.bf16.msra.mxu0 %v5349_v25  ;;  %v597_v25 = vpop.permute.xlu0 %596 }
  0xe9   :  { %5205 = vmatprep.subr.bf16.mxu0 %v5350_v57 }
  0xec   :  { %5206 = vmatpush3.bf16.msra.mxu0 %v5350_v57 }
  0xed   :  { %5207 = vmatprep.subr.bf16.mxu0 %v5351_v16 }
  0xf0   :  { %5208 = vmatpush3.bf16.msra.mxu0 %v5351_v16 }
  0xf1   :  { %5213 = vmatprep.subr.bf16.mxu0 %v5352_v2 }
  0xf3   :  { %5210 = vmatmul.mubr.msk.bf16.vlgmr.msra.gmra.mrb[0].mxu0 %vm345_vm9, %v301_v24 }
  0xf4   :  { %5214 = vmatpush3.bf16.msra.mxu0 %v5352_v2  ;;  %5221 = vmatprep.mubr.msk.bf16.mxu0 %vm345_vm9, %v480_v22 }
  0xf5   :  { %5215 = vmatprep.subr.bf16.mxu0 %v5353_v34 }
  0xf8   :  { %5216 = vmatpush3.bf16.msra.mxu0 %v5353_v34 }
  0xf9   :  { %5217 = vmatprep.subr.bf16.mxu0 %v5354_v27 }
  0xfc   :  { %5218 = vmatpush3.bf16.msra.mxu0 %v5354_v27 }
  0xfd   :  { %5219 = vmatprep.subr.bf16.mxu0 %v5355_v28 }
 0x100   :  { %5220 = vmatpush3.bf16.msra.mxu0 %v5355_v28 }
 0x101   :  { %5301 = vmatprep.subr.bf16.mxu0 %v5640_v35 }
 0x103   :  { %5222 = vmatmul.mubr.msk.bf16.vlgmr.msra.gmra.mrb[0].mxu0 %vm345_vm9, %v481_v31 }
 0x104   :  { %5317 = vmatprep.mubr.msk.bf16.mxu0 %vm5641_vm10, %v5640_v35 }
 0x1d6   :  { %v5223_v39 = vpop.f32.mrb[0].mxu0 }
 0x1d7   :  { %v583_v40 = vadd.f32 %v5223_v39, %v4749_v56  ;;  %v555_v41 = vpop.f32.mrb[1].mxu0 }
 0x1d8   :  { %v581_v43 = vadd.f32 %v4749_v56, %v555_v41  ;;  %v5224_v1 = vpop.f32.mrb[2].mxu0 }
 0x1d9   :  { %v587_v44 = vmax.f32 %v583_v40, 0.0  ;;  %v558_v46 = vpop.f32.mrb[3].mxu0  ;;  %v584_v53 = vadd.f32 %v5224_v1, %v4749_v56 }
 0x1da   :  { %v585_v61 = vmax.f32 %v581_v43, 0.0  ;;  %v582_v59 = vadd.f32 %v4749_v56, %v558_v46 }
 0x1db   :  { %v611_v42 = vadd.f32 %v602_v50, %v587_v44  ;;  %v588_v0 = vmax.f32 %v584_v53, 0.0 }
 0x1dc   :  { %v609_v6 = vadd.f32 %v592_v52, %v585_v61  ;;  %v586_v10 = vmax.f32 %v582_v59, 0.0 }
 0x1dd   :  { %v651_v3 = vcombine.high %v611_v42, %v611_v42  ;;  %v658_v58 = vrot.slane %v611_v42, %v5798_v48  ;;  %v612_v15 = vadd.f32 %v607_v13, %v588_v0 }
 0x1de   :  { %v624_v12 = vrot.slane %v609_v6, %v5798_v48  ;;  %v617_v63 = vcombine.high %v609_v6, %v609_v6  ;;  %v610_v17 = vadd.f32 %v597_v25, %v586_v10 }
 0x1df   :  { %v665_v60 = vrot.slane %v651_v3, %v5798_v48  ;;  %v666_v62 = vcombine.high %v658_v58, %v658_v58  ;;  %v796_v7 = vrot.slane %v658_v58, %v5810_v55  ;;  %v4758_v54 = vrot.slane %v658_v58, 9 }
 0x1e0   :  { %v632_v11 = vcombine.high %v624_v12, %v624_v12  ;;  %v631_v14 = vrot.slane %v617_v63, %v5798_v48  ;;  %v4750_v20 = vrot.slane %v624_v12, 9  ;;  %v668_v18 = vcombine.high %v612_v15, %v612_v15 }
 0x1e1   :  { %v667_v8 = vcombine.high %v665_v60, %v665_v60  ;;  %v800_v4 = vrot.slane %v666_v62, %v5810_v55  ;;  %v804_v49 = vrot.slane %v665_v60, %v5810_v55  ;;  %v4759_v9 = vrot.slane %v666_v62, 9 }
 0x1e2   :  { %v772_v2 = vrot.slane %v632_v11, %v5810_v55  ;;  %v4760_v33 = vrot.slane %v665_v60, 9  ;;  %v633_v21 = vcombine.high %v631_v14, %v631_v14  ;;  %v675_v23 = vrot.slane %v612_v15, %v5798_v48 }
 0x1e3   :  { %v833_v57 = vsel %vm821_vm1, %v800_v4, %v796_v7  ;;  %v808_v16 = vrot.slane %v667_v8, %v5810_v55  ;;  %v4761_v24 = vrot.slane %v667_v8, 9  ;;  %v757_v34 = vmax.f32 %v658_v58, %v4758_v54 }
 0x1e4   :  { %v834_v19 = vsel %vm823_vm2, %v804_v49, %v833_v57  ;;  %v4751_v22 = vrot.slane %v632_v11, 9  ;;  %v768_v27 = vrot.slane %v624_v12, %v5810_v55  ;;  %v776_v28 = vrot.slane %v631_v14, %v5810_v55 }
 0x1e5   :  { %v682_v45 = vrot.slane %v668_v18, %v5798_v48  ;;  %v683_v26 = vcombine.high %v675_v23, %v675_v23  ;;  %v835_v29 = vsel %vm825_vm4, %v808_v16, %v834_v19  ;;  %v758_v30 = vmax.f32 %v666_v62, %v4759_v9 }
 0x1e6   :  { %v822_v31 = vsel %vm821_vm1, %v772_v2, %v768_v27  ;;  %v812_v32 = vrot.slane %v675_v23, %v5810_v55  ;;  %v6136_v36 = vrot.slane %v610_v17, %v5798_v48  ;;  %v759_v37 = vmax.f32 %v665_v60, %v4760_v33 }
 0x1e7   :  { %v4752_v38 = vrot.slane %v631_v14, 9  ;;  %v4753_v56 = vrot.slane %v633_v21, 9  ;;  %v634_v39 = vcombine.high %v610_v17, %v610_v17  ;;  %v760_v40 = vmax.f32 %v667_v8, %v4761_v24 }
 0x1e8   :  { %v6138_v41 = vmax.f32 %v624_v12, %v4750_v20  ;;  %v816_v43 = vrot.slane %v683_v26, %v5810_v55  ;;  %v836_v1 = vsel %vm827_vm5, %v812_v32, %v835_v29  ;;  %v6142_v44 = vmax.f32 %v632_v11, %v4751_v22 }
 0x1e9   :  { %v780_v46 = vrot.slane %v633_v21, %v5810_v55  ;;  %v824_v50 = vsel %vm823_vm2, %v776_v28, %v822_v31  ;;  %v820_v61 = vrot.slane %v682_v45, %v5810_v55  ;;  %v684_v52 = vcombine.high %v682_v45, %v682_v45 }
 0x1ea   :  { %v4762_v42 = vrot.slane %v675_v23, 9  ;;  %v837_v53 = vsel %vm829_vm6, %v816_v43, %v836_v1  ;;  %v6150_v6 = vcombine.high %v6136_v36, %v6136_v36  ;;  %v6152_v3 = vmax.f32 %v631_v14, %v4752_v38 }
 0x1eb   :  { %v6154_v58 = vmax.f32 %v633_v21, %v4753_v56  ;;  %v838_v59 = vsel %vm831_vm8, %v820_v61, %v837_v53  ;;  %v6158_v12 = vrot.slane %v634_v39, %v5798_v48  ;;  %v4763_v60 = vrot.slane %v683_v26, 9 }
 0x1ec   :  { %v4764_v62 = vrot.slane %v682_v45, 9  ;;  %v842_v63 = vsel %vm140_vm3, -inf, %v838_v59  ;;  %v784_v0 = vrot.slane %v6136_v36, %v5810_v55  ;;  %v4754_v13 = vrot.slane %v6136_v36, 9 }
 0x1ed   :  { %v862_v8 = vcombine.high %v842_v63, %v842_v63  ;;  %v869_v10 = vrot.slane %v842_v63, %v5798_v48  ;;  %v826_v7 = vsel %vm825_vm4, %v780_v46, %v824_v50  ;;  %v4765_v4 = vrot.slane %v684_v52, 9 }
 0x1ee   :  { %v761_v49 = vmax.f32 %v675_v23, %v4762_v42  ;;  %v788_v11 = vrot.slane %v6150_v6, %v5810_v55  ;;  %v828_v14 = vsel %vm827_vm5, %v784_v0, %v826_v7  ;;  %v762_v16 = vmax.f32 %v683_v26, %v4763_v60 }
 0x1ef   :  { %v876_v15 = vrot.slane %v862_v8, %v5798_v48  ;;  %v877_v25 = vcombine.high %v869_v10, %v869_v10  ;;  %v883_v54 = vrot.slane %v869_v10, 1  ;;  %v6170_v57 = vmax.f32 %v757_v34, %v869_v10 }
 0x1f0   :  { %v763_v17 = vmax.f32 %v682_v45, %v4764_v62  ;;  %v6174_v9 = vcombine.high %v6158_v12, %v6158_v12  ;;  %v830_v19 = vsel %vm829_vm6, %v788_v11, %v828_v14  ;;  %v764_v18 = vmax.f32 %v684_v52, %v4765_v4 }
 0x1f1   :  { %v878_v20 = vcombine.high %v876_v15, %v876_v15  ;;  %v884_v2 = vrot.slane %v877_v25, 1  ;;  %v885_v33 = vrot.slane %v876_v15, 1  ;;  %v6177_v21 = vmax.f32 %v758_v30, %v883_v54 }
 0x1f2   :  { %v6179_v23 = vmax.f32 %v759_v37, %v877_v25  ;;  %v6181_v24 = vmax.f32 %v761_v49, %v876_v15  ;;  %v4755_v34 = vrot.slane %v6150_v6, 9  ;;  %v1266_v26 = vrot.slane %v6170_v57, %v5805_v51 }
 0x1f3   :  { %v886_v22 = vrot.slane %v878_v20, 1  ;;  %v6184_v27 = vmax.f32 %v760_v40, %v884_v2  ;;  %v6186_v28 = vmax.f32 %v762_v16, %v885_v33  ;;  %v6188_v45 = vmax.f32 %v763_v17, %v878_v20 }
 0x1f4   :  { %v1270_v29 = vrot.slane %v6177_v21, %v5805_v51  ;;  %v1274_v30 = vrot.slane %v6179_v23, %v5805_v51  ;;  %v1332_v31 = vmul.f32 %v6177_v21, %v6177_v21  ;;  %v1331_v38 = vmul.f32 %v6170_v57, %v6170_v57 }
 0x1f5   :  { %v6198_v32 = vmax.f32 %v764_v18, %v886_v22  ;;  %v1278_v37 = vrot.slane %v6184_v27, %v5805_v51  ;;  %v4756_v56 = vrot.slane %v6158_v12, 9  ;;  %v1333_v40 = vmul.f32 %v6179_v23, %v6179_v23 }
 0x1f6   :  { %v1303_v39 = vsel %vm1295_vm11, %v1270_v29, %v1266_v26  ;;  %v1334_v43 = vmul.f32 %v6184_v27, %v6184_v27  ;;  %v792_v1 = vrot.slane %v6158_v12, %v5810_v55  ;;  %v1282_v46 = vrot.slane %v6181_v24, %v5805_v51 }
 0x1f7   :  { %v1286_v50 = vrot.slane %v6186_v28, %v5805_v51  ;;  %v1290_v61 = vrot.slane %v6188_v45, %v5805_v51  ;;  %v1304_v52 = vsel %vm821_vm1, %v1274_v30, %v1303_v39  ;;  %v1335_v53 = vmul.f32 %v6181_v24, %v6181_v24 }
 0x1f8   :  { %v1305_v42 = vsel %vm823_vm2, %v1278_v37, %v1304_v52  ;;  %v1336_v59 = vmul.f32 %v6186_v28, %v6186_v28  ;;  %v1394_v60 = vrot.slane %v1332_v31, %v5805_v51  ;;  %v1390_v63 = vrot.slane %v1331_v38, %v5805_v51 }
 0x1f9   :  { %v1306_v62 = vsel %vm825_vm4, %v1282_v46, %v1305_v42  ;;  %v1398_v0 = vrot.slane %v1333_v40, %v5805_v51  ;;  %v1402_v8 = vrot.slane %v1334_v43, %v5805_v51  ;;  %v1294_v10 = vrot.slane %v6198_v32, %v5805_v51 }
 0x1fa   :  { %v1307_v7 = vsel %vm827_vm5, %v1286_v50, %v1306_v62  ;;  %v1337_v4 = vmul.f32 %v6188_v45, %v6188_v45  ;;  %v1338_v49 = vmul.f32 %v6198_v32, %v6198_v32  ;;  %v1426_v14 = vsel %vm1295_vm11, %v1394_v60, %v1390_v63 }
 0x1fb   :  { %v1308_v11 = vsel %vm829_vm6, %v1290_v61, %v1307_v7  ;;  %v4757_v15 = vrot.slane %v6174_v9, 9  ;;  %v832_v25 = vsel %vm831_vm8, %v792_v1, %v830_v19  ;;  %v1406_v16 = vrot.slane %v1335_v53, %v5805_v51 }
 0x1fc   :  { %v1309_v54 = vsel %vm831_vm8, %v1294_v10, %v1308_v11  ;;  %v1427_v17 = vsel %vm821_vm1, %v1398_v0, %v1426_v14  ;;  %v841_v20 = vsel %vm140_vm3, -inf, %v832_v25  ;;  %v1410_v2 = vrot.slane %v1336_v59, %v5805_v51 }
 0x1fd   :  { %v1428_v33 = vsel %vm823_vm2, %v1402_v8, %v1427_v17  ;;  %v845_v18 = vcombine.high %v841_v20, %v841_v20  ;;  %v852_v22 = vrot.slane %v841_v20, %v5798_v48  ;;  %v1414_v26 = vrot.slane %v1337_v4, %v5805_v51 }
 0x1fe   :  { %v1418_v29 = vrot.slane %v1338_v49, %v5805_v51  ;;  %v1429_v19 = vsel %vm825_vm4, %v1406_v16, %v1428_v33  ;;  %v753_v30 = vmax.f32 %v6136_v36, %v4754_v13  ;;  %v754_v43 = vmax.f32 %v6150_v6, %v4755_v34 }
 0x1ff   :  { %v1430_v31 = vsel %vm827_vm5, %v1410_v2, %v1429_v19  ;;  %v859_v37 = vrot.slane %v845_v18, %v5798_v48  ;;  %v860_v38 = vcombine.high %v852_v22, %v852_v22  ;;  %v879_v39 = vrot.slane %v852_v22, 1 }
 0x200   :  { %v1431_v40 = vsel %vm829_vm6, %v1414_v26, %v1430_v31  ;;  %v755_v1 = vmax.f32 %v6158_v12, %v4756_v56  ;;  %v6259_v46 = vmax.f32 %v6138_v41, %v852_v22  ;;  %v756_v13 = vmax.f32 %v6174_v9, %v4757_v15 }
 0x201   :  { %v1432_v50 = vsel %vm831_vm8, %v1418_v29, %v1431_v40  ;;  %v861_v61 = vcombine.high %v859_v37, %v859_v37  ;;  %v880_v52 = vrot.slane %v860_v38, 1  ;;  %v881_v36 = vrot.slane %v859_v37, 1 }
 0x202   :  { %v6264_v42 = vmax.f32 %v6142_v44, %v879_v39  ;;  %v6267_v53 = vmax.f32 %v6152_v3, %v860_v38  ;;  %v6269_v59 = vmax.f32 %v753_v30, %v859_v37  ;;  %v1234_v56 = vrot.slane %v6259_v46, %v5805_v51 }
 0x203   :  { %v882_v6 = vrot.slane %v861_v61, 1  ;;  %v6272_v12 = vmax.f32 %v6154_v58, %v880_v52  ;;  %v6274_v41 = vmax.f32 %v754_v43, %v881_v36  ;;  %v6276_v34 = vmax.f32 %v755_v1, %v861_v61 }
 0x204   :  { %v1238_v44 = vrot.slane %v6264_v42, %v5805_v51  ;;  %v1242_v3 = vrot.slane %v6267_v53, %v5805_v51  ;;  %v1323_v62 = vmul.f32 %v6259_v46, %v6259_v46  ;;  %v1324_v63 = vmul.f32 %v6264_v42, %v6264_v42 }
 0x205   :  { %v6284_v9 = vmax.f32 %v756_v13, %v882_v6  ;;  %v1246_v60 = vrot.slane %v6272_v12, %v5805_v51  ;;  %v1325_v0 = vmul.f32 %v6267_v53, %v6267_v53  ;;  %v1250_v8 = vrot.slane %v6269_v59, %v5805_v51 }
 0x206   :  { %v1296_v58 = vsel %vm1295_vm11, %v1238_v44, %v1234_v56  ;;  %v1254_v10 = vrot.slane %v6274_v41, %v5805_v51  ;;  %v1326_v4 = vmul.f32 %v6272_v12, %v6272_v12  ;;  %v1258_v49 = vrot.slane %v6276_v34, %v5805_v51 }
 0x207   :  { %v1297_v7 = vsel %vm821_vm1, %v1242_v3, %v1296_v58  ;;  %v1327_v14 = vmul.f32 %v6269_v59, %v6269_v59  ;;  %v1328_v15 = vmul.f32 %v6274_v41, %v6274_v41  ;;  %v1358_v16 = vrot.slane %v1323_v62, %v5805_v51 }
 0x208   :  { %v1298_v11 = vsel %vm823_vm2, %v1246_v60, %v1297_v7  ;;  %v1362_v17 = vrot.slane %v1324_v63, %v5805_v51  ;;  %v1366_v20 = vrot.slane %v1325_v0, %v5805_v51  ;;  %v1262_v2 = vrot.slane %v6284_v9, %v5805_v51 }
 0x209   :  { %v1299_v25 = vsel %vm825_vm4, %v1250_v8, %v1298_v11  ;;  %v1329_v18 = vmul.f32 %v6276_v34, %v6276_v34  ;;  %v1370_v22 = vrot.slane %v1326_v4, %v5805_v51  ;;  %v1313_v26 = vsel %vm345_vm9, %v1309_v54, 0.0 }
 0x20a   :  { %v1300_v33 = vsel %vm827_vm5, %v1254_v10, %v1299_v25  ;;  %v1330_v19 = vmul.f32 %v6284_v9, %v6284_v9  ;;  %v1419_v30 = vsel %vm1295_vm11, %v1362_v17, %v1358_v16  ;;  %v1374_v37 = vrot.slane %v1327_v14, %v5805_v51 }
 0x20b   :  { %v1301_v29 = vsel %vm829_vm6, %v1258_v49, %v1300_v33  ;;  %v1420_v38 = vsel %vm821_vm1, %v1366_v20, %v1419_v30  ;;  %v1378_v40 = vrot.slane %v1328_v15, %v5805_v51  ;;  %v1382_v1 = vrot.slane %v1329_v18, %v5805_v51 }
 0x20c   :  { %v1302_v31 = vsel %vm831_vm8, %v1262_v2, %v1301_v29  ;;  %v1421_v43 = vsel %vm823_vm2, %v1370_v22, %v1420_v38  ;;  %v1386_v52 = vrot.slane %v1330_v19, %v5805_v51  ;;  %v1436_v13 = vsel %vm345_vm9, %v1432_v50, 0.0  ;;  %v1448_v2 = vld [vmem:[%s7363_s7] sm:$0x1] }
 0x20d   :  { %v1312_v39 = vsel %vm345_vm9, %v1302_v31, 0.0  ;;  %v1422_v61 = vsel %vm825_vm4, %v1374_v37, %v1421_v43  ;;  %v1452_v22 = vld [vmem:[%s7364_s8] sm:$0x1] }
 0x20e   :  { %v1314_v54 = vadd.f32 %v1313_v26, %v1312_v39  ;;  %v1423_v36 = vsel %vm827_vm5, %v1378_v40, %v1422_v61 }
 0x20f   :  { %v1424_v56 = vsel %vm829_vm6, %v1382_v1, %v1423_v36 }
 0x210   :  { %v1315_v6 = vrot.slane %v1314_v54, 4  ;;  %v1425_v44 = vsel %vm831_vm8, %v1386_v52, %v1424_v56 }
 0x211   :  { %v1435_v60 = vsel %vm345_vm9, %v1425_v44, 0.0 }
 0x212   :  { %v1316_v3 = vadd.f32 %v1315_v6, %v1314_v54  ;;  %v1437_v58 = vadd.f32 %v1436_v13, %v1435_v60 }
 0x214   :  { %v1317_v62 = vrot.slane %v1316_v3, 2  ;;  %v1438_v63 = vrot.slane %v1437_v58, 4 }
 0x216   :  { %v1318_v0 = vadd.f32 %v1317_v62, %v1316_v3  ;;  %v1439_v8 = vadd.f32 %v1438_v63, %v1437_v58 }
 0x218   :  { %v1319_v10 = vrot.slane %v1318_v0, 1  ;;  %v1440_v7 = vrot.slane %v1439_v8, 2 }
 0x21a   :  { %v1320_v4 = vadd.f32 %v1319_v10, %v1318_v0  ;;  %v1441_v49 = vadd.f32 %v1440_v7, %v1439_v8 }
 0x21c   :  { %v1322_v11 = vmul.f32 0.0625, %v1320_v4  ;;  %v1442_v14 = vrot.slane %v1441_v49, 1 }
 0x21e   :  { %v1443_v50 = vadd.f32 %v1442_v14, %v1441_v49  ;;  %v1445_v15 = vmul.f32 %v1322_v11, %v1322_v11 }
 0x220   :  { %v1444_v25 = vmul.f32 0.0625, %v1443_v50 }
 0x222   :  { %v1446_v16 = vsub.f32 %v1444_v25, %v1445_v15 }
 0x224   :  { %v1447_v17 = vmax.f32 %v1446_v16, 0.0 }
 0x226   :  { %v1449_v20 = vadd.f32 1e-05, %v1447_v17 }
 0x228   :  { %5610 = vrsqrt.f32 %v1449_v20 }
 0x232   :  { %v5611_v33 = vpop.eup %5610 }
 0x233   :  { %v1451_v18 = vmul.f32 %v5611_v33, %v1448_v2 }
 0x235   :  { %v1453_v26 = vmul.f32 %v1451_v18, %v1322_v11  ;;  %v1459_v29 = vrot.slane %v1451_v18, %v5805_v51 }
 0x237   :  { %v1454_v19 = vsub.f32 %v1452_v22, %v1453_v26  ;;  %v1460_v30 = vcombine.high %v1459_v29, %v1459_v29  ;;  %v1467_v31 = vrot.slane %v1459_v29, %v5798_v48 }
 0x239   :  { %v1474_v37 = vrot.slane %v1460_v30, %v5798_v48  ;;  %v1489_v38 = vmul.f32 %v1467_v31, %v6259_v46  ;;  %v1509_v39 = vrot.slane %v1454_v19, %v5805_v51  ;;  %v1475_v40 = vcombine.high %v1467_v31, %v1467_v31 }
 0x23a   :  { %v1477_v43 = vrot.slane %v1467_v31, 1  ;;  %v1497_v54 = vmul.f32 %v1467_v31, %v6170_v57 }
 0x23b   :  { %v1493_v1 = vmul.f32 %v1474_v37, %v6269_v59  ;;  %v1510_v61 = vcombine.high %v1509_v39, %v1509_v39  ;;  %v1517_v52 = vrot.slane %v1509_v39, %v5798_v48  ;;  %v1476_v36 = vcombine.high %v1474_v37, %v1474_v37 }
 0x23c   :  { %v1478_v13 = vrot.slane %v1475_v40, 1  ;;  %v1479_v6 = vrot.slane %v1474_v37, 1  ;;  %v1490_v56 = vmul.f32 %v1477_v43, %v6264_v42  ;;  %v1491_v44 = vmul.f32 %v1475_v40, %v6267_v53 }
 0x23d   :  { %v1524_v46 = vrot.slane %v1510_v61, %v5798_v48  ;;  %v1480_v3 = vrot.slane %v1476_v36, 1  ;;  %v1495_v60 = vmul.f32 %v1476_v36, %v6276_v34  ;;  %v1498_v58 = vmul.f32 %v1477_v43, %v6177_v21 }
 0x23e   :  { %v1492_v57 = vmul.f32 %v1478_v13, %v6272_v12  ;;  %v1494_v59 = vmul.f32 %v1479_v6, %v6274_v41  ;;  %v1499_v62 = vmul.f32 %v1475_v40, %v6179_v23  ;;  %v1500_v63 = vmul.f32 %v1478_v13, %v6184_v27 }
 0x23f   :  { %v1543_v0 = vadd.f32 %v1524_v46, %v1493_v1  ;;  %v1496_v42 = vmul.f32 %v1480_v3, %v6284_v9  ;;  %v1501_v53 = vmul.f32 %v1474_v37, %v6181_v24  ;;  %v1502_v8 = vmul.f32 %v1479_v6, %v6186_v28 }
 0x240   :  { %v1503_v10 = vmul.f32 %v1476_v36, %v6188_v45  ;;  %v1504_v34 = vmul.f32 %v1480_v3, %v6198_v32  ;;  %v1525_v21 = vcombine.high %v1517_v52, %v1517_v52  ;;  %v1526_v7 = vcombine.high %v1524_v46, %v1524_v46 }
 0x241   :  { %v6367_v12 = vrot.slane %v1543_v0, %v5805_v51  ;;  %v1527_v41 = vrot.slane %v1517_v52, 1  ;;  %v1529_v23 = vrot.slane %v1524_v46, 1  ;;  %v6369_v4 = vadd.f32 %v1517_v52, %v1489_v38 }
 0x242   :  { %v1528_v27 = vrot.slane %v1525_v21, 1  ;;  %v1530_v49 = vrot.slane %v1526_v7, 1  ;;  %v6371_v9 = vadd.f32 %v1525_v21, %v1491_v44  ;;  %v6373_v24 = vadd.f32 %v1526_v7, %v1495_v60 }
 0x243   :  { %v6375_v28 = vadd.f32 %v1527_v41, %v1490_v56  ;;  %v6377_v45 = vadd.f32 %v1529_v23, %v1494_v59  ;;  %v6379_v32 = vadd.f32 %v1517_v52, %v1497_v54  ;;  %v6381_v11 = vadd.f32 %v1527_v41, %v1498_v58 }
 0x244   :  { %v6383_v14 = vadd.f32 %v1528_v27, %v1492_v57  ;;  %v6385_v50 = vadd.f32 %v1530_v49, %v1496_v42  ;;  %v6387_v15 = vadd.f32 %v1525_v21, %v1499_v62  ;;  %v6389_v25 = vadd.f32 %v1528_v27, %v1500_v63 }
 0x245   :  { %v6391_v16 = vadd.f32 %v1524_v46, %v1501_v53  ;;  %v6393_v17 = vadd.f32 %v1529_v23, %v1502_v8  ;;  %v6395_v20 = vadd.f32 %v1526_v7, %v1503_v10  ;;  %v6397_v2 = vadd.f32 %v1530_v49, %v1504_v34 }
 0x246   :  { %v1678_v33 = vpack.c.bf16 %v6369_v4, %v6369_v4  ;;  %v1679_v18 = vpack.c.bf16 %v6375_v28, %v6375_v28  ;;  %v1680_v22 = vpack.c.bf16 %v6371_v9, %v6371_v9  ;;  %v1681_v26 = vpack.c.bf16 %v6383_v14, %v6383_v14 }
 0x247   :  { %v1682_v29 = vpack.c.bf16 %v1543_v0, %v1543_v0  ;;  %v1683_v19 = vpack.c.bf16 %v6377_v45, %v6377_v45  ;;  %v1684_v30 = vpack.c.bf16 %v6373_v24, %v6373_v24  ;;  %v1685_v31 = vpack.c.bf16 %v6385_v50, %v6385_v50 }
 0x248   :  { %v1686_v37 = vpack.c.bf16 %v6379_v32, %v6379_v32  ;;  %v1687_v38 = vpack.c.bf16 %v6381_v11, %v6381_v11  ;;  %v1688_v39 = vpack.c.bf16 %v6387_v15, %v6387_v15  ;;  %v1689_v40 = vpack.c.bf16 %v6389_v25, %v6389_v25 }
 0x249   :  { %v1690_v43 = vpack.c.bf16 %v6391_v16, %v6391_v16  ;;  %v1691_v54 = vpack.c.bf16 %v6393_v17, %v6393_v17  ;;  %v1692_v1 = vpack.c.bf16 %v6395_v20, %v6395_v20  ;;  %v1693_v61 = vpack.c.bf16 %v6397_v2, %v6397_v2 }
 0x24a   :  { %v1719_v52 = vunpack.c.l.b16 %v1678_v33  ;;  %v1720_v36 = vunpack.c.l.b16 %v1679_v18  ;;  %v1721_v13 = vunpack.c.l.b16 %v1680_v22  ;;  %v1722_v6 = vunpack.c.l.b16 %v1681_v26 }
 0x24b   :  { %v1723_v56 = vunpack.c.l.b16 %v1682_v29  ;;  %v1724_v44 = vunpack.c.l.b16 %v1683_v19  ;;  %v1725_v46 = vunpack.c.l.b16 %v1684_v30  ;;  %v1726_v3 = vunpack.c.l.b16 %v1685_v31 }
 0x24c   :  { %v1727_v60 = vunpack.c.l.b16 %v1686_v37  ;;  %v1728_v58 = vunpack.c.l.b16 %v1687_v38  ;;  %v1729_v57 = vunpack.c.l.b16 %v1688_v39  ;;  %v1730_v59 = vunpack.c.l.b16 %v1689_v40 }
 0x24d   :  { %v1731_v62 = vunpack.c.l.b16 %v1690_v43  ;;  %v1732_v63 = vunpack.c.l.b16 %v1691_v54  ;;  %v1733_v0 = vunpack.c.l.b16 %v1692_v1  ;;  %v1734_v42 = vunpack.c.l.b16 %v1693_v61 }
 0x24e   :  { %v1735_v53 = vrot.slane %v1720_v36, 7  ;;  %v1737_v8 = vrot.slane %v1721_v13, 6  ;;  %v1739_v10 = vrot.slane %v1722_v6, 5  ;;  %v1741_v34 = vrot.slane %v1723_v56, 4 }
 0x24f   :  { %v1743_v21 = vrot.slane %v1724_v44, 3  ;;  %v1745_v7 = vrot.slane %v1725_v46, 2  ;;  %v1747_v41 = vrot.slane %v1726_v3, 1  ;;  %v1749_v23 = vrot.slane %v1728_v58, 7  ;;  %v5360_v3 = vld [vmem:[%s7365_s9] sm:$0xff]  }
 0x250   :  { %v1736_v27 = vsel %vm1295_vm11, %v1735_v53, %v1719_v52  ;;  %v1751_v49 = vrot.slane %v1729_v57, 6  ;;  %v1753_v33 = vrot.slane %v1730_v59, 5  ;;  %v1755_v18 = vrot.slane %v1731_v62, 4  ;;  %v5361_v53 = vld [vmem:[%s7365_s9 + $0x8] sm:$0xff]  }
 0x251   :  { %v1738_v22 = vsel %vm821_vm1, %v1737_v8, %v1736_v27  ;;  %v1750_v26 = vsel %vm1295_vm11, %v1749_v23, %v1727_v60  ;;  %v1757_v29 = vrot.slane %v1732_v63, 3  ;;  %v1759_v19 = vrot.slane %v1733_v0, 2 }
 0x252   :  { %v1740_v30 = vsel %vm823_vm2, %v1739_v10, %v1738_v22  ;;  %v1752_v31 = vsel %vm821_vm1, %v1751_v49, %v1750_v26  ;;  %v1761_v37 = vrot.slane %v1734_v42, 1  ;;  %v1572_v38 = vrot.slane %v6369_v4, %v5805_v51  ;;  %v5362_v26 = vld [vmem:[%s7365_s9 + $0x10] sm:$0xff]  }
 0x253   :  { %v1742_v39 = vsel %vm825_vm4, %v1741_v34, %v1740_v30  ;;  %v1754_v40 = vsel %vm823_vm2, %v1753_v33, %v1752_v31  ;;  %v1576_v43 = vrot.slane %v6375_v28, %v5805_v51  ;;  %v1580_v54 = vrot.slane %v6371_v9, %v5805_v51 }
 0x254   :  { %v1744_v1 = vsel %vm827_vm5, %v1743_v21, %v1742_v39  ;;  %v1756_v61 = vsel %vm825_vm4, %v1755_v18, %v1754_v40  ;;  %v1584_v52 = vrot.slane %v6383_v14, %v5805_v51  ;;  %v1592_v36 = vrot.slane %v6377_v45, %v5805_v51  ;;  %v5364_v39 = vld [vmem:[%s7365_s9 + $0x40] sm:$0xff]   ;;  %v5365_v40 = vld [vmem:[%s7365_s9 + $0x48] sm:$0xff]  }
 0x255   :  { %v1746_v13 = vsel %vm829_vm6, %v1745_v7, %v1744_v1  ;;  %v1758_v6 = vsel %vm827_vm5, %v1757_v29, %v1756_v61  ;;  %v1596_v28 = vrot.slane %v6373_v24, %v5805_v51  ;;  %v1600_v9 = vrot.slane %v6379_v32, %v5805_v51  ;;  %v5368_v1 = vld [vmem:[%s7367_s11 + $0x40] sm:$0xff]  }
 0x256   :  { %v1748_v56 = vsel %vm831_vm8, %v1747_v41, %v1746_v13  ;;  %v1760_v44 = vsel %vm829_vm6, %v1759_v19, %v1758_v6  ;;  %v1604_v14 = vrot.slane %v6381_v11, %v5805_v51  ;;  %v1608_v45 = vrot.slane %v6387_v15, %v5805_v51  ;;  %v5370_v61 = vld [vmem:[%s7367_s11 + $0x80] sm:$0xff]   ;;  %v5372_v13 = vld [vmem:[%s7367_s11 + $0x88] sm:$0xff]   ;;  %v5373_v6 = vld [vmem:[%s7367_s11 + $0x58] sm:$0xff]  }
 0x257   :  { %v1762_v46 = vsel %vm831_vm8, %v1761_v37, %v1760_v44  ;;  %v1612_v24 = vrot.slane %v6389_v25, %v5805_v51  ;;  %v1616_v60 = vrot.slane %v6391_v16, %v5805_v51  ;;  %v1620_v58 = vrot.slane %v6393_v17, %v5805_v51  ;;  %5302 = vmatpush3.bf16.msra.mxu0 %v5370_v61  ;;  %v5377_v44 = vld [vmem:[%s7367_s11 + $0x68] sm:$0xff]  }
 0x258   :  { %v1763_v57 = vpack.c.b16 %v1762_v46, %v1748_v56  ;;  %v1624_v11 = vrot.slane %v6395_v20, %v5805_v51  ;;  %v1625_v15 = vsel %vm821_vm1, %v1576_v43, %v1572_v38  ;;  %v1631_v59 = vsel %vm821_vm1, %v1604_v14, %v1600_v9  ;;  %v5363_v38 = vld [vmem:[%s7365_s9 + $0x18] sm:$0xff]   ;;  %5303 = vmatprep.subr.bf16.mxu0 %v5640_v35  ;;  %v5375_v9 = vld [vmem:[%s7367_s11 + $0x60] sm:$0xff]   ;;  %v5380_v46 = vld [vmem:[%s7367_s11 + $0xa8] sm:$0xff]  }
 0x259   :  { %v1626_v62 = vsel %vm823_vm2, %v1580_v54, %v1625_v15  ;;  %v1632_v63 = vsel %vm823_vm2, %v1608_v45, %v1631_v59  ;;  %v1646_v25 = vrot.slane %v6385_v50, %v5805_v51  ;;  %v1650_v16 = vrot.slane %v6397_v2, %v5805_v51  ;;  %v5376_v56 = vld [vmem:[%s7367_s11 + $0x98] sm:$0xff]   ;;  %v5400_v61 = vld [vmem:[%s7371_s15 + $0x84] ss:$8 sps:$4 sm:$0xff]  }
 0x25a   :  { %5234 = vmatmul.mubr.msk.bf16.vlgmr.msra.gmra.mrb[0].mxu1 %vm345_vm9, %v1763_v57  ;;  %v1627_v17 = vsel %vm825_vm4, %v1584_v52, %v1626_v62  ;;  %v1633_v20 = vsel %vm825_vm4, %v1612_v24, %v1632_v63  ;;  %v1651_v0 = vsel %vm1295_vm11, %v1580_v54, %v1576_v43  ;;  %v1657_v42 = vsel %vm1295_vm11, %v1608_v45, %v1604_v14  ;;  %v5366_v43 = vld [vmem:[%s7365_s9 + $0x50] sm:$0xff]   ;;  %v5367_v54 = vld [vmem:[%s7365_s9 + $0x58] sm:$0xff]   ;;  %v5378_v14 = vld [vmem:[%s7367_s11 + $0xa0] sm:$0xff]  }
 0x25b   :  { %5238 = vmatpush3.bf16.msra.mxu1 %v5360_v3  ;;  %5245 = vmatprep.mubr.msk.bf16.mxu1 %vm5641_vm10, %v5640_v35  ;;  %v1628_v50 = vsel %vm827_vm5, %v6367_v12, %v1627_v17  ;;  %v1634_v2 = vsel %vm827_vm5, %v1616_v60, %v1633_v20  ;;  %v1652_v8 = vsel %vm821_vm1, %v1584_v52, %v1651_v0  ;;  %v5369_v52 = vld [vmem:[%s7367_s11 + $0x48] sm:$0xff]   ;;  %v5379_v45 = vld [vmem:[%s7367_s11 + $0x70] sm:$0xff]   ;;  %v5381_v3 = vld [vmem:[%s7367_s11 + $0x78] sm:$0xff]  }
 0x25c   :  { %5239 = vmatprep.subr.bf16.mxu1 %v5640_v35  ;;  %v1629_v10 = vsel %vm829_vm6, %v1592_v36, %v1628_v50  ;;  %v1635_v34 = vsel %vm829_vm6, %v1620_v58, %v1634_v2  ;;  %v1653_v21 = vsel %vm823_vm2, %v6367_v12, %v1652_v8  ;;  %v1658_v7 = vsel %vm821_vm1, %v1612_v24, %v1657_v42  ;;  %v5382_v24 = vld [vmem:[%s7367_s11 + $0xb0] sm:$0xff]   ;;  %v4813_v0 = vld [vmem:[%s7366_s10] ss:$0 sm:$0xff] }
 0x25d   :  { %v1630_v41 = vsel %vm831_vm8, %v1596_v28, %v1629_v10  ;;  %v1636_v23 = vsel %vm831_vm8, %v1624_v11, %v1635_v34  ;;  %v1654_v27 = vsel %vm825_vm4, %v1592_v36, %v1653_v21  ;;  %v1659_v49 = vsel %vm823_vm2, %v1616_v60, %v1658_v7  ;;  %v5371_v36 = vld [vmem:[%s7367_s11 + $0x50] sm:$0xff]   ;;  %5304 = vmatpush3.bf16.msra.mxu0 %v5372_v13  ;;  %v5384_v60 = vld [vmem:[%s7367_s11 + $0xb8] sm:$0xff]   ;;  %v5403_v13 = vld [vmem:[%s7371_s15 + $0x24] ss:$8 sps:$4 sm:$0xff]  }
 0x25e   :  { %v1639_v33 = vsel %vm140_vm3, %v6369_v4, %v1630_v41  ;;  %v1640_v18 = vsel %vm140_vm3, %v6379_v32, %v1636_v23  ;;  %v1655_v22 = vsel %vm827_vm5, %v1596_v28, %v1654_v27  ;;  %v1660_v12 = vsel %vm825_vm4, %v1620_v58, %v1659_v49  ;;  %v5374_v28 = vld [vmem:[%s7367_s11 + $0x90] sm:$0xff]   ;;  %5305 = vmatprep.subr.bf16.mxu0 %v5640_v35  ;;  %v5383_v27 = vld [vmem:[%s7367_s11] sm:$0xff]  }
 0x25f   :  { %5240 = vmatpush3.bf16.msra.mxu1 %v5361_v53  ;;  %v1669_v29 = vpack.c.bf16 %v1640_v18, %v1639_v33  ;;  %v1656_v19 = vsel %vm829_vm6, %v1646_v25, %v1655_v22  ;;  %v1661_v30 = vsel %vm827_vm5, %v1624_v11, %v1660_v12 }
 0x260   :  { %5241 = vmatprep.subr.bf16.mxu1 %v5640_v35  ;;  %v1662_v4 = vsel %vm829_vm6, %v1650_v16, %v1661_v30  ;;  %v1667_v32 = vsel %vm151_vm7, %v1656_v19, %v1646_v25  ;;  %v5385_v30 = vld [vmem:[%s7367_s11 + $0x8] sm:$0xff]  }
 0x261   :  { %v1668_v31 = vsel %vm151_vm7, %v1662_v4, %v1650_v16  ;;  %5306 = vmatpush3.bf16.msra.mxu0 %v5374_v28  ;;  %v5412_v28 = vld [vmem:[%s7371_s15 + $0xa4] ss:$8 sps:$4 sm:$0xff]  }
 0x262   :  { %v1900_v37 = vpack.c.bf16 %v1668_v31, %v1667_v32  ;;  %5307 = vmatprep.subr.bf16.mxu0 %v5640_v35  ;;  %v5386_v32 = vld [vmem:[%s7367_s11 + $0x10] sm:$0xff]   ;;  %v5387_v31 = vld [vmem:[%s7367_s11 + $0x18] sm:$0xff]  }
 0x263   :  { %5242 = vmatpush3.bf16.msra.mxu1 %v5362_v26 }
 0x264   :  { %5243 = vmatprep.subr.bf16.mxu1 %v5640_v35 }
 0x265   :  { %5308 = vmatpush3.bf16.msra.mxu0 %v5376_v56  ;;  %v5409_v56 = vld [vmem:[%s7371_s15 + $0x34] ss:$8 sps:$4 sm:$0xff]  }
 0x266   :  { %5309 = vmatprep.subr.bf16.mxu0 %v5640_v35 }
 0x267   :  { %5244 = vmatpush3.bf16.msra.mxu1 %v5363_v38  ;;  %v5389_v38 = vld [vmem:[%s7367_s11 + $0x28] sm:$0xff]  }
 0x268   :  { %5249 = vmatprep.subr.bf16.mxu1 %v5640_v35 }
 0x269   :  { %5310 = vmatpush3.bf16.msra.mxu0 %v5378_v14  ;;  %v5418_v14 = vld [vmem:[%s7371_s15 + $0xb4] ss:$8 sps:$4 sm:$0xff]  }
 0x26a   :  { %5246 = vmatmul.mubr.msk.bf16.vlgmr.msra.gmra.mrb[4].mxu1 %vm345_vm9, %v1669_v29  ;;  %5311 = vmatprep.subr.bf16.mxu0 %v5640_v35 }
 0x26b   :  { %5250 = vmatpush3.bf16.msra.mxu1 %v5364_v39  ;;  %5257 = vmatprep.mubr.msk.bf16.mxu1 %vm5641_vm10, %v5640_v35  ;;  %v5390_v39 = vld [vmem:[%s7367_s11 + $0x30] sm:$0xff]  }
 0x26c   :  { %5251 = vmatprep.subr.bf16.mxu1 %v5640_v35 }
 0x26d   :  { %5312 = vmatpush3.bf16.msra.mxu0 %v5380_v46  ;;  %v5415_v46 = vld [vmem:[%s7371_s15 + $0x44] ss:$8 sps:$4 sm:$0xff]  }
 0x26e   :  { %5313 = vmatprep.subr.bf16.mxu0 %v5640_v35 }
 0x26f   :  { %5252 = vmatpush3.bf16.msra.mxu1 %v5365_v40  ;;  %v5391_v40 = vld [vmem:[%s7367_s11 + $0x38] sm:$0xff]  }
 0x270   :  { %5253 = vmatprep.subr.bf16.mxu1 %v5640_v35 }
 0x271   :  { %5314 = vmatpush3.bf16.msra.mxu0 %v5382_v24  ;;  %v5424_v24 = vld [vmem:[%s7371_s15 + $0xc4] ss:$8 sps:$4 sm:$0xff]  }
 0x272   :  { %5315 = vmatprep.subr.bf16.mxu0 %v5640_v35 }
 0x273   :  { %5254 = vmatpush3.bf16.msra.mxu1 %v5366_v43  ;;  %v5392_v43 = vld [vmem:[%s7371_s15] ss:$8 sps:$4 sm:$0xff]  }
 0x274   :  { %5255 = vmatprep.subr.bf16.mxu1 %v5640_v35 }
 0x275   :  { %5316 = vmatpush3.bf16.msra.mxu0 %v5384_v60  ;;  %v5413_v60 = vld [vmem:[%s7371_s15 + $0x40] ss:$8 sps:$4 sm:$0xff]  }
 0x277   :  { %5256 = vmatpush3.bf16.msra.mxu1 %v5367_v54  ;;  %v5394_v54 = vld [vmem:[%s7371_s15 + $0x4] ss:$8 sps:$4 sm:$0xff]  }
 0x278   :  { %5261 = vmatprep.subr.bf16.mxu1 %v5640_v35  ;;  %3380 = vmatprep.subr.bf16.mxu0 %v5394_v54 }
 0x27a   :  { %5258 = vmatmul.mubr.msk.bf16.vlgmr.msra.gmra.mrb[8].mxu1 %vm345_vm9, %v1900_v37  ;;  %v5388_v37 = vld [vmem:[%s7367_s11 + $0x20] sm:$0xff]  }
 0x27b   :  { %5277 = vmatprep.mubr.msk.bf16.mxu1 %vm5641_vm10, %v5640_v35  ;;  %5262 = vmatpush3.bf16.msra.mxu1 %v5368_v1  ;;  %v5397_v1 = vld [vmem:[%s7371_s15 + $0x14] ss:$8 sps:$4 sm:$0xff]  }
 0x27c   :  { %5263 = vmatprep.subr.bf16.mxu1 %v5640_v35 }
 0x27f   :  { %5264 = vmatpush3.bf16.msra.mxu1 %v5369_v52  ;;  %v5395_v52 = vld [vmem:[%s7371_s15 + $0x10] ss:$8 sps:$4 sm:$0xff]  }
 0x280   :  { %5265 = vmatprep.subr.bf16.mxu1 %v5640_v35 }
 0x283   :  { %5266 = vmatpush3.bf16.msra.mxu1 %v5371_v36  ;;  %v5406_v36 = vld [vmem:[%s7371_s15 + $0x94] ss:$8 sps:$4 sm:$0xff]  }
 0x284   :  { %5267 = vmatprep.subr.bf16.mxu1 %v5640_v35 }
 0x287   :  { %5268 = vmatpush3.bf16.msra.mxu1 %v5373_v6  ;;  %v5404_v6 = vld [vmem:[%s7371_s15 + $0x90] ss:$8 sps:$4 sm:$0xff]  }
 0x288   :  { %5269 = vmatprep.subr.bf16.mxu1 %v5640_v35 }
 0x28b   :  { %5270 = vmatpush3.bf16.msra.mxu1 %v5375_v9  ;;  %v5401_v9 = vld [vmem:[%s7371_s15 + $0x20] ss:$8 sps:$4 sm:$0xff]  }
 0x28c   :  { %5271 = vmatprep.subr.bf16.mxu1 %v5640_v35 }
 0x28f   :  { %5272 = vmatpush3.bf16.msra.mxu1 %v5377_v44  ;;  %v5410_v44 = vld [vmem:[%s7371_s15 + $0xa0] ss:$8 sps:$4 sm:$0xff]  }
 0x290   :  { %5273 = vmatprep.subr.bf16.mxu1 %v5640_v35 }
 0x293   :  { %5274 = vmatpush3.bf16.msra.mxu1 %v5379_v45  ;;  %v5407_v45 = vld [vmem:[%s7371_s15 + $0x30] ss:$8 sps:$4 sm:$0xff]  }
 0x294   :  { %5275 = vmatprep.subr.bf16.mxu1 %v5640_v35 }
 0x297   :  { %5276 = vmatpush3.bf16.msra.mxu1 %v5381_v3  ;;  %v5416_v3 = vld [vmem:[%s7371_s15 + $0xb0] ss:$8 sps:$4 sm:$0xff]  }
 0x298   :  { %5281 = vmatprep.subr.bf16.mxu1 %v5640_v35 }
 0x32d   :  { %v1825_v58 = vpop.f32.mrb[0].mxu1 }
 0x32e   :  { %v5235_v57 = vpop.f32.mrb[1].mxu1 }
 0x32f   :  { %v1828_v11 = vpop.f32.mrb[2].mxu1  ;;  %v5422_v57 = vld [vmem:[%s7371_s15 + $0xc0] ss:$8 sps:$4 sm:$0xff]  }
 0x330   :  { %v5236_v15 = vpop.f32.mrb[3].mxu1 }
 0x331   :  { %v5419_v15 = vld [vmem:[%s7371_s15 + $0x50] ss:$8 sps:$4 sm:$0xff]  }
 0x33d   :  { %v1893_v59 = vpop.f32.mrb[4].mxu1 }
 0x33e   :  { %v1894_v62 = vadd.f32 %v1893_v59, %v1825_v58  ;;  %v5247_v63 = vpop.f32.mrb[5].mxu1  ;;  %v5421_v58 = vld [vmem:[%s7371_s15 + $0x54] ss:$8 sps:$4 sm:$0xff]   ;;  %v5427_v59 = vld [vmem:[%s7371_s15 + $0x64] ss:$8 sps:$4 sm:$0xff]  }
 0x33f   :  { %v1896_v25 = vpop.f32.mrb[6].mxu1  ;;  %v5436_v63 = vld [vmem:[%s7371_s15 + $0xe4] ss:$8 sps:$4 sm:$0xff]  }
 0x340   :  { %v1897_v16 = vadd.f32 %v1896_v25, %v1828_v11  ;;  %v5248_v17 = vpop.f32.mrb[7].mxu1  ;;  %v5430_v11 = vld [vmem:[%s7371_s15 + $0xd4] ss:$8 sps:$4 sm:$0xff]   ;;  %v5425_v25 = vld [vmem:[%s7371_s15 + $0x60] ss:$8 sps:$4 sm:$0xff]  }
 0x341   :  { %v5434_v17 = vld [vmem:[%s7371_s15 + $0xe0] ss:$8 sps:$4 sm:$0xff]  }
 0x34d   :  { %v1971_v20 = vpop.f32.mrb[8].mxu1 }
 0x34e   :  { %v1978_v42 = vadd.f32 %v1971_v20, %v1894_v62  ;;  %v5259_v53 = vpop.f32.mrb[9].mxu1  ;;  %v5428_v62 = vld [vmem:[%s7371_s15 + $0xd0] ss:$8 sps:$4 sm:$0xff]  }
 0x34f   :  { %v1974_v50 = vpop.f32.mrb[10].mxu1  ;;  %v5431_v20 = vld [vmem:[%s7371_s15 + $0x70] ss:$8 sps:$4 sm:$0xff]  }
 0x350   :  { %v1987_v2 = vadd.f32 %v4813_v0, %v1978_v42  ;;  %v1979_v8 = vadd.f32 %v1974_v50, %v1897_v16  ;;  %v5260_v10 = vpop.f32.mrb[11].mxu1  ;;  %v5433_v16 = vld [vmem:[%s7371_s15 + $0x74] ss:$8 sps:$4 sm:$0xff]   ;;  %v2353_v42 = vpop.permute.xlu1 %2352 }
 0x352   :  { %v1989_v34 = vmax.f32 %v1987_v2, 0.0  ;;  %v1988_v21 = vadd.f32 %v4813_v0, %v1979_v8  ;;  %v2341_v0 = vpop.permute.xlu0 %2340 }
 0x354   :  { %v1990_v7 = vmax.f32 %v1988_v21, 0.0  ;;  %v1999_v41 = vrot.slane %v1989_v34, 1  ;;  %v1993_v23 = vrot.slane %v1989_v34, 7  ;;  %v2449_v50 = vpop.permute.xlu1 %2448 }
 0x356   :  { %v2022_v49 = vpack.c.bf16 %v1990_v7, %v1989_v34  ;;  %v2000_v33 = vrot.slane %v1990_v7, 1  ;;  %v1994_v18 = vrot.slane %v1990_v7, 7  ;;  %v2003_v22 = vsel %vm151_vm7, %v1999_v41, %v1989_v34  ;;  %v2437_v53 = vpop.permute.xlu0 %2436 }
 0x357   :  { %v1997_v26 = vsel %vm140_vm3, %v1989_v34, %v1993_v23  ;;  %v5437_v23 = vld [vmem:[%s7371_s15 + $0xf0] ss:$8 sps:$4 sm:$0xff]  }
 0x358   :  { %5278 = vmatmul.mubr.bf16.vlgmr.msra.gmra.mrb[12].mxu1 %v2022_v49  ;;  %v2004_v12 = vsel %vm151_vm7, %v2000_v33, %v1990_v7  ;;  %v1998_v29 = vsel %vm140_vm3, %v1990_v7, %v1994_v18  ;;  %v2461_v10 = vpop.permute.xlu1 %2460  ;;  %v5442_v33 = vld [vmem:[%s7371_s15 + $0x104] ss:$8 sps:$4 sm:$0xff]  }
 0x359   :  { %5282 = vmatpush3.bf16.msra.mxu1 %v5383_v27  ;;  %v2218_v19 = vpack.c.bf16 %v2004_v12, %v2003_v22  ;;  %5297 = vmatprep.mubr.msk.bf16.mxu1 %vm5641_vm10, %v5640_v35  ;;  %v2005_v4 = vpack.c.bf16 %v1998_v29, %v1997_v26  ;;  %v5439_v27 = vld [vmem:[%s7371_s15 + $0xf4] ss:$8 sps:$4 sm:$0xff]   ;;  %v5642_v29 = vmov 269488144  }
 0x35a   :  { %5283 = vmatprep.subr.bf16.mxu1 %v5640_v35  ;;  %v2365_v2 = vpop.permute.xlu0 %2364 }
 0x35b   :  { %5318 = vmatmul.mubr.bf16.vlgmr.msra.gmra.mrb[4].mxu0 %v2218_v19  ;;  %v2344_v19 = vunpack.c.l.s4 %v5642_v29 }
 0x35c   :  { %3412 = vmatprep.mubr.bf16.mxu0 %v5638_v5  ;;  %3381 = vmatpush1.bf16.msra.mxu0 %v5392_v43  ;;  %v2473_v26 = vpop.permute.xlu1 %2472 }
 0x35d   :  { %5284 = vmatpush3.bf16.msra.mxu1 %v5385_v30  ;;  %3382 = vmatprep.subr.bf16.mxu0 %v5397_v1 }
 0x35e   :  { %5285 = vmatprep.subr.bf16.mxu1 %v5640_v35  ;;  %v2377_v18 = vpop.permute.xlu0 %2376 }
 0x360   :  { %3383 = vmatpush1.bf16.msra.mxu0 %v5395_v52 }
 0x361   :  { %5286 = vmatpush3.bf16.msra.mxu1 %v5386_v32  ;;  %3384 = vmatprep.subr.bf16.mxu0 %v5403_v13  ;;  %v2345_v32 = vunpack.c.0.s8 %v2344_v19 }
 0x362   :  { %5287 = vmatprep.subr.bf16.mxu1 %v5640_v35  ;;  %v2389_v30 = vpop.permute.xlu0 %2388 }
 0x364   :  { %3385 = vmatpush1.bf16.msra.mxu0 %v5401_v9 }
 0x365   :  { %5288 = vmatpush3.bf16.msra.mxu1 %v5387_v31  ;;  %3386 = vmatprep.subr.bf16.mxu0 %v5409_v56 }
 0x366   :  { %5289 = vmatprep.subr.bf16.mxu1 %v5640_v35  ;;  %v2401_v31 = vpop.permute.xlu0 %2400 }
 0x368   :  { %3387 = vmatpush1.bf16.msra.mxu0 %v5407_v45 }
 0x369   :  { %5290 = vmatpush3.bf16.msra.mxu1 %v5388_v37  ;;  %3388 = vmatprep.subr.bf16.mxu0 %v5415_v46  ;;  %v6755_v37 = vsub.s32 %v2345_v32, %v5795_v47 }
 0x36a   :  { %5291 = vmatprep.subr.bf16.mxu1 %v5640_v35  ;;  %v2413_v43 = vpop.permute.xlu0 %2412 }
 0x36b   :  { %v2457_v54 = vrot.slane %v2449_v50, %v6755_v37  ;;  %v2445_v1 = vrot.slane %v2437_v53, %v6755_v37  ;;  %v2469_v13 = vrot.slane %v2461_v10, %v6755_v37  ;;  %v2397_v56 = vrot.slane %v2389_v30, %v6755_v37 }
 0x36c   :  { %3389 = vmatpush1.bf16.msra.mxu0 %v5413_v60  ;;  %v2481_v45 = vrot.slane %v2473_v26, %v6755_v37  ;;  %v2409_v46 = vrot.slane %v2401_v31, %v6755_v37  ;;  %v2421_v60 = vrot.slane %v2413_v43, %v6755_v37 }
 0x36d   :  { %5292 = vmatpush3.bf16.msra.mxu1 %v5389_v38  ;;  %3390 = vmatprep.subr.bf16.mxu0 %v5421_v58  ;;  %v2581_v9 = vrot.slane %v2445_v1, %v5805_v51 }
 0x36e   :  { %5293 = vmatprep.subr.bf16.mxu1 %v5640_v35  ;;  %v2569_v53 = vrot.slane %v2409_v46, %v5805_v51 }
 0x370   :  { %3391 = vmatpush1.bf16.msra.mxu0 %v5419_v15 }
 0x371   :  { %5294 = vmatpush3.bf16.msra.mxu1 %v5390_v39  ;;  %3392 = vmatprep.subr.bf16.mxu0 %v5427_v59  ;;  %v2361_v39 = vrot.slane %v2353_v42, %v6755_v37  ;;  %v2593_v42 = vrot.slane %v2481_v45, %v5805_v51 }
 0x372   :  { %5295 = vmatprep.subr.bf16.mxu1 %v5640_v35  ;;  %v5398_v35 = vld [vmem:[%s7371_s15 + $0x80] ss:$8 sps:$4 sm:$0xff]  }
 0x373   :  { %v2553_v52 = vrot.slane %v2361_v39, %v5805_v51 }
 0x374   :  { %3393 = vmatpush1.bf16.msra.mxu0 %v5425_v25  ;;  %v2565_v25 = vrot.slane %v2397_v56, %v5805_v51 }
 0x375   :  { %5296 = vmatpush3.bf16.msra.mxu1 %v5391_v40  ;;  %3394 = vmatprep.subr.bf16.mxu0 %v5433_v16  ;;  %v2349_v40 = vrot.slane %v2341_v0, %v6755_v37 }
 0x376   :  { %3259 = vmatprep.subr.bf16.mxu1 %v5400_v61  ;;  %v2373_v61 = vrot.slane %v2365_v2, %v6755_v37  ;;  %v4870_v2 = vld [vmem:[%s7368_s12] ss:$0 sm:$0xff] }
 0x378   :  { %5298 = vmatmul.mubr.bf16.vlgmr.msra.gmra.mrb[16].mxu1 %v2005_v4  ;;  %3395 = vmatpush1.bf16.msra.mxu0 %v5431_v20  ;;  %v2485_v4 = vpop.permute.xlu1 %2484 }
 0x379   :  { %3291 = vmatprep.mubr.bf16.mxu1 %v5638_v5  ;;  %3260 = vmatpush1.bf16.msra.mxu1 %v5398_v35 }
 0x37a   :  { %3261 = vmatprep.subr.bf16.mxu1 %v5406_v36  ;;  %v2549_v36 = vrot.slane %v2349_v40, %v5805_v51 }
 0x37c   :  { %v2497_v38 = vpop.permute.xlu1 %2496 }
 0x37d   :  { %3262 = vmatpush1.bf16.msra.mxu1 %v5404_v6  ;;  %v2385_v6 = vrot.slane %v2377_v18, %v6755_v37  ;;  %v2505_v15 = vrot.slane %v2497_v38, %v6755_v37 }
 0x37e   :  { %3263 = vmatprep.subr.bf16.mxu1 %v5412_v28  ;;  %v2585_v28 = vrot.slane %v2457_v54, %v5805_v51 }
 0x37f   :  { %v2601_v18 = vrot.slane %v2505_v15, %v5805_v51 }
 0x380   :  { %v2509_v35 = vpop.permute.xlu1 %2508 }
 0x381   :  { %3264 = vmatpush1.bf16.msra.mxu1 %v5410_v44  ;;  %v2425_v44 = vpop.permute.xlu0 %2424  ;;  %v2517_v16 = vrot.slane %v2509_v35, %v6755_v37 }
 0x382   :  { %3265 = vmatprep.subr.bf16.mxu1 %v5418_v14  ;;  %v2557_v14 = vrot.slane %v2373_v61, %v5805_v51  ;;  %v2433_v59 = vrot.slane %v2425_v44, %v6755_v37 }
 0x383   :  { %v2605_v29 = vrot.slane %v2517_v16, %v5805_v51 }
 0x384   :  { %v2521_v58 = vpop.permute.xlu1 %2520 }
 0x385   :  { %3266 = vmatpush1.bf16.msra.mxu1 %v5416_v3  ;;  %v2610_v3 = vsel %vm1295_vm11, %v2553_v52, %v2549_v36  ;;  %v2529_v50 = vrot.slane %v2521_v58, %v6755_v37 }
 0x386   :  { %3267 = vmatprep.subr.bf16.mxu1 %v5424_v24  ;;  %v2493_v24 = vrot.slane %v2485_v4, %v6755_v37  ;;  %v2611_v0 = vsel %vm821_vm1, %v2557_v14, %v2610_v3 }
 0x387   :  { %v2609_v4 = vrot.slane %v2529_v50, %v5805_v51 }
 0x389   :  { %3268 = vmatpush1.bf16.msra.mxu1 %v5422_v57  ;;  %v2589_v57 = vrot.slane %v2469_v13, %v5805_v51 }
 0x38a   :  { %3269 = vmatprep.subr.bf16.mxu1 %v5430_v11  ;;  %v2561_v11 = vrot.slane %v2385_v6, %v5805_v51 }
 0x38d   :  { %3270 = vmatpush1.bf16.msra.mxu1 %v5428_v62 }
 0x38e   :  { %3271 = vmatprep.subr.bf16.mxu1 %v5436_v63  ;;  %v2617_v63 = vsel %vm1295_vm11, %v2585_v28, %v2581_v9  ;;  %v5466_v28 = vld [vmem:[%s7373_s17 + $0x104] ss:$8 sps:$4 sm:$0xff]  }
 0x38f   :  { %3897 = vmatprep.subr.bf16.mxu0 %v5466_v28 }
 0x391   :  { %3272 = vmatpush1.bf16.msra.mxu1 %v5434_v17 }
 0x392   :  { %3273 = vmatprep.subr.bf16.mxu1 %v5439_v27 }
 0x395   :  { %3274 = vmatpush1.bf16.msra.mxu1 %v5437_v23 }
 0x396   :  { %3523 = vmatprep.subr.bf16.mxu1 %v5442_v33  ;;  %v2612_v33 = vsel %vm823_vm2, %v2561_v11, %v2611_v0 }
 0x397   :  { %v2613_v26 = vsel %vm825_vm4, %v2565_v25, %v2612_v33 }
 0x42b   :  { %v2122_v8 = vpop.f32.mrb[12].mxu1 }
 0x42c   :  { %v5279_v34 = vpop.f32.mrb[13].mxu1 }
 0x42d   :  { %v6741_v21 = vpop.f32.mrb[14].mxu1  ;;  %v2597_v34 = vrot.slane %v2493_v24, %v5805_v51 }
 0x42e   :  { %v5280_v7 = vpop.f32.mrb[15].mxu1  ;;  %v2318_v41 = vpop.f32.mrb[4].mxu0 }
 0x42f   :  { %v5319_v49 = vpop.f32.mrb[5].mxu0  ;;  %v2573_v7 = vrot.slane %v2421_v60, %v5805_v51 }
 0x430   :  { %v6752_v22 = vpop.f32.mrb[6].mxu0  ;;  %v2618_v49 = vsel %vm821_vm1, %v2589_v57, %v2617_v63 }
 0x431   :  { %v5320_v12 = vpop.f32.mrb[7].mxu0 }
 0x432   :  { %v2577_v12 = vrot.slane %v2433_v59, %v5805_v51 }
 0x44b   :  { %v2211_v62 = vpop.f32.mrb[16].mxu1 }
 0x44c   :  { %v2212_v17 = vadd.f32 %v2211_v62, %v2122_v8  ;;  %v5299_v20 = vpop.f32.mrb[17].mxu1 }
 0x44d   :  { %v2214_v10 = vpop.f32.mrb[18].mxu1 }
 0x44e   :  { %v2325_v23 = vadd.f32 %v2318_v41, %v2212_v17  ;;  %v2215_v8 = vadd.f32 %v2214_v10, %v6741_v21  ;;  %v5300_v27 = vpop.f32.mrb[19].mxu1  ;;  %v2619_v41 = vsel %vm823_vm2, %v2593_v42, %v2618_v49  ;;  %v2614_v21 = vsel %vm827_vm5, %v2569_v53, %v2613_v26 }
 0x44f   :  { %v2620_v32 = vsel %vm825_vm4, %v2597_v34, %v2619_v41  ;;  %v2615_v31 = vsel %vm829_vm6, %v2573_v7, %v2614_v21 }
 0x450   :  { %v2334_v19 = vadd.f32 %v4870_v2, %v2325_v23  ;;  %v2326_v30 = vadd.f32 %v6752_v22, %v2215_v8  ;;  %v2621_v40 = vsel %vm827_vm5, %v2601_v18, %v2620_v32  ;;  %v2616_v43 = vsel %vm831_vm8, %v2577_v12, %v2615_v31 }
 0x451   :  { %v2622_v54 = vsel %vm829_vm6, %v2605_v29, %v2621_v40 }
 0x452   :  { %v2336_v38 = vmax.f32 %v2334_v19, 0.0  ;;  %v2335_v39 = vadd.f32 %v4870_v2, %v2326_v30  ;;  %v2623_v35 = vsel %vm831_vm8, %v2609_v4, %v2622_v54 }
 0x454   :  { %v2626_v1 = vadd.f32 %v2616_v43, %v2336_v38  ;;  %v2337_v22 = vmax.f32 %v2335_v39, 0.0 }
 0x456   :  { %v2630_v61 = vcombine.high %v2626_v1, %v2626_v1  ;;  %v2637_v52 = vrot.slane %v2626_v1, %v5798_v48  ;;  %v2627_v36 = vadd.f32 %v2623_v35, %v2337_v22 }
 0x458   :  { %v2644_v13 = vrot.slane %v2630_v61, %v5798_v48  ;;  %v2645_v6 = vcombine.high %v2637_v52, %v2637_v52  ;;  %v2647_v9 = vcombine.high %v2627_v36, %v2627_v36  ;;  %v2654_v56 = vrot.slane %v2627_v36, %v5798_v48 }
 0x459   :  { %v4871_v44 = vrot.slane %v2637_v52, 9  ;;  %v2707_v45 = vrot.slane %v2637_v52, %v5810_v55 }
 0x45a   :  { %v2646_v14 = vcombine.high %v2644_v13, %v2644_v13  ;;  %v2711_v46 = vrot.slane %v2645_v6, %v5810_v55  ;;  %v2715_v3 = vrot.slane %v2644_v13, %v5810_v55  ;;  %v2661_v24 = vrot.slane %v2647_v9, %v5798_v48 }
 0x45b   :  { %v2662_v60 = vcombine.high %v2654_v56, %v2654_v56  ;;  %v4872_v58 = vrot.slane %v2645_v6, 9  ;;  %v4873_v57 = vrot.slane %v2644_v13, 9  ;;  %v2696_v62 = vmax.f32 %v2637_v52, %v4871_v44 }
 0x45c   :  { %v2728_v11 = vsel %vm821_vm1, %v2711_v46, %v2707_v45  ;;  %v4874_v59 = vrot.slane %v2646_v14, 9  ;;  %v2719_v16 = vrot.slane %v2654_v56, %v5810_v55  ;;  %v2727_v20 = vrot.slane %v2661_v24, %v5810_v55 }
 0x45d   :  { %v2729_v15 = vsel %vm823_vm2, %v2715_v3, %v2728_v11  ;;  %v2723_v17 = vrot.slane %v2662_v60, %v5810_v55  ;;  %v2697_v0 = vmax.f32 %v2645_v6, %v4872_v58  ;;  %v2698_v42 = vmax.f32 %v2644_v13, %v4873_v57 }
 0x45e   :  { %v2734_v63 = vsel %vm140_vm3, -inf, %v2729_v15  ;;  %v4875_v53 = vrot.slane %v2654_v56, 9  ;;  %v2663_v7 = vcombine.high %v2661_v24, %v2661_v24  ;;  %v4876_v23 = vrot.slane %v2662_v60, 9 }
 0x45f   :  { %v2744_v25 = vrot.slane %v2734_v63, %v5798_v48  ;;  %v2730_v34 = vsel %vm821_vm1, %v2723_v17, %v2719_v16  ;;  %v4877_v8 = vrot.slane %v2661_v24, 9  ;;  %v2699_v49 = vmax.f32 %v2646_v14, %v4874_v59 }
 0x460   :  { %v2731_v27 = vsel %vm823_vm2, %v2727_v20, %v2730_v34  ;;  %v2700_v19 = vmax.f32 %v2654_v56, %v4875_v53  ;;  %v4878_v38 = vrot.slane %v2663_v7, 9  ;;  %v2701_v39 = vmax.f32 %v2662_v60, %v4876_v23 }
 0x461   :  { %v2745_v50 = vcombine.high %v2744_v25, %v2744_v25  ;;  %v2754_v2 = vrot.slane %v2744_v25, 1  ;;  %v6825_v10 = vmax.f32 %v2696_v62, %v2744_v25  ;;  %v2735_v30 = vsel %vm140_vm3, -inf, %v2731_v27 }
 0x462   :  { %v2752_v40 = vrot.slane %v2735_v30, %v5798_v48  ;;  %v2702_v6 = vmax.f32 %v2661_v24, %v4877_v8  ;;  %v2703_v56 = vmax.f32 %v2663_v7, %v4878_v38 }
 0x463   :  { %v2755_v33 = vrot.slane %v2745_v50, 1  ;;  %v6829_v18 = vmax.f32 %v2697_v0, %v2754_v2  ;;  %v6831_v12 = vmax.f32 %v2698_v42, %v2745_v50  ;;  %v2863_v26 = vrot.slane %v6825_v10, %v5805_v51 }
 0x464   :  { %v2912_v29 = vmul.f32 %v6825_v10, %v6825_v10  ;;  %v2753_v52 = vcombine.high %v2752_v40, %v2752_v40  ;;  %v2756_v36 = vrot.slane %v2752_v40, 1  ;;  %v6858_v28 = vmax.f32 %v2700_v19, %v2752_v40 }
 0x465   :  { %v6838_v41 = vmax.f32 %v2699_v49, %v2755_v33  ;;  %v2867_v21 = vrot.slane %v6829_v18, %v5805_v51  ;;  %v2871_v4 = vrot.slane %v6831_v12, %v5805_v51  ;;  %v2913_v32 = vmul.f32 %v6829_v18, %v6829_v18 }
 0x466   :  { %v2914_v31 = vmul.f32 %v6831_v12, %v6831_v12  ;;  %v2931_v61 = vrot.slane %v2912_v29, %v5805_v51  ;;  %v2757_v44 = vrot.slane %v2753_v52, 1  ;;  %v6861_v14 = vmax.f32 %v2701_v39, %v2756_v36 }
 0x467   :  { %v2875_v43 = vrot.slane %v6838_v41, %v5805_v51  ;;  %v2892_v54 = vsel %vm1295_vm11, %v2867_v21, %v2863_v26  ;;  %v2915_v1 = vmul.f32 %v6838_v41, %v6838_v41  ;;  %v2935_v22 = vrot.slane %v2913_v32, %v5805_v51 }
 0x468   :  { %v2893_v35 = vsel %vm821_vm1, %v2871_v4, %v2892_v54  ;;  %v2939_v13 = vrot.slane %v2914_v31, %v5805_v51  ;;  %v6865_v3 = vmax.f32 %v2702_v6, %v2753_v52  ;;  %v2916_v60 = vmul.f32 %v6858_v28, %v6858_v28  ;;  %v2981_v6 = vld [vmem:[%s7369_s13] sm:$0x1] }
 0x469   :  { %v2960_v9 = vsel %vm1295_vm11, %v2935_v22, %v2931_v61  ;;  %v2894_v45 = vsel %vm823_vm2, %v2875_v43, %v2893_v35  ;;  %v2943_v46 = vrot.slane %v2915_v1, %v5805_v51  ;;  %v6869_v58 = vmax.f32 %v2703_v56, %v2757_v44  ;;  %v2985_v44 = vld [vmem:[%s7370_s14] sm:$0x1] }
 0x46a   :  { %v2879_v24 = vrot.slane %v6858_v28, %v5805_v51  ;;  %v2883_v57 = vrot.slane %v6861_v14, %v5805_v51  ;;  %v2917_v11 = vmul.f32 %v6861_v14, %v6861_v14  ;;  %v2961_v15 = vsel %vm821_vm1, %v2939_v13, %v2960_v9 }
 0x46b   :  { %v2887_v59 = vrot.slane %v6865_v3, %v5805_v51  ;;  %v2918_v62 = vmul.f32 %v6865_v3, %v6865_v3  ;;  %v2947_v63 = vrot.slane %v2916_v60, %v5805_v51  ;;  %v2891_v25 = vrot.slane %v6869_v58, %v5805_v51 }
 0x46c   :  { %v2895_v16 = vsel %vm1295_vm11, %v2883_v57, %v2879_v24  ;;  %v2919_v17 = vmul.f32 %v6869_v58, %v6869_v58  ;;  %v2951_v20 = vrot.slane %v2917_v11, %v5805_v51  ;;  %v2962_v53 = vsel %vm823_vm2, %v2943_v46, %v2961_v15 }
 0x46d   :  { %v2896_v0 = vsel %vm821_vm1, %v2887_v59, %v2895_v16  ;;  %v2955_v42 = vrot.slane %v2918_v62, %v5805_v51  ;;  %v2901_v7 = vsel %vm2900_vm12, %v2894_v45, 0.0  ;;  %v2968_v33 = vsel %vm2900_vm12, %v2962_v53, 0.0 }
 0x46e   :  { %v2897_v50 = vsel %vm823_vm2, %v2891_v25, %v2896_v0  ;;  %v2959_v2 = vrot.slane %v2919_v17, %v5805_v51  ;;  %v2963_v34 = vsel %vm1295_vm11, %v2951_v20, %v2947_v63 }
 0x46f   :  { %v2902_v23 = vsel %vm2900_vm12, %v2897_v50, 0.0  ;;  %v2964_v8 = vsel %vm821_vm1, %v2955_v42, %v2963_v34 }
 0x470   :  { %v2903_v27 = vadd.f32 %v2902_v23, %v2901_v7  ;;  %v2965_v49 = vsel %vm823_vm2, %v2959_v2, %v2964_v8 }
 0x471   :  { %v2969_v26 = vsel %vm2900_vm12, %v2965_v49, 0.0 }
 0x472   :  { %v2970_v29 = vadd.f32 %v2969_v26, %v2968_v33  ;;  %v2904_v19 = vrot.slane %v2903_v27, 4 }
 0x474   :  { %v2971_v30 = vrot.slane %v2970_v29, 4  ;;  %v2905_v21 = vadd.f32 %v2904_v19, %v2903_v27 }
 0x476   :  { %v2972_v4 = vadd.f32 %v2971_v30, %v2970_v29  ;;  %v2906_v32 = vrot.slane %v2905_v21, 2 }
 0x478   :  { %v2907_v31 = vadd.f32 %v2906_v32, %v2905_v21  ;;  %v2973_v38 = vrot.slane %v2972_v4, 2 }
 0x47a   :  { %v2908_v39 = vrot.slane %v2907_v31, 1  ;;  %v2974_v40 = vadd.f32 %v2973_v38, %v2972_v4 }
 0x47c   :  { %v2909_v43 = vadd.f32 %v2908_v39, %v2907_v31  ;;  %v2975_v54 = vrot.slane %v2974_v40, 1 }
 0x47e   :  { %v2911_v1 = vmul.f32 0.125, %v2909_v43  ;;  %v2976_v22 = vadd.f32 %v2975_v54, %v2974_v40 }
 0x480   :  { %v2977_v35 = vmul.f32 0.125, %v2976_v22  ;;  %v2978_v61 = vmul.f32 %v2911_v1, %v2911_v1 }
 0x482   :  { %v2979_v52 = vsub.f32 %v2977_v35, %v2978_v61 }
 0x484   :  { %v2980_v36 = vmax.f32 %v2979_v52, 0.0 }
 0x486   :  { %v2982_v13 = vadd.f32 1e-05, %v2980_v36 }
 0x488   :  { %5612 = vrsqrt.f32 %v2982_v13 }
 0x492   :  { %v5613_v9 = vpop.eup %5612 }
 0x493   :  { %v2984_v56 = vmul.f32 %v5613_v9, %v2981_v6  ;;  %v5464_v6 = vld [vmem:[%s7373_s17 + $0x100] ss:$8 sps:$4 sm:$0xff]  }
 0x495   :  { %v2986_v45 = vmul.f32 %v2984_v56, %v2911_v1  ;;  %v2992_v46 = vrot.slane %v2984_v56, %v5805_v51 }
 0x497   :  { %v2987_v60 = vsub.f32 %v2985_v44, %v2986_v45  ;;  %v2999_v24 = vrot.slane %v2992_v46, %v5798_v48  ;;  %v5469_v46 = vld [vmem:[%s7373_s17 + $0x114] ss:$8 sps:$4 sm:$0xff]  }
 0x499   :  { %v3000_v57 = vcombine.high %v2999_v24, %v2999_v24  ;;  %v3001_v11 = vrot.slane %v2999_v24, 1  ;;  %v3007_v15 = vmul.f32 %v2999_v24, %v6825_v10  ;;  %v3011_v59 = vmul.f32 %v2999_v24, %v6858_v28 }
 0x49a   :  { %v3019_v62 = vrot.slane %v2987_v60, %v5805_v51 }
 0x49b   :  { %v3008_v63 = vmul.f32 %v3001_v11, %v6829_v18  ;;  %v3009_v25 = vmul.f32 %v3000_v57, %v6831_v12  ;;  %v3012_v16 = vmul.f32 %v3001_v11, %v6861_v14  ;;  %v3013_v17 = vmul.f32 %v3000_v57, %v6865_v3 }
 0x49c   :  { %v3026_v20 = vrot.slane %v3019_v62, %v5798_v48  ;;  %v3002_v0 = vrot.slane %v3000_v57, 1 }
 0x49e   :  { %v3027_v42 = vcombine.high %v3026_v20, %v3026_v20  ;;  %v3028_v53 = vrot.slane %v3026_v20, 1  ;;  %v3034_v50 = vadd.f32 %v3026_v20, %v3007_v15  ;;  %v3038_v2 = vadd.f32 %v3026_v20, %v3011_v59 }
 0x49f   :  { %v3010_v10 = vmul.f32 %v3002_v0, %v6838_v41  ;;  %v3014_v28 = vmul.f32 %v3002_v0, %v6869_v58 }
 0x4a0   :  { %v3035_v34 = vadd.f32 %v3028_v53, %v3008_v63  ;;  %v3036_v7 = vadd.f32 %v3027_v42, %v3009_v25  ;;  %v3039_v18 = vadd.f32 %v3028_v53, %v3012_v16  ;;  %v3040_v23 = vadd.f32 %v3027_v42, %v3013_v17  ;;  %v5467_v17 = vld [vmem:[%s7373_s17 + $0x110] ss:$8 sps:$4 sm:$0xff]   ;;  %v5472_v53 = vld [vmem:[%s7373_s17 + $0x124] ss:$8 sps:$4 sm:$0xff]  }
 0x4a1   :  { %v3051_v12 = vrot.slane %v3034_v50, %v5805_v51  ;;  %v3063_v14 = vrot.slane %v3038_v2, %v5805_v51  ;;  %v3122_v3 = vpack.c.bf16 %v3034_v50, %v3034_v50  ;;  %v3126_v58 = vpack.c.bf16 %v3038_v2, %v3038_v2 }
 0x4a2   :  { %v3055_v8 = vrot.slane %v3035_v34, %v5805_v51  ;;  %v3059_v27 = vrot.slane %v3036_v7, %v5805_v51  ;;  %v3067_v49 = vrot.slane %v3039_v18, %v5805_v51  ;;  %v3071_v33 = vrot.slane %v3040_v23, %v5805_v51 }
 0x4a3   :  { %v3123_v41 = vpack.c.bf16 %v3035_v34, %v3035_v34  ;;  %v3124_v26 = vpack.c.bf16 %v3036_v7, %v3036_v7  ;;  %v3155_v29 = vunpack.c.l.b16 %v3122_v3  ;;  %v3029_v21 = vrot.slane %v3027_v42, 1  ;;  %v5478_v3 = vld [vmem:[%s7373_s17 + $0x134] ss:$8 sps:$4 sm:$0xff]  }
 0x4a4   :  { %v3072_v19 = vsel %vm821_vm1, %v3055_v8, %v3051_v12  ;;  %v3074_v30 = vsel %vm821_vm1, %v3067_v49, %v3063_v14  ;;  %v3127_v4 = vpack.c.bf16 %v3039_v18, %v3039_v18  ;;  %v3128_v52 = vpack.c.bf16 %v3040_v23, %v3040_v23  ;;  %v5470_v12 = vld [vmem:[%s7373_s17 + $0x120] ss:$8 sps:$4 sm:$0xff]  }
 0x4a5   :  { %v3073_v32 = vsel %vm823_vm2, %v3059_v27, %v3072_v19  ;;  %v3075_v31 = vsel %vm823_vm2, %v3071_v33, %v3074_v30  ;;  %v3156_v38 = vunpack.c.l.b16 %v3123_v41  ;;  %v3157_v39 = vunpack.c.l.b16 %v3124_v26  ;;  %v5476_v41 = vld [vmem:[%s7373_s17 + $0x130] ss:$8 sps:$4 sm:$0xff]   ;;  %v5484_v26 = vld [vmem:[%s7373_s17 + $0x144] ss:$8 sps:$4 sm:$0xff]   ;;  %v5482_v19 = vld [vmem:[%s7373_s17 + $0x140] ss:$8 sps:$4 sm:$0xff]  }
 0x4a6   :  { %v3078_v40 = vsel %vm140_vm3, %v3034_v50, %v3073_v32  ;;  %v3079_v43 = vsel %vm140_vm3, %v3038_v2, %v3075_v31  ;;  %v3037_v54 = vadd.f32 %v3029_v21, %v3010_v10  ;;  %v3041_v1 = vadd.f32 %v3029_v21, %v3014_v28  ;;  %v5446_v30 = vld [vmem:[%s7371_s15 + $0x120] ss:$8 sps:$4 sm:$0xff]   ;;  %v5449_v21 = vld [vmem:[%s7371_s15 + $0x130] ss:$8 sps:$4 sm:$0xff]   ;;  %v5457_v31 = vld [vmem:[%s7371_s15 + $0x154] ss:$8 sps:$4 sm:$0xff]  }
 0x4a7   :  { %v3103_v22 = vcombine.low %v3078_v40, %v3079_v43  ;;  %v3163_v35 = vrot.slane %v3156_v38, 7  ;;  %v3165_v61 = vrot.slane %v3157_v39, 6  ;;  %v3159_v56 = vunpack.c.l.b16 %v3126_v58  ;;  %v5443_v58 = vld [vmem:[%s7371_s15 + $0x110] ss:$8 sps:$4 sm:$0xff]   ;;  %v5452_v32 = vld [vmem:[%s7371_s15 + $0x140] ss:$8 sps:$4 sm:$0xff]  }
 0x4a8   :  { %v3125_v36 = vpack.c.bf16 %v3037_v54, %v3037_v54  ;;  %v3129_v13 = vpack.c.bf16 %v3041_v1, %v3041_v1  ;;  %v3085_v45 = vrot.slane %v3037_v54, %v5805_v51  ;;  %v3160_v24 = vunpack.c.l.b16 %v3127_v4  ;;  %v5454_v4 = vld [vmem:[%s7371_s15 + $0x144] ss:$8 sps:$4 sm:$0xff]   ;;  %v5455_v38 = vld [vmem:[%s7371_s15 + $0x150] ss:$8 sps:$4 sm:$0xff]   ;;  %v5458_v40 = vld [vmem:[%s7371_s15 + $0x160] ss:$8 sps:$4 sm:$0xff]  }
 0x4a9   :  { %v3105_v9 = vpack.c.bf16 %v3103_v22, %v3103_v22  ;;  %v3164_v44 = vsel %vm1295_vm11, %v3163_v35, %v3155_v29  ;;  %v3161_v11 = vunpack.c.l.b16 %v3128_v52  ;;  %v3089_v15 = vrot.slane %v3041_v1, %v5805_v51  ;;  %v5448_v29 = vld [vmem:[%s7371_s15 + $0x124] ss:$8 sps:$4 sm:$0xff]   ;;  %v5463_v43 = vld [vmem:[%s7371_s15 + $0x174] ss:$8 sps:$4 sm:$0xff]   ;;  %v5461_v54 = vld [vmem:[%s7371_s15 + $0x170] ss:$8 sps:$4 sm:$0xff]  }
 0x4aa   :  { %v3158_v60 = vunpack.c.l.b16 %v3125_v36  ;;  %v3166_v57 = vsel %vm821_vm1, %v3165_v61, %v3164_v44  ;;  %v3090_v59 = vsel %vm1295_vm11, %v3059_v27, %v3055_v8  ;;  %v3092_v62 = vsel %vm1295_vm11, %v3071_v33, %v3067_v49  ;;  %v5440_v8 = vld [vmem:[%s7371_s15 + $0x100] ss:$8 sps:$4 sm:$0xff]   ;;  %v5445_v33 = vld [vmem:[%s7371_s15 + $0x114] ss:$8 sps:$4 sm:$0xff]   ;;  %v5460_v39 = vld [vmem:[%s7371_s15 + $0x164] ss:$8 sps:$4 sm:$0xff]  }
 0x4ab   :  { %3413 = vmatmul.mubr.bf16.vlgmr.msra.gmra.mrb[8].mxu0 %v3105_v9  ;;  %v3162_v63 = vunpack.c.l.b16 %v3129_v13  ;;  %v3091_v16 = vsel %vm821_vm1, %v3085_v45, %v3090_v59  ;;  %v3169_v20 = vrot.slane %v3159_v56, 4  ;;  %v3093_v0 = vsel %vm821_vm1, %v3089_v15, %v3092_v62  ;;  %v5475_v1 = vld [vmem:[%s7373_s17 + $0x4] ss:$8 sps:$4 sm:$0xff]   ;;  %v5473_v22 = vld [vmem:[%s7373_s17] ss:$8 sps:$4 sm:$0xff]  }
 0x4ac   :  { %v3167_v25 = vrot.slane %v3158_v60, 5  ;;  %3898 = vmatpush1.bf16.msra.mxu0 %v5464_v6  ;;  %v3099_v42 = vsel %vm3098_vm13, %v3091_v16, %v3085_v45  ;;  %v3171_v2 = vrot.slane %v3160_v24, 3  ;;  %v3100_v10 = vsel %vm3098_vm13, %v3093_v0, %v3089_v15  ;;  %v5481_v61 = vld [vmem:[%s7373_s17 + $0x14] ss:$8 sps:$4 sm:$0xff]   ;;  %v5479_v52 = vld [vmem:[%s7373_s17 + $0x10] ss:$8 sps:$4 sm:$0xff]  }
 0x4ad   :  { %3899 = vmatprep.subr.bf16.mxu0 %v5469_v46  ;;  %v3173_v34 = vrot.slane %v3161_v11, 2  ;;  %v3423_v7 = vcombine.low %v3099_v42, %v3100_v10  ;;  %v3175_v23 = vrot.slane %v3162_v63, 1  ;;  %v5487_v36 = vld [vmem:[%s7373_s17 + $0x24] ss:$8 sps:$4 sm:$0xff]   ;;  %v5485_v13 = vld [vmem:[%s7373_s17 + $0x20] ss:$8 sps:$4 sm:$0xff]  }
 0x4ae   :  { %v3168_v50 = vsel %vm823_vm2, %v3167_v25, %v3166_v57  ;;  %v5488_v6 = vld [vmem:[%s7373_s17 + $0x150] ss:$8 sps:$4 sm:$0xff]   ;;  %v5490_v9 = vld [vmem:[%s7373_s17 + $0x154] ss:$8 sps:$4 sm:$0xff]   ;;  %v5494_v45 = vld [vmem:[%s7373_s17 + $0x160] ss:$8 sps:$4 sm:$0xff]  }
 0x4af   :  { %v3170_v28 = vsel %vm825_vm4, %v3169_v20, %v3168_v50  ;;  %v3425_v35 = vpack.c.bf16 %v3423_v7, %v3423_v7  ;;  %v5491_v56 = vld [vmem:[%s7373_s17 + $0x30] ss:$8 sps:$4 sm:$0xff]   ;;  %v5493_v44 = vld [vmem:[%s7373_s17 + $0x34] ss:$8 sps:$4 sm:$0xff]   ;;  %v5496_v46 = vld [vmem:[%s7373_s17 + $0x164] ss:$8 sps:$4 sm:$0xff]  }
 0x4b0   :  { %v3172_v18 = vsel %vm827_vm5, %v3171_v2, %v3170_v28  ;;  %3900 = vmatpush1.bf16.msra.mxu0 %v5467_v17  ;;  %v5497_v60 = vld [vmem:[%s7373_s17 + $0x40] ss:$8 sps:$4 sm:$0xff]   ;;  %v5499_v24 = vld [vmem:[%s7373_s17 + $0x44] ss:$8 sps:$4 sm:$0xff]   ;;  %v5502_v57 = vld [vmem:[%s7373_s17 + $0x174] ss:$8 sps:$4 sm:$0xff]  }
 0x4b1   :  { %v3174_v14 = vsel %vm829_vm6, %v3173_v34, %v3172_v18  ;;  %3901 = vmatprep.subr.bf16.mxu0 %v5472_v53  ;;  %v5505_v11 = vld [vmem:[%s7373_s17 + $0x54] ss:$8 sps:$4 sm:$0xff]   ;;  %v5500_v15 = vld [vmem:[%s7373_s17 + $0x170] ss:$8 sps:$4 sm:$0xff]   ;;  %v5508_v62 = vld [vmem:[%s7373_s17 + $0x184] ss:$8 sps:$4 sm:$0xff]  }
 0x4b2   :  { %v3176_v27 = vsel %vm831_vm8, %v3175_v23, %v3174_v14  ;;  %v5503_v59 = vld [vmem:[%s7373_s17 + $0x50] ss:$8 sps:$4 sm:$0xff]   ;;  %v5511_v63 = vld [vmem:[%s7373_s17 + $0x64] ss:$8 sps:$4 sm:$0xff]   ;;  %v5506_v25 = vld [vmem:[%s7373_s17 + $0x180] ss:$8 sps:$4 sm:$0xff]  }
 0x4b3   :  { %v3177_v49 = vpack.c.b16 %v3176_v27, %v3176_v27  ;;  %v5509_v16 = vld [vmem:[%s7373_s17 + $0x60] ss:$8 sps:$4 sm:$0xff]   ;;  %v5514_v17 = vld [vmem:[%s7373_s17 + $0x194] ss:$8 sps:$4 sm:$0xff]   ;;  %v5512_v0 = vld [vmem:[%s7373_s17 + $0x190] ss:$8 sps:$4 sm:$0xff]  }
 0x4b4   :  { %3902 = vmatpush1.bf16.msra.mxu0 %v5470_v12  ;;  %v5517_v20 = vld [vmem:[%s7373_s17 + $0x74] ss:$8 sps:$4 sm:$0xff]   ;;  %v5515_v42 = vld [vmem:[%s7373_s17 + $0x70] ss:$8 sps:$4 sm:$0xff]   ;;  %v5520_v53 = vld [vmem:[%s7373_s17 + $0x1a4] ss:$8 sps:$4 sm:$0xff]  }
 0x4b5   :  { %3292 = vmatmul.mubr.bf16.vlgmr.msra.gmra.mrb[20].mxu1 %v3177_v49  ;;  %3903 = vmatprep.subr.bf16.mxu0 %v5478_v3  ;;  %v5523_v50 = vld [vmem:[%s7373_s17 + $0x84] ss:$8 sps:$4 sm:$0xff]   ;;  %v5518_v2 = vld [vmem:[%s7373_s17 + $0x1a0] ss:$8 sps:$4 sm:$0xff]   ;;  %v5526_v28 = vld [vmem:[%s7373_s17 + $0x1b4] ss:$8 sps:$4 sm:$0xff]  }
 0x4b6   :  { %3524 = vmatpush1.bf16.msra.mxu1 %v5440_v8  ;;  %3555 = vmatprep.mubr.bf16.mxu1 %v5638_v5  ;;  %v5451_v5 = vld [vmem:[%s7371_s15 + $0x134] ss:$8 sps:$4 sm:$0xff]   ;;  %v5521_v10 = vld [vmem:[%s7373_s17 + $0x80] ss:$8 sps:$4 sm:$0xff]   ;;  %v5524_v7 = vld [vmem:[%s7373_s17 + $0x1b0] ss:$8 sps:$4 sm:$0xff]  }
 0x4b7   :  { %3525 = vmatprep.subr.bf16.mxu1 %v5445_v33  ;;  %v5529_v34 = vld [vmem:[%s7373_s17 + $0x94] ss:$8 sps:$4 sm:$0xff]   ;;  %v5527_v18 = vld [vmem:[%s7373_s17 + $0x90] ss:$8 sps:$4 sm:$0xff]   ;;  %v5532_v23 = vld [vmem:[%s7373_s17 + $0x1c4] ss:$8 sps:$4 sm:$0xff]  }
 0x4b8   :  { %3904 = vmatpush1.bf16.msra.mxu0 %v5476_v41  ;;  %v5535_v12 = vld [vmem:[%s7373_s17 + $0xa4] ss:$8 sps:$4 sm:$0xff]   ;;  %v5530_v14 = vld [vmem:[%s7373_s17 + $0x1c0] ss:$8 sps:$4 sm:$0xff]   ;;  %v5538_v8 = vld [vmem:[%s7373_s17 + $0x1d4] ss:$8 sps:$4 sm:$0xff]  }
 0x4b9   :  { %3905 = vmatprep.subr.bf16.mxu0 %v5484_v26  ;;  %v5533_v3 = vld [vmem:[%s7373_s17 + $0xa0] ss:$8 sps:$4 sm:$0xff]   ;;  %v5541_v27 = vld [vmem:[%s7373_s17 + $0xb4] ss:$8 sps:$4 sm:$0xff]   ;;  %v5536_v49 = vld [vmem:[%s7373_s17 + $0x1d0] ss:$8 sps:$4 sm:$0xff]  }
 0x4ba   :  { %3526 = vmatpush1.bf16.msra.mxu1 %v5443_v58  ;;  %v5539_v33 = vld [vmem:[%s7373_s17 + $0xb0] ss:$8 sps:$4 sm:$0xff]   ;;  %v5544_v41 = vld [vmem:[%s7373_s17 + $0x1e4] ss:$8 sps:$4 sm:$0xff]   ;;  %v5542_v58 = vld [vmem:[%s7373_s17 + $0x1e0] ss:$8 sps:$4 sm:$0xff]  }
 0x4bb   :  { %3527 = vmatprep.subr.bf16.mxu1 %v5448_v29  ;;  %v5547_v26 = vld [vmem:[%s7373_s17 + $0xc4] ss:$8 sps:$4 sm:$0xff]   ;;  %v5545_v29 = vld [vmem:[%s7373_s17 + $0xc0] ss:$8 sps:$4 sm:$0xff]  }
 0x4bc   :  { %3906 = vmatpush1.bf16.msra.mxu0 %v5482_v19  ;;  %v5550_v19 = vld [vmem:[%s7373_s17 + $0x1f4] ss:$8 sps:$4 sm:$0xff]  }
 0x4bd   :  { %3907 = vmatprep.subr.bf16.mxu0 %v5490_v9 }
 0x4be   :  { %3528 = vmatpush1.bf16.msra.mxu1 %v5446_v30  ;;  %v5553_v30 = vld [vmem:[%s7373_s17 + $0xd4] ss:$8 sps:$4 sm:$0xff]  }
 0x4bf   :  { %3529 = vmatprep.subr.bf16.mxu1 %v5451_v5  ;;  %v5548_v5 = vld [vmem:[%s7373_s17 + $0x1f0] ss:$8 sps:$4 sm:$0xff]  }
 0x4c0   :  { %3908 = vmatpush1.bf16.msra.mxu0 %v5488_v6  ;;  %v3566_v6 = vld [vmem:[%s7372_s16] sm:$0x3] }
 0x4c1   :  { %3909 = vmatprep.subr.bf16.mxu0 %v5496_v46  ;;  %v3571_v9 = vrot.slane %v3566_v6, %v5805_v51 }
 0x4c2   :  { %3530 = vmatpush1.bf16.msra.mxu1 %v5449_v21  ;;  %v5551_v21 = vld [vmem:[%s7373_s17 + $0xd0] ss:$8 sps:$4 sm:$0xff]  }
 0x4c3   :  { %3531 = vmatprep.subr.bf16.mxu1 %v5454_v4  ;;  %v5554_v4 = vld [vmem:[%s7373_s17 + $0xe0] ss:$8 sps:$4 sm:$0xff]  }
 0x4c4   :  { %3910 = vmatpush1.bf16.msra.mxu0 %v5494_v45 }
 0x4c5   :  { %3911 = vmatprep.subr.bf16.mxu0 %v5502_v57 }
 0x4c6   :  { %3532 = vmatpush1.bf16.msra.mxu1 %v5452_v32  ;;  %v5556_v32 = vld [vmem:[%s7373_s17 + $0xe4] ss:$8 sps:$4 sm:$0xff]  }
 0x4c7   :  { %3533 = vmatprep.subr.bf16.mxu1 %v5457_v31  ;;  %v5559_v31 = vld [vmem:[%s7373_s17 + $0x204] ss:$8 sps:$4 sm:$0xff]  }
 0x4c8   :  { %3912 = vmatpush1.bf16.msra.mxu0 %v5500_v15 }
 0x4c9   :  { %3913 = vmatprep.subr.bf16.mxu0 %v5508_v62 }
 0x4ca   :  { %3534 = vmatpush1.bf16.msra.mxu1 %v5455_v38  ;;  %v5562_v38 = vld [vmem:[%s7373_s17 + $0xf4] ss:$8 sps:$4 sm:$0xff]  }
 0x4cb   :  { %3535 = vmatprep.subr.bf16.mxu1 %v5460_v39  ;;  %v5560_v39 = vld [vmem:[%s7373_s17 + $0xf0] ss:$8 sps:$4 sm:$0xff]  }
 0x4cc   :  { %3914 = vmatpush1.bf16.msra.mxu0 %v5506_v25  ;;  %v3640_v25 = vsub.s32 7, %v5795_v47 }
 0x4cd   :  { %3915 = vmatprep.subr.bf16.mxu0 %v5514_v17 }
 0x4ce   :  { %3536 = vmatpush1.bf16.msra.mxu1 %v5458_v40 }
 0x4cf   :  { %3537 = vmatprep.subr.bf16.mxu1 %v5463_v43 }
 0x4d0   :  { %3916 = vmatpush1.bf16.msra.mxu0 %v5512_v0  ;;  %v5557_v0 = vld [vmem:[%s7373_s17 + $0x200] ss:$8 sps:$4 sm:$0xff]  }
 0x4d1   :  { %3917 = vmatprep.subr.bf16.mxu0 %v5520_v53 }
 0x4d2   :  { %3538 = vmatpush1.bf16.msra.mxu1 %v5461_v54 }
 0x4d3   :  { %4098 = vmatprep.subr.bf16.mxu1 %v5475_v1 }
 0x4d4   :  { %3918 = vmatpush1.bf16.msra.mxu0 %v5518_v2 }
 0x4d5   :  { %3556 = vmatmul.mubr.bf16.vlgmr.msra.gmra.mrb[24].mxu1 %v3425_v35  ;;  %3919 = vmatprep.subr.bf16.mxu0 %v5526_v28 }
 0x4d6   :  { %4099 = vmatpush1.bf16.msra.mxu1 %v5473_v22 }
 0x4d7   :  { %4100 = vmatprep.subr.bf16.mxu1 %v5481_v61 }
 0x4d8   :  { %3920 = vmatpush1.bf16.msra.mxu0 %v5524_v7 }
 0x4d9   :  { %3921 = vmatprep.subr.bf16.mxu0 %v5532_v23 }
 0x4da   :  { %4101 = vmatpush1.bf16.msra.mxu1 %v5479_v52 }
 0x4db   :  { %4102 = vmatprep.subr.bf16.mxu1 %v5487_v36 }
 0x4dc   :  { %3922 = vmatpush1.bf16.msra.mxu0 %v5530_v14 }
 0x4dd   :  { %3923 = vmatprep.subr.bf16.mxu0 %v5538_v8  ;;  %v5563_v8 = vld [vmem:[%s7373_s17 + $0x210] ss:$8 sps:$4 sm:$0xff]  }
 0x4de   :  { %4103 = vmatpush1.bf16.msra.mxu1 %v5485_v13 }
 0x4df   :  { %4104 = vmatprep.subr.bf16.mxu1 %v5493_v44  ;;  %v3575_v44 = vrot.slane %v3566_v6, %v5810_v55  ;;  %v5569_v6 = vld [vmem:[%s7373_s17 + $0x230] ss:$8 sps:$4 sm:$0xff]  }
 0x4e0   :  { %3924 = vmatpush1.bf16.msra.mxu0 %v5536_v49 }
 0x4e1   :  { %3925 = vmatprep.subr.bf16.mxu0 %v5544_v41 }
 0x4e2   :  { %4105 = vmatpush1.bf16.msra.mxu1 %v5491_v56 }
 0x4e3   :  { %4106 = vmatprep.subr.bf16.mxu1 %v5499_v24 }
 0x4e4   :  { %3926 = vmatpush1.bf16.msra.mxu0 %v5542_v58 }
 0x4e5   :  { %3927 = vmatprep.subr.bf16.mxu0 %v5550_v19 }
 0x4e6   :  { %4107 = vmatpush1.bf16.msra.mxu1 %v5497_v60 }
 0x4e7   :  { %4108 = vmatprep.subr.bf16.mxu1 %v5505_v11 }
 0x4e8   :  { %3928 = vmatpush1.bf16.msra.mxu0 %v5548_v5 }
 0x4e9   :  { %4338 = vmatprep.subr.bf16.mxu0 %v5559_v31 }
 0x4ea   :  { %4109 = vmatpush1.bf16.msra.mxu1 %v5503_v59 }
 0x4eb   :  { %4110 = vmatprep.subr.bf16.mxu1 %v5511_v63  ;;  %v3592_v63 = vsub.s32 4, %v5795_v47 }
 0x4ee   :  { %4111 = vmatpush1.bf16.msra.mxu1 %v5509_v16 }
 0x4ef   :  { %4112 = vmatprep.subr.bf16.mxu1 %v5517_v20 }
 0x4f2   :  { %4113 = vmatpush1.bf16.msra.mxu1 %v5515_v42 }
 0x4f3   :  { %4114 = vmatprep.subr.bf16.mxu1 %v5523_v50  ;;  %v5565_v50 = vld [vmem:[%s7373_s17 + $0x214] ss:$8 sps:$4 sm:$0xff]  }
 0x4f6   :  { %4115 = vmatpush1.bf16.msra.mxu1 %v5521_v10  ;;  %v7198_v10 = vsub.s32 3, %v5795_v47 }
 0x4f7   :  { %4116 = vmatprep.subr.bf16.mxu1 %v5529_v34 }
 0x4fa   :  { %4117 = vmatpush1.bf16.msra.mxu1 %v5527_v18 }
 0x4fb   :  { %4118 = vmatprep.subr.bf16.mxu1 %v5535_v12 }
 0x4fe   :  { %4119 = vmatpush1.bf16.msra.mxu1 %v5533_v3 }
 0x4ff   :  { %4120 = vmatprep.subr.bf16.mxu1 %v5541_v27 }
 0x502   :  { %4121 = vmatpush1.bf16.msra.mxu1 %v5539_v33 }
 0x503   :  { %4122 = vmatprep.subr.bf16.mxu1 %v5547_v26 }
 0x506   :  { %4123 = vmatpush1.bf16.msra.mxu1 %v5545_v29 }
 0x507   :  { %4124 = vmatprep.subr.bf16.mxu1 %v5553_v30  ;;  %v5568_v30 = vld [vmem:[%s7373_s17 + $0x224] ss:$8 sps:$4 sm:$0xff]  }
 0x50a   :  { %4125 = vmatpush1.bf16.msra.mxu1 %v5551_v21 }
 0x50b   :  { %4126 = vmatprep.subr.bf16.mxu1 %v5556_v32 }
 0x50e   :  { %4127 = vmatpush1.bf16.msra.mxu1 %v5554_v4 }
 0x50f   :  { %4128 = vmatprep.subr.bf16.mxu1 %v5562_v38 }
 0x512   :  { %4129 = vmatpush1.bf16.msra.mxu1 %v5560_v39 }
 0x57e   :  { %v3414_v40 = vpop.f32.mrb[8].mxu0 }
 0x57f   :  { %v3416_v43 = vpop.f32.mrb[9].mxu0 }
 0x580   :  { %v3418_v54 = vpop.f32.mrb[10].mxu0 }
 0x581   :  { %v3419_v1 = vpop.f32.mrb[11].mxu0 }
 0x588   :  { %v3293_v22 = vpop.f32.mrb[20].mxu1 }
 0x589   :  { %v3415_v35 = vadd.f32 %v3414_v40, %v3293_v22  ;;  %v3295_v61 = vpop.f32.mrb[21].mxu1  ;;  %v5566_v22 = vld [vmem:[%s7373_s17 + $0x220] ss:$8 sps:$4 sm:$0xff]  }
 0x58a   :  { %v3417_v52 = vadd.f32 %v3416_v43, %v3295_v61  ;;  %v3297_v36 = vpop.f32.mrb[22].mxu1 }
 0x58b   :  { %v3298_v13 = vpop.f32.mrb[23].mxu1 }
 0x5a8   :  { %v3557_v56 = vpop.f32.mrb[24].mxu1 }
 0x5a9   :  { %v3564_v45 = vadd.f32 %v3557_v56, %v3415_v35  ;;  %v3559_v46 = vpop.f32.mrb[25].mxu1  ;;  %v5571_v35 = vld [vmem:[%s7373_s17 + $0x234] ss:$8 sps:$4 sm:$0xff]   ;;  %v5572_v56 = vld [vmem:[%s7373_s17 + $0x240] ss:$8 sps:$4 sm:$0xff]  }
 0x5aa   :  { %v3565_v60 = vadd.f32 %v3559_v46, %v3417_v52  ;;  %v3561_v24 = vpop.f32.mrb[26].mxu1  ;;  %v5580_v46 = vld [vmem:[%s7373_s17 + $0x264] ss:$8 sps:$4 sm:$0xff]  }
 0x5ab   :  { %v3578_v57 = vadd.f32 %v3571_v9, %v3564_v45  ;;  %v3562_v11 = vpop.f32.mrb[27].mxu1  ;;  %v5574_v9 = vld [vmem:[%s7373_s17 + $0x244] ss:$8 sps:$4 sm:$0xff]   ;;  %v5575_v45 = vld [vmem:[%s7373_s17 + $0x250] ss:$8 sps:$4 sm:$0xff]  }
 0x5ac   :  { %v3579_v15 = vadd.f32 %v3575_v44, %v3565_v60  ;;  %v5577_v44 = vld [vmem:[%s7373_s17 + $0x254] ss:$8 sps:$4 sm:$0xff]   ;;  %v5578_v60 = vld [vmem:[%s7373_s17 + $0x260] ss:$8 sps:$4 sm:$0xff]   ;;  %v5586_v11 = vld [vmem:[%s7373_s17 + $0x284] ss:$8 sps:$4 sm:$0xff]  }
 0x5ad   :  { %v3580_v59 = vmax.f32 %v3578_v57, 0.0  ;;  %v5583_v24 = vld [vmem:[%s7373_s17 + $0x274] ss:$8 sps:$4 sm:$0xff]   ;;  %v5581_v57 = vld [vmem:[%s7373_s17 + $0x270] ss:$8 sps:$4 sm:$0xff]  }
 0x5ae   :  { %v3581_v62 = vmax.f32 %v3579_v15, 0.0  ;;  %v5584_v15 = vld [vmem:[%s7373_s17 + $0x280] ss:$8 sps:$4 sm:$0xff]  }
 0x5af   :  { %v3702_v53 = vpack.c.bf16 %v3580_v59, %v3580_v59 }
 0x5b0   :  { %v3584_v16 = vcombine.low %v3580_v59, %v3581_v62  ;;  %v3585_v17 = vcombine.high %v3580_v59, %v3581_v62  ;;  %v3703_v20 = vpack.c.bf16 %v3581_v62, %v3581_v62  ;;  %v4959_v42 = vcombine.low %v3581_v62, %v3581_v62  ;;  %v5589_v59 = vld [vmem:[%s7373_s17 + $0x294] ss:$8 sps:$4 sm:$0xff]  }
 0x5b1   :  { %v4960_v2 = vcombine.high %v3581_v62, %v3581_v62  ;;  %v5587_v62 = vld [vmem:[%s7373_s17 + $0x290] ss:$8 sps:$4 sm:$0xff]  }
 0x5b2   :  { %3929 = vmatprep.mubr.bf16.mxu0 %v3703_v20  ;;  %v3593_v28 = vrot.slane %v3584_v16, %v3592_v63  ;;  %v3601_v34 = vrot.slane %v3585_v17, %v3592_v63  ;;  %v3609_v7 = vrot.slane %v4959_v42, 7  ;;  %v3627_v18 = vrot.slane %v4959_v42, 1  ;;  %v5592_v63 = vld [vmem:[%s7373_s17 + $0x2a4] ss:$8 sps:$4 sm:$0xff]   ;;  %v5601_v42 = vld [vmem:[%s7373_s17 + $0x2d4] ss:$8 sps:$4 sm:$0xff]  }
 0x5b3   :  { %3930 = vmatmul.mubr.bf16.vlgmr.msra.gmra.mrb[12].mxu0 %v3702_v53  ;;  %v3611_v23 = vrot.slane %v4960_v2, 7  ;;  %v3629_v12 = vrot.slane %v4960_v2, 1  ;;  %v3641_v14 = vrot.slane %v3584_v16, %v3640_v25  ;;  %v3649_v3 = vrot.slane %v3585_v17, %v3640_v25  ;;  %v5590_v25 = vld [vmem:[%s7373_s17 + $0x2a0] ss:$8 sps:$4 sm:$0xff]   ;;  %v5598_v20 = vld [vmem:[%s7373_s17 + $0x2c4] ss:$8 sps:$4 sm:$0xff]  }
 0x5b4   :  { %4339 = vmatpush1.bf16.msra.mxu0 %v5557_v0  ;;  %v3617_v27 = vsel %vm140_vm3, %v3593_v28, %v3609_v7  ;;  %v3589_v49 = vrot.slane %v3584_v16, %v5805_v51  ;;  %v3597_v33 = vrot.slane %v3585_v17, %v5805_v51  ;;  %v3608_v41 = vrot.slane %v3584_v16, 7  ;;  %v5596_v0 = vld [vmem:[%s7373_s17 + $0x2c0] ss:$8 sps:$4 sm:$0xff]   ;;  %v5599_v53 = vld [vmem:[%s7373_s17 + $0x2d0] ss:$8 sps:$4 sm:$0xff]  }
 0x5b5   :  { %4340 = vmatprep.subr.bf16.mxu0 %v5565_v50  ;;  %v3619_v26 = vsel %vm140_vm3, %v3601_v34, %v3611_v23  ;;  %v3655_v58 = vsel %vm3098_vm13, %v3627_v18, %v3641_v14  ;;  %v3657_v29 = vsel %vm3098_vm13, %v3629_v12, %v3649_v3  ;;  %v3610_v19 = vrot.slane %v3585_v17, 7  ;;  %v5604_v50 = vld [vmem:[%s7373_s17 + $0x2e4] ss:$8 sps:$4 sm:$0xff]   ;;  %v5602_v2 = vld [vmem:[%s7373_s17 + $0x2e0] ss:$8 sps:$4 sm:$0xff]  }
 0x5b6   :  { %v4962_v5 = vcombine.low %v3617_v27, %v3619_v26  ;;  %v5060_v21 = vcombine.low %v3655_v58, %v3657_v29  ;;  %v3616_v4 = vsel %vm140_vm3, %v3589_v49, %v3608_v41  ;;  %v3626_v32 = vrot.slane %v3584_v16, 1  ;;  %v5607_v28 = vld [vmem:[%s7373_s17 + $0x2f4] ss:$8 sps:$4 sm:$0xff]   ;;  %v5605_v34 = vld [vmem:[%s7373_s17 + $0x2f0] ss:$8 sps:$4 sm:$0xff]   ;;  %v4418_v26 = vpop.permute.xlu1 %4417  ;;  %v4406_v58 = vpop.permute.xlu0 %4405 }
 0x5b7   :  { %v3618_v31 = vsel %vm140_vm3, %v3597_v33, %v3610_v19  ;;  %v3628_v38 = vrot.slane %v3585_v17, 1  ;;  %v3637_v39 = vrot.slane %v3584_v16, %v7198_v10  ;;  %v3645_v40 = vrot.slane %v3585_v17, %v7198_v10  ;;  %v5595_v16 = vld [vmem:[%s7373_s17 + $0x2b4] ss:$8 sps:$4 sm:$0xff]   ;;  %v5593_v17 = vld [vmem:[%s7373_s17 + $0x2b0] ss:$8 sps:$4 sm:$0xff]  }
 0x5b8   :  { %4341 = vmatpush1.bf16.msra.mxu0 %v5563_v8  ;;  %v3669_v43 = vpack.c.bf16 %v4962_v5, %v4962_v5  ;;  %v4144_v54 = vpack.c.bf16 %v5060_v21, %v5060_v21  ;;  %v4961_v1 = vcombine.low %v3616_v4, %v3618_v31  ;;  %v5643_v29 = vmov 572653568  }
 0x5b9   :  { %4342 = vmatprep.subr.bf16.mxu0 %v5568_v30  ;;  %v3654_v61 = vsel %vm3098_vm13, %v3626_v32, %v3637_v39  ;;  %v3656_v52 = vsel %vm3098_vm13, %v3628_v38, %v3645_v40  ;;  %v4508_v19 = vunpack.c.l.s4 %v5643_v29  ;;  %v4426_v40 = vrot.slane %v4418_v26, %v6755_v37 }
 0x5ba   :  { %4130 = vmatprep.mubr.bf16.mxu1 %v3669_v43  ;;  %4370 = vmatprep.mubr.bf16.mxu0 %v4144_v54  ;;  %v3668_v36 = vpack.c.bf16 %v4961_v1, %v4961_v1  ;;  %v5059_v13 = vcombine.low %v3654_v61, %v3656_v52  ;;  %v4466_v30 = vpop.permute.xlu1 %4465  ;;  %v4454_v5 = vpop.permute.xlu0 %4453  ;;  %v4414_v43 = vrot.slane %v4406_v58, %v6755_v37 }
 0x5bb   :  { %v4509_v21 = vunpack.c.0.s8 %v4508_v19  ;;  %v4474_v4 = vrot.slane %v4466_v30, %v6755_v37  ;;  %v4462_v32 = vrot.slane %v4454_v5, %v6755_v37 }
 0x5bc   :  { %4131 = vmatmul.mubr.bf16.vlgmr.msra.gmra.mrb[28].mxu1 %v3668_v36  ;;  %4343 = vmatpush1.bf16.msra.mxu0 %v5566_v22  ;;  %v4143_v7 = vpack.c.bf16 %v5059_v13, %v5059_v13 }
 0x5bd   :  { %4344 = vmatprep.subr.bf16.mxu0 %v5571_v35  ;;  %v4512_v39 = vsub.s32 %v4509_v21, %v5795_v47 }
 0x5be   :  { %v4478_v31 = vpop.permute.xlu1 %4477  ;;  %v4430_v38 = vpop.permute.xlu0 %4429 }
 0x5bf   :  { %v4548_v54 = vrot.slane %v4474_v4, %v4512_v39  ;;  %v4541_v1 = vrot.slane %v4462_v32, %v4512_v39  ;;  %v4486_v22 = vrot.slane %v4478_v31, %v6755_v37  ;;  %v4520_v35 = vrot.slane %v4426_v40, %v4512_v39 }
 0x5c0   :  { %4345 = vmatpush1.bf16.msra.mxu0 %v5569_v6  ;;  %v4513_v61 = vrot.slane %v4414_v43, %v4512_v39  ;;  %v4438_v52 = vrot.slane %v4430_v38, %v6755_v37  ;;  %v4381_v6 = vld [vmem:[%s7374_s18] sm:$0x3]  ;;  %s5644_s18 = smov [#allocation4]  }
 0x5c1   :  { %4346 = vmatprep.subr.bf16.mxu0 %v5574_v9  ;;  %v4569_v47 = vsel %vm1295_vm11, %v4548_v54, %v4541_v1  ;;  %v4555_v9 = vrot.slane %v4486_v22, %v4512_v39  ;;  %s4698_s11 = sshll.u32 %s5644_s18, 4  ;;  %s4699_s11 = int_to_ptr.vmem [resolvable:$true] %s4698_s11 }
 0x5c2   :  { %v4490_v36 = vpop.permute.xlu1 %4489  ;;  %v4442_v13 = vpop.permute.xlu0 %4441  ;;  %s5614_s20 = scalar_lea.vmem %s4699_s11, 128  ;;  %p5619_p1 = scmp.lt.s32.totalorder %s4699_s11, %s4699_s11 }
 0x5c3   :  { %p5615_p0 = scmp.ne.s32.totalorder %s4699_s11, %s5614_s20  ;;  %p5620_p2 = scmp.lt.s32.totalorder %s5614_s20, %s5614_s20 }
 0x5c4   :  { %4347 = vmatpush1.bf16.msra.mxu0 %v5572_v56  ;;  %v4563_v56 = vsel %vm1295_vm11, %v4520_v35, %v4513_v61 }
 0x5c5   :  { %4348 = vmatprep.subr.bf16.mxu0 %v5577_v44  ;;  %v4527_v44 = vrot.slane %v4438_v52, %v4512_v39  ;;  %p5621_p3 = por %p5620_p2, %p5619_p1 }
 0x5c7   :  { %p5622_p4 = pnand %p5621_p3, %p5615_p0 }
 0x5c8   :  { %4349 = vmatpush1.bf16.msra.mxu0 %v5575_v45  ;;  %v4498_v45 = vrot.slane %v4490_v36, %v6755_v37 }
 0x5c9   :  { %4350 = vmatprep.subr.bf16.mxu0 %v5580_v46  ;;  %v4450_v46 = vrot.slane %v4442_v13, %v6755_v37 }
 0x5cc   :  { %4351 = vmatpush1.bf16.msra.mxu0 %v5578_v60  ;;  %v4386_v60 = vrot.slane %v4381_v6, %v5805_v51 }
 0x5cd   :  { %4352 = vmatprep.subr.bf16.mxu0 %v5583_v24  ;;  %v4570_v24 = vsel %vm827_vm5, %v4548_v54, %v4569_v47 }
 0x5d0   :  { %4353 = vmatpush1.bf16.msra.mxu0 %v5581_v57 }
 0x5d1   :  { %4354 = vmatprep.subr.bf16.mxu0 %v5586_v11  ;;  %v4390_v11 = vrot.slane %v4381_v6, %v5810_v55 }
 0x5d4   :  { %4355 = vmatpush1.bf16.msra.mxu0 %v5584_v15  ;;  %v4571_v15 = vsel %vm821_vm1, %v4555_v9, %v4570_v24 }
 0x5d5   :  { %4356 = vmatprep.subr.bf16.mxu0 %v5589_v59  ;;  %v4564_v59 = vsel %vm827_vm5, %v4520_v35, %v4563_v56 }
 0x5d8   :  { %4357 = vmatpush1.bf16.msra.mxu0 %v5587_v62 }
 0x5d9   :  { %4358 = vmatprep.subr.bf16.mxu0 %v5592_v63 }
 0x5dc   :  { %4359 = vmatpush1.bf16.msra.mxu0 %v5590_v25  ;;  %v4565_v25 = vsel %vm821_vm1, %v4527_v44, %v4564_v59 }
 0x5dd   :  { %4360 = vmatprep.subr.bf16.mxu0 %v5595_v16  ;;  %v4562_v16 = vrot.slane %v4498_v45, %v4512_v39 }
 0x5e0   :  { %4361 = vmatpush1.bf16.msra.mxu0 %v5593_v17  ;;  %v4534_v17 = vrot.slane %v4450_v46, %v4512_v39 }
 0x5e1   :  { %4362 = vmatprep.subr.bf16.mxu0 %v5598_v20 }
 0x5e4   :  { %4363 = vmatpush1.bf16.msra.mxu0 %v5596_v0 }
 0x5e5   :  { %4364 = vmatprep.subr.bf16.mxu0 %v5601_v42 }
 0x5e8   :  { %4365 = vmatpush1.bf16.msra.mxu0 %v5599_v53  ;;  %v4572_v53 = vsel %vm829_vm6, %v4555_v9, %v4571_v15 }
 0x5e9   :  { %4366 = vmatprep.subr.bf16.mxu0 %v5604_v50  ;;  %v4566_v50 = vsel %vm829_vm6, %v4527_v44, %v4565_v25 }
 0x5ec   :  { %4367 = vmatpush1.bf16.msra.mxu0 %v5602_v2 }
 0x5ed   :  { %4368 = vmatprep.subr.bf16.mxu0 %v5607_v28  ;;  %v4573_v28 = vsel %vm823_vm2, %v4562_v16, %v4572_v53 }
 0x5f0   :  { %4369 = vmatpush1.bf16.msra.mxu0 %v5605_v34  ;;  %v4567_v34 = vsel %vm823_vm2, %v4534_v17, %v4566_v50 }
 0x5f3   :  { %4371 = vmatmul.mubr.bf16.vlgmr.msra.gmra.mrb[16].mxu0 %v4143_v7 }
 0x686   :  { %v3931_v18 = vpop.f32.mrb[12].mxu0 }
 0x687   :  { %v3933_v23 = vpop.f32.mrb[13].mxu0 }
 0x688   :  { %v3935_v12 = vpop.f32.mrb[14].mxu0 }
 0x689   :  { %v3936_v14 = vpop.f32.mrb[15].mxu0  ;;  %v4574_v12 = vsel %vm831_vm8, %v4562_v16, %v4573_v28 }
 0x68a   :  { %v4568_v14 = vsel %vm831_vm8, %v4534_v17, %v4567_v34 }
 0x68f   :  { %v4132_v3 = vpop.f32.mrb[28].mxu1 }
 0x690   :  { %v4133_v8 = vadd.f32 %v4132_v3, %v3931_v18  ;;  %v4134_v27 = vpop.f32.mrb[29].mxu1 }
 0x691   :  { %v4135_v49 = vadd.f32 %v4134_v27, %v3933_v23  ;;  %v4136_v33 = vpop.f32.mrb[30].mxu1 }
 0x692   :  { %v4137_v41 = vpop.f32.mrb[31].mxu1 }
 0x6c6   :  { %v4372_v57 = vpop.f32.mrb[16].mxu0 }
 0x6c7   :  { %v4379_v62 = vadd.f32 %v4372_v57, %v4133_v8  ;;  %v4374_v63 = vpop.f32.mrb[17].mxu0 }
 0x6c8   :  { %v4380_v20 = vadd.f32 %v4374_v63, %v4135_v49  ;;  %v4376_v0 = vpop.f32.mrb[18].mxu0 }
 0x6c9   :  { %v4393_v37 = vadd.f32 %v4386_v60, %v4379_v62  ;;  %v4377_v42 = vpop.f32.mrb[19].mxu0 }
 0x6ca   :  { %v4394_v51 = vadd.f32 %v4390_v11, %v4380_v20 }
 0x6cb   :  { %v4395_v2 = vmax.f32 %v4393_v37, 0.0 }
 0x6cc   :  { %v4396_v7 = vmax.f32 %v4394_v51, 0.0 }
 0x6ce   :  { %v4399_v18 = vcombine.low %v4395_v2, %v4396_v7  ;;  %v4400_v23 = vcombine.high %v4395_v2, %v4396_v7 }
 0x6d0   :  { %v4577_v3 = vadd.f32 %v4568_v14, %v4399_v18  ;;  %v4578_v8 = vadd.f32 %v4574_v12, %v4400_v23 }
 0x6d2   :  { %v4587_v27 = vrot.slane %v4577_v3, %v5798_v48  ;;  %v4595_v49 = vrot.slane %v4578_v8, %v5798_v48 }
 0x6d4   :  { %v4620_v33 = vrot.slane %v4587_v27, %v5810_v55  ;;  %v4624_v41 = vrot.slane %v4587_v27, %v7198_v10  ;;  %v4628_v26 = vrot.slane %v4595_v49, %v5810_v55  ;;  %v4632_v58 = vrot.slane %v4595_v49, %v7198_v10 }
 0x6d5   :  { %v4588_v29 = vcombine.high %v4587_v27, %v4587_v27  ;;  %v4596_v19 = vcombine.high %v4595_v49, %v4595_v49  ;;  %v5125_v40 = vrot.slane %v4587_v27, 9  ;;  %v5127_v43 = vrot.slane %v4595_v49, 9 }
 0x6d6   :  { %v4637_v30 = vsel %vm140_vm3, -inf, %v4620_v33  ;;  %v4638_v5 = vsel %vm140_vm3, -inf, %v4624_v41  ;;  %v4639_v21 = vsel %vm140_vm3, -inf, %v4628_v26  ;;  %v4640_v4 = vsel %vm140_vm3, -inf, %v4632_v58 }
 0x6d7   :  { %v5126_v32 = vrot.slane %v4588_v29, 9  ;;  %v5128_v31 = vrot.slane %v4596_v19, 9  ;;  %v4645_v38 = vcombine.low %v4637_v30, %v4638_v5  ;;  %v4653_v39 = vcombine.low %v4639_v21, %v4640_v4 }
 0x6d8   :  { %v4613_v61 = vmax.f32 %v4587_v27, %v5125_v40  ;;  %v4615_v52 = vmax.f32 %v4595_v49, %v5127_v43 }
 0x6d9   :  { %v4652_v55 = vrot.slane %v4645_v38, %v5798_v48  ;;  %v4660_v10 = vrot.slane %v4653_v39, %v5798_v48  ;;  %v4614_v54 = vmax.f32 %v4588_v29, %v5126_v32  ;;  %v4616_v1 = vmax.f32 %v4596_v19, %v5128_v31 }
 0x6db   :  { %v4661_v22 = vrot.slane %v4652_v55, 1  ;;  %v4662_v35 = vrot.slane %v4660_v10, 1  ;;  %v4667_v6 = vmax.f32 %v4613_v61, %v4652_v55  ;;  %v4669_v47 = vmax.f32 %v4615_v52, %v4660_v10 }
 0x6dd   :  { %v4668_v36 = vmax.f32 %v4614_v54, %v4661_v22  ;;  %v4670_v13 = vmax.f32 %v4616_v1, %v4662_v35 }
 0x6df   :  { %v4677_v9 = vrot.slane %v4668_v36, 7  ;;  %v4684_v56 = vrot.slane %v4670_v13, 7 }
 0x6e1   :  { %v4678_v44 = vsel %vm1295_vm11, %v4677_v9, %v4667_v6  ;;  %v4685_v45 = vsel %vm1295_vm11, %v4684_v56, %v4669_v47 }
 0x6e2   :  { %v4679_v48 = vsel %vm823_vm2, %v4677_v9, %v4678_v44  ;;  %v4686_v46 = vsel %vm823_vm2, %v4684_v56, %v4685_v45 }
 0x6e3   :  { %v4680_v60 = vsel %vm827_vm5, %v4677_v9, %v4679_v48  ;;  %v4687_v24 = vsel %vm827_vm5, %v4684_v56, %v4686_v46 }
 0x6e4   :  { %v4681_v57 = vsel %vm831_vm8, %v4677_v9, %v4680_v60  ;;  %v4688_v11 = vsel %vm831_vm8, %v4684_v56, %v4687_v24 }
 0x6e5   :  { %4691 = vst [vmem:[#allocation4] sm:$0xf] %v4681_v57  ;;  %4692 = vst [vmem:[#allocation4 + $0x4] sm:$0xf] %v4688_v11 }
 0x6e6   :  { %5625 = shalt.err (!%p5622_p4)
}
 0x6e7   :  { %s5626_s1 = scalar_lea.hbm %s7375_s19, 128 }
 0x6e8   :  { %p5627_p5 = scmp.ne.s32.totalorder %s7375_s19, %s5626_s1  ;;  %p5630_p6 = scmp.lt.u32.totalorder %s5626_s1, %s7375_s19 }
 0x6ea   :  { %p5632_p7 = pnand %p5630_p6, %p5627_p5 }
 0x6ec   :  { %5635 = shalt.err (!%p5632_p7)
}
 0x6ed   :  { %s5645_s6 = smov 64   ;;  %s5646_s25 = smov 4  }
 0x6ee   :  { %4704 = dma.vmem_to_hbm [thread:$0]  %s4699_s11, 128, %s7375_s19, [#allocation5], %s5645_s6, %s5645_s6, %s5646_s25  }
 0x6ef   :  { %5636 = dma.done.wait [#allocation5], 128  }
 0x6f0   :  { %5637 = vsyncadd [#allocation5], 4294967168 }
 0x6f1   :  { %4708 = vsyncpa [#allocation5], 1 }

</bundles_post_ra>
